<compile_context>
chip_gen: v6e
topology: v6e:2x2x1
jax: 0.10.0
libtpu: 0.0.40
codegen_flags: <defaults>
</compile_context>

<pallas_src>
import functools

import jax
import jax.numpy as jnp
from jax import lax
from jax.experimental import pallas as pl
from jax.experimental.pallas import tpu as pltpu

_LN_EPS = 1e-5                 # torch.nn.LayerNorm default eps
_INV_SQRT2 = 0.7071067811865476
_NEG_INF = -1e30               # mask value, kept in f32


# ---------------------------------------------------------------------------
# Hardware-aware knobs (probed once, cached).
# ---------------------------------------------------------------------------
_VMEM_LIMIT_CACHE = None
_SINGLE_BUFFER_OK = None


def _vmem_limit():
    """Generation-aware scoped-VMEM limit (3/4 of physical, capped at 100 MiB)."""
    global _VMEM_LIMIT_CACHE
    if _VMEM_LIMIT_CACHE is None:
        cap = None
        try:
            info = pltpu.get_tpu_info()
            cap = getattr(info, "vmem_capacity_bytes", None)
        except Exception:
            cap = None
        if cap:
            _VMEM_LIMIT_CACHE = int(min(int(cap) * 3 // 4, 100 * 1024 * 1024))
        else:
            _VMEM_LIMIT_CACHE = 64 * 1024 * 1024
    return _VMEM_LIMIT_CACHE


def _probe_copy_kernel(x_ref, o_ref):
    o_ref[...] = x_ref[...]


def _single_buffer_ok():
    """Probe (once, eagerly) whether pipeline_mode=pl.Buffered(1) is supported."""
    global _SINGLE_BUFFER_OK
    if _SINGLE_BUFFER_OK is None:
        try:
            spec = pl.BlockSpec((8, 128), lambda i: (0, 0),
                                pipeline_mode=pl.Buffered(1))
            x = jnp.zeros((8, 128), jnp.float32)
            out = pl.pallas_call(
                _probe_copy_kernel,
                grid=(2,),
                in_specs=[spec],
                out_specs=pl.BlockSpec((8, 128), lambda i: (0, 0)),
                out_shape=jax.ShapeDtypeStruct((8, 128), jnp.float32),
            )(x)
            jax.block_until_ready(out)
            _SINGLE_BUFFER_OK = True
        except Exception:
            _SINGLE_BUFFER_OK = False
    return _SINGLE_BUFFER_OK


def _weight_spec(block_shape, index_map):
    """BlockSpec for a grid-invariant weight: single-buffered when available."""
    if _single_buffer_ok():
        return pl.BlockSpec(block_shape, index_map, pipeline_mode=pl.Buffered(1))
    return pl.BlockSpec(block_shape, index_map)


# ---------------------------------------------------------------------------
# Small math helpers (f32).
# ---------------------------------------------------------------------------
def _pick_tile(n, candidates=(512, 256, 128)):
    """Largest candidate tile dividing n, else the full (small) extent."""
    for c in candidates:
        if n % c == 0:
            return c
    if n > max(candidates):
        raise ValueError(
            f"dimension {n} is not divisible by any of {candidates}; pad the input")
    return n


def _layernorm(x):
    """nn.LayerNorm(dim, elementwise_affine=False) over the last axis (f32)."""
    mu = jnp.mean(x, axis=-1, keepdims=True)
    xc = x - mu
    var = jnp.mean(xc * xc, axis=-1, keepdims=True)
    return xc * lax.rsqrt(var + _LN_EPS)


def _poly(z, coeffs):
    acc = jnp.full_like(z, coeffs[0])
    for c in coeffs[1:]:
        acc = acc * z + c
    return acc


def _erf_f32(x):
    """f32 erf via rational approximation (mul/add + EUP reciprocal)."""
    alpha = (0.00022905065861350646, 0.0034082910107109506,
             0.050955695062380861, 0.18520832239976145, 1.128379143519084)
    beta = (-1.1791602954361697e-7, 0.000023547966471313185,
            0.0010179625278914885, 0.014070470171167667,
            0.11098505178285362, 0.49746925110067538, 1.0)
    x = jnp.clip(x, -4.0, 4.0)
    x2 = x * x
    return x * _poly(x2, alpha) * pl.reciprocal(_poly(x2, beta), approx=True)


def _gelu_exact(x):
    """nn.GELU(approximate='none'): 0.5 * x * (1 + erf(x / sqrt(2)))."""
    return 0.5 * x * (1.0 + _erf_f32(x * _INV_SQRT2))


# ---------------------------------------------------------------------------
# Kernel 1: ln1 + QKV projection -> head-major (B, H, S, dh) bf16 outputs.
# (q is pre-scaled by attn_scale/dim_heads via the weight, see prepare_params.)
# ---------------------------------------------------------------------------
def _qkv_kernel(x_ref, w_attn_ref, q_ref, k_ref, v_ref, *, nb_heads, dim_heads):
    D = nb_heads * dim_heads
    x = x_ref[0].astype(jnp.float32)                        # (tS, D)
    h = _layernorm(x).astype(jnp.bfloat16)
    qkv = jnp.dot(h, w_attn_ref[...],
                  preferred_element_type=jnp.float32)       # (tS, 3D) f32 acc
    # Head-major split: the lane-offset slices happen once here instead of
    # once per kv step inside the attention kernel.
    for hd in range(nb_heads):
        lo = hd * dim_heads
        q_ref[0, hd] = qkv[:, lo:lo + dim_heads].astype(q_ref.dtype)
        k_ref[0, hd] = qkv[:, D + lo:D + lo + dim_heads].astype(k_ref.dtype)
        v_ref[0, hd] = qkv[:, 2 * D + lo:2 * D + lo + dim_heads].astype(v_ref.dtype)


def _qkv_project(x, w_attn_t, *, nb_heads, dim_heads):
    B, S, D = x.shape
    ts = _pick_tile(S)
    x_spec = pl.BlockSpec((1, ts, D), lambda b, si: (b, si, 0))
    head_spec = pl.BlockSpec((1, nb_heads, ts, dim_heads),
                             lambda b, si: (b, 0, si, 0))
    out = jax.ShapeDtypeStruct((B, nb_heads, S, dim_heads), jnp.bfloat16)
    kernel = functools.partial(_qkv_kernel, nb_heads=nb_heads,
                               dim_heads=dim_heads)
    return pl.pallas_call(
        kernel,
        grid=(B, S // ts),
        in_specs=[x_spec,
                  _weight_spec((D, 3 * D), lambda b, si: (0, 0))],
        out_specs=(head_spec, head_spec, head_spec),
        out_shape=(out, out, out),
        compiler_params=pltpu.CompilerParams(
            dimension_semantics=("parallel", "parallel"),
            vmem_limit_bytes=_vmem_limit()),
    )(x, w_attn_t)


# ---------------------------------------------------------------------------
# Kernel 2: flash-style causal multi-head attention.
#   * q/k/v head-major: all inner-loop accesses index the leading head axis.
#   * kv index_map clamped to min(ki, qi): masked kv tiles issue no DMA.
#   * causal mask built only on the diagonal tile.
# ---------------------------------------------------------------------------
def _flash_attn_kernel(q_ref, k_ref, v_ref, o_ref, m_sc, l_sc, acc_sc, *,
                       nb_heads, dim_heads):
    qi = pl.program_id(1)
    ki = pl.program_id(2)
    tq = q_ref.shape[2]
    tk = k_ref.shape[2]

    @pl.when(ki == 0)
    def _init():
        m_sc[...] = jnp.full_like(m_sc, _NEG_INF)
        l_sc[...] = jnp.zeros_like(l_sc)
        acc_sc[...] = jnp.zeros_like(acc_sc)

    def _update(causal_mask):
        for h in range(nb_heads):            # static unroll; pure 2-D MXU ops
            q = q_ref[0, h]                  # (tq, dh) bf16
            k = k_ref[0, h]
            v = v_ref[0, h]
            s = jnp.einsum('qd,kd->qk', q, k,
                           preferred_element_type=jnp.float32)        # f32
            if causal_mask is not None:
                s = jnp.where(causal_mask, s, _NEG_INF)
            m_prev = m_sc[h]                                           # (tq, 1)
            m_new = jnp.maximum(m_prev, jnp.max(s, axis=-1, keepdims=True))
            alpha = jnp.exp(m_prev - m_new)
            p = jnp.exp(s - m_new)
            l_sc[h] = alpha * l_sc[h] + jnp.sum(p, axis=-1, keepdims=True)
            acc_sc[h] = alpha * acc_sc[h] + jnp.dot(
                p.astype(v.dtype), v, preferred_element_type=jnp.float32)
            m_sc[h] = m_new

    @pl.when(ki < qi)                 # strictly below the diagonal: no mask
    def _off_diag():
        _update(None)

    @pl.when(ki == qi)                # diagonal tile: local causal mask only
    def _diag():
        # tq == tk, so the global (qi*tq, ki*tk) offsets cancel.
        causal = (lax.broadcasted_iota(jnp.int32, (tq, tk), 0)
                  >= lax.broadcasted_iota(jnp.int32, (tq, tk), 1))
        _update(causal)

    @pl.when(ki == pl.num_programs(2) - 1)
    def _finalize():
        for h in range(nb_heads):
            lo = h * dim_heads
            o_ref[0, :, lo:lo + dim_heads] = (
                acc_sc[h] * pl.reciprocal(l_sc[h], approx=True)
            ).astype(o_ref.dtype)


def _causal_attention(q, k, v):
    B, H, S, dh = q.shape
    D = H * dh
    ts = _pick_tile(S)
    nt = S // ts
    kernel = functools.partial(_flash_attn_kernel, nb_heads=H, dim_heads=dh)
    q_spec = pl.BlockSpec((1, H, ts, dh), lambda b, qi, ki: (b, 0, qi, 0))
    # Clamp the kv block index so fully-masked (ki > qi) steps re-use the
    # previous block and issue no new DMA.
    kv_spec = pl.BlockSpec((1, H, ts, dh),
                           lambda b, qi, ki: (b, 0, jnp.minimum(ki, qi), 0))
    o_spec = pl.BlockSpec((1, ts, D), lambda b, qi, ki: (b, qi, 0))
    return pl.pallas_call(
        kernel,
        grid=(B, nt, nt),
        in_specs=[q_spec, kv_spec, kv_spec],
        out_specs=o_spec,
        out_shape=jax.ShapeDtypeStruct((B, S, D), jnp.bfloat16),
        scratch_shapes=[pltpu.VMEM((H, ts, 1), jnp.float32),    # m
                        pltpu.VMEM((H, ts, 1), jnp.float32),    # l
                        pltpu.VMEM((H, ts, dh), jnp.float32)],  # acc
        compiler_params=pltpu.CompilerParams(
            dimension_semantics=("parallel", "parallel", "arbitrary"),
            vmem_limit_bytes=_vmem_limit()),
    )(q, k, v)


# ---------------------------------------------------------------------------
# Kernel 3: attn out-proj + residual, ln2 + MLP(exact GELU) + residual.
# The last transformer block also applies ln_f * output_scale and emits bf16,
# so the lm_head kernel does no LayerNorm work.
# ---------------------------------------------------------------------------
def _post_attn_mlp_kernel(x_ref, y_ref, w_aproj_ref, w_fc_ref, w_mproj_ref,
                          o_ref, *, hm_chunk, final_ln, output_scale):
    x = x_ref[0].astype(jnp.float32)                        # (tS, D) residual
    x = x + jnp.dot(y_ref[0], w_aproj_ref[...],
                    preferred_element_type=jnp.float32)
    h = _layernorm(x).astype(jnp.bfloat16)
    Hm = w_fc_ref.shape[1]
    for c in range(0, Hm, hm_chunk):          # bounded f32 GELU slab per chunk
        hid = jnp.dot(h, w_fc_ref[:, c:c + hm_chunk],
                      preferred_element_type=jnp.float32)
        hid = _gelu_exact(hid).astype(jnp.bfloat16)
        x = x + jnp.dot(hid, w_mproj_ref[c:c + hm_chunk, :],
                        preferred_element_type=jnp.float32)
    if final_ln:
        # Hoisted ln_f * output_scale (computed once, not once per vocab tile).
        o_ref[0] = (_layernorm(x) * output_scale).astype(o_ref.dtype)
    else:
        o_ref[0] = x.astype(o_ref.dtype)


def _mlp_hidden_chunk(Hm):
    for c in (2048, 1024):
        if Hm > c and Hm % c == 0:
            return c
    return Hm


def _attn_out_and_mlp(x, y, w_aproj_t, w_fc_t, w_mproj_t, *,
                      final_ln=False, output_scale=1.0):
    B, S, D = x.shape
    Hm = w_fc_t.shape[1]
    ts = _pick_tile(S)
    act_spec = pl.BlockSpec((1, ts, D), lambda b, si: (b, si, 0))
    out_dtype = jnp.bfloat16 if final_ln else jnp.float32
    kernel = functools.partial(_post_attn_mlp_kernel,
                               hm_chunk=_mlp_hidden_chunk(Hm),
                               final_ln=final_ln, output_scale=output_scale)
    return pl.pallas_call(
        kernel,
        grid=(B, S // ts),
        in_specs=[act_spec, act_spec,
                  _weight_spec((D, D), lambda b, si: (0, 0)),
                  _weight_spec((D, Hm), lambda b, si: (0, 0)),
                  _weight_spec((Hm, D), lambda b, si: (0, 0))],
        out_specs=act_spec,
        out_shape=jax.ShapeDtypeStruct((B, S, D), out_dtype),
        compiler_params=pltpu.CompilerParams(
            dimension_semantics=("parallel", "parallel"),
            vmem_limit_bytes=_vmem_limit()),
    )(x, y, w_aproj_t, w_fc_t, w_mproj_t)


def transformer_block(x, layer, *, nb_heads, dim_heads,
                      final_ln=False, output_scale=1.0):
    q, k, v = _qkv_project(x, layer['w_attn_t'],
                           nb_heads=nb_heads, dim_heads=dim_heads)
    y = _causal_attention(q, k, v)
    return _attn_out_and_mlp(x, y, layer['w_aproj_t'], layer['w_fc_t'],
                             layer['w_mproj_t'],
                             final_ln=final_ln, output_scale=output_scale)


# ---------------------------------------------------------------------------
# Kernel 4: tied lm_head (pure matmul; ln_f already applied upstream).
# Vocab axis outermost: each (D, tv) weight tile is streamed from HBM exactly
# once total (reused across all (b, si) inner steps).
# ---------------------------------------------------------------------------
def _head_kernel(h_ref, w_ref, o_ref):
    o_ref[0] = jnp.dot(h_ref[0], w_ref[...],
                       preferred_element_type=jnp.float32).astype(o_ref.dtype)


def lm_head(h, wie_t):
    B, S, D = h.shape
    V = wie_t.shape[1]
    ts = _pick_tile(S)
    tv = _pick_tile(V, (2048, 1024, 512, 256, 128))          # lane-aligned tile
    # TODO(synk): emit bf16 logits if the downstream loss/sampler tolerates it
    # (halves the largest HBM write of the forward).
    return pl.pallas_call(
        _head_kernel,
        grid=(V // tv, B, S // ts),
        in_specs=[pl.BlockSpec((1, ts, D), lambda vi, b, si: (b, si, 0)),
                  pl.BlockSpec((D, tv), lambda vi, b, si: (0, vi))],
        out_specs=pl.BlockSpec((1, ts, tv), lambda vi, b, si: (b, si, vi)),
        out_shape=jax.ShapeDtypeStruct((B, S, V), jnp.float32),
        compiler_params=pltpu.CompilerParams(
            dimension_semantics=("parallel", "parallel", "parallel"),
            vmem_limit_bytes=_vmem_limit()),
    )(h, wie_t)


# ---------------------------------------------------------------------------
# Parameter init (mimics MupGPT2._init_weights) + device-ready preparation.
# ---------------------------------------------------------------------------
def init_params(key, *, D, nb_layers, mlp_mult, vocab, nb_timesteps, nb_tok,
                init_std=0.02):
    depth_std = init_std * (2 * nb_layers) ** (-0.5)
    keys = jax.random.split(key, 3 + 4 * nb_layers)
    wie = init_std * jax.random.normal(keys[0], (vocab, D), jnp.float32)
    wse = init_std * jax.random.normal(keys[1], (nb_tok, D), jnp.float32)
    wte = init_std * jax.random.normal(keys[2], (nb_timesteps, D), jnp.float32)

    layers = []
    ki = 3
    for _ in range(nb_layers):
        w_attn = init_std * jax.random.normal(keys[ki], (3 * D, D), jnp.float32); ki += 1
        w_attn = w_attn.at[:D, :].set(0.0)            # muP: zero the query rows
        w_aproj = depth_std * jax.random.normal(keys[ki], (D, D), jnp.float32); ki += 1
        w_fc = init_std * jax.random.normal(keys[ki], (mlp_mult * D, D), jnp.float32); ki += 1
        w_mproj = depth_std * jax.random.normal(keys[ki], (D, mlp_mult * D), jnp.float32); ki += 1
        layers.append(dict(w_attn=w_attn, w_aproj=w_aproj,
                           w_fc=w_fc, w_mproj=w_mproj))
    return dict(wie=wie, wse=wse, wte=wte, layers=layers)


def prepare_params(raw, *, dim_heads, attn_scale=1.0):
    """Pre-transpose weights, cast matmul weights to bf16, fold the muP
    attention scale (attn_scale / dim_heads) into the query columns of c_attn,
    and pre-transpose the tied lm_head weight (done once, not per forward)."""
    _single_buffer_ok()                      # prime the probes eagerly (outside jit)
    _vmem_limit()
    wie = raw['wie']
    D = wie.shape[1]
    scale = attn_scale / float(dim_heads)
    layers = []
    for lyr in raw['layers']:
        w_attn_t = jnp.transpose(lyr['w_attn'])               # (D, 3D) f32
        w_attn_t = w_attn_t.at[:, :D].multiply(scale)         # fold q scaling
        layers.append(dict(
            w_attn_t=w_attn_t.astype(jnp.bfloat16),
            w_aproj_t=jnp.transpose(lyr['w_aproj']).astype(jnp.bfloat16),
            w_fc_t=jnp.transpose(lyr['w_fc']).astype(jnp.bfloat16),
            w_mproj_t=jnp.transpose(lyr['w_mproj']).astype(jnp.bfloat16)))
    return dict(wie=wie, wse=raw['wse'], wte=raw['wte'],
                wie_t=jnp.transpose(wie).astype(jnp.bfloat16),
                layers=layers)


# ---------------------------------------------------------------------------
# Full forward (training-mode path: causal mask, full-sequence logits).
# ---------------------------------------------------------------------------
def mup_gpt2_forward(token_sequence, spatial_positions, temporal_positions,
                     params, *, dim_heads, output_scale=1.0):
    wie, wse, wte = params['wie'], params['wse'], params['wte']
    D = wie.shape[1]
    nb_heads = D // dim_heads

    # Embedding gathers (plain-JAX glue): tok_emb + temporal_pos + spatial_pos.
    x = (jnp.take(wie, token_sequence, axis=0)
         + jnp.take(wte, temporal_positions, axis=0)
         + jnp.take(wse, spatial_positions, axis=0)).astype(jnp.float32)

    n_layers = len(params['layers'])
    for idx, layer in enumerate(params['layers']):
        x = transformer_block(
            x, layer, nb_heads=nb_heads, dim_heads=dim_heads,
            final_ln=(idx == n_layers - 1),     # ln_f * output_scale fused here
            output_scale=output_scale)

    return lm_head(x, params['wie_t'])
    # TODO(synk): KV-cache inference path and autoregressive top-k sampling
    # (forward_inference) are host-side generation loops, not kernel work.


if __name__ == "__main__":
    # Small config consistent with the module's constructor.
    B = 2
    D = 32                     # embedding_dim
    nb_layers = 2
    dim_heads = 8              # -> nb_heads = 4
    mlp_mult = 4
    vocab = 64
    nb_timesteps = 2
    nb_tok = 4                 # nb_tokens_per_timestep
    S = nb_timesteps * nb_tok  # block_size = 8

    key = jax.random.PRNGKey(0)
    k_params, k_tok = jax.random.split(key)
    raw = init_params(k_params, D=D, nb_layers=nb_layers, mlp_mult=mlp_mult,
                      vocab=vocab, nb_timesteps=nb_timesteps, nb_tok=nb_tok)
    params = prepare_params(raw, dim_heads=dim_heads, attn_scale=1.0)

    token_sequence = jax.random.randint(k_tok, (B, S), 0, vocab, dtype=jnp.int32)
    spatial_positions = jnp.tile(
        jnp.tile(jnp.arange(nb_tok, dtype=jnp.int32), nb_timesteps)[None], (B, 1))
    temporal_positions = jnp.tile(
        jnp.repeat(jnp.arange(nb_timesteps, dtype=jnp.int32), nb_tok)[None], (B, 1))

    fwd = jax.jit(functools.partial(mup_gpt2_forward, dim_heads=dim_heads,
                                    output_scale=1.0))
    logits = jax.block_until_ready(
        fwd(token_sequence, spatial_positions, temporal_positions, params))

    assert logits.shape == (B, S, vocab), logits.shape
    assert logits.dtype == jnp.float32
    assert bool(jnp.all(jnp.isfinite(logits)))
    print("KERNEL_OK")
</pallas_src>

<mosaic_0001>
module attributes {stable_mosaic.version = 11 : i64} {
  func.func @_probe_copy_kernel(%arg0: i32, %arg1: memref<8x128xf32, #tpu.memory_space<vmem>>, %arg2: memref<8x128xf32, #tpu.memory_space<vmem>>) attributes {dimension_semantics = [#tpu.dimension_semantics<arbitrary>], iteration_bounds = array<i64: 2>, scalar_prefetch = 0 : i64, scratch_operands = 0 : i64, tpu.core_type = #tpu.core_type<tc>, window_params = [{pipeline_mode = #tpu.pipeline_mode<synchronous>, transform_indices = @transform_0, window_bounds = array<i64: 8, 128>}, {pipeline_mode = #tpu.pipeline_mode<synchronous>, transform_indices = @transform_1, window_bounds = array<i64: 8, 128>}]} {
    %c0 = arith.constant 0 : index
    %c0_0 = arith.constant 0 : index
    %0 = vector.load %arg1[%c0, %c0_0] : memref<8x128xf32, #tpu.memory_space<vmem>>, vector<8x128xf32>
    %c0_1 = arith.constant 0 : index
    %c0_2 = arith.constant 0 : index
    %1 = vector.load %arg2[%c0_1, %c0_2] : memref<8x128xf32, #tpu.memory_space<vmem>>, vector<8x128xf32>
    tpu.vector_store %arg2[%c0_1, %c0_2], %0 {strides = array<i32>} : memref<8x128xf32, #tpu.memory_space<vmem>>, vector<8x128xf32>,
    return
  }
  func.func @transform_0(%arg0: i32) -> (i32, i32) {
    %c0_i32 = arith.constant 0 : i32
    %c0_i32_0 = arith.constant 0 : i32
    %c0_i32_1 = arith.constant 0 : i32
    return %c0_i32, %c0_i32_0 : i32, i32
  }
  func.func @transform_1(%arg0: i32) -> (i32, i32) {
    %c0_i32 = arith.constant 0 : i32
    %c0_i32_0 = arith.constant 0 : i32
    %c0_i32_1 = arith.constant 0 : i32
    return %c0_i32, %c0_i32_0 : i32, i32
  }
}

module attributes {stable_mosaic.version = 11 : i64} {
  func.func @_flash_attn_kernel(%arg0: i32, %arg1: i32, %arg2: i32, %arg3: memref<1x4x8x8xbf16, #tpu.memory_space<vmem>>, %arg4: memref<1x4x8x8xbf16, #tpu.memory_space<vmem>>, %arg5: memref<1x4x8x8xbf16, #tpu.memory_space<vmem>>, %arg6: memref<1x8x32xbf16, #tpu.memory_space<vmem>>, %arg7: memref<4x8x1xf32, #tpu.memory_space<vmem>>, %arg8: memref<4x8x1xf32, #tpu.memory_space<vmem>>, %arg9: memref<4x8x8xf32, #tpu.memory_space<vmem>>) attributes {dimension_semantics = [#tpu.dimension_semantics<parallel>, #tpu.dimension_semantics<parallel>, #tpu.dimension_semantics<arbitrary>], iteration_bounds = array<i64: 2, 1, 1>, scalar_prefetch = 0 : i64, scratch_operands = 3 : i64, tpu.core_type = #tpu.core_type<tc>, window_params = [{transform_indices = @transform_0, window_bounds = array<i64: 1, 4, 8, 8>}, {transform_indices = @transform_1, window_bounds = array<i64: 1, 4, 8, 8>}, {transform_indices = @transform_2, window_bounds = array<i64: 1, 4, 8, 8>}, {transform_indices = @transform_3, window_bounds = array<i64: 1, 8, 32>}]} {
    %c0_i32 = arith.constant 0 : i32
    %0 = arith.cmpi eq, %arg2, %c0_i32 : i32
    %1 = arith.extui %0 : i1 to i32
    %c0_i32_0 = arith.constant 0 : i32
    %2 = arith.cmpi ne, %1, %c0_i32_0 : i32
    scf.if %2 {
      %cst = arith.constant -1.000000e+30 : f32
      %12 = vector.broadcast %cst : f32 to vector<4x8x1xf32>
      %c0 = arith.constant 0 : index
      %c0_5 = arith.constant 0 : index
      %c0_6 = arith.constant 0 : index
      %13 = vector.load %arg7[%c0, %c0_5, %c0_6] : memref<4x8x1xf32, #tpu.memory_space<vmem>>, vector<4x8x1xf32>
      tpu.vector_store %arg7[%c0, %c0_5, %c0_6], %12 {strides = array<i32>} : memref<4x8x1xf32, #tpu.memory_space<vmem>>, vector<4x8x1xf32>,
      %cst_7 = arith.constant 0.000000e+00 : f32
      %14 = vector.broadcast %cst_7 : f32 to vector<4x8x1xf32>
      %c0_8 = arith.constant 0 : index
      %c0_9 = arith.constant 0 : index
      %c0_10 = arith.constant 0 : index
      %15 = vector.load %arg8[%c0_8, %c0_9, %c0_10] : memref<4x8x1xf32, #tpu.memory_space<vmem>>, vector<4x8x1xf32>
      tpu.vector_store %arg8[%c0_8, %c0_9, %c0_10], %14 {strides = array<i32>} : memref<4x8x1xf32, #tpu.memory_space<vmem>>, vector<4x8x1xf32>,
      %cst_11 = arith.constant 0.000000e+00 : f32
      %16 = vector.broadcast %cst_11 : f32 to vector<4x8x8xf32>
      %c0_12 = arith.constant 0 : index
      %c0_13 = arith.constant 0 : index
      %c0_14 = arith.constant 0 : index
      %17 = vector.load %arg9[%c0_12, %c0_13, %c0_14] : memref<4x8x8xf32, #tpu.memory_space<vmem>>, vector<4x8x8xf32>
      tpu.vector_store %arg9[%c0_12, %c0_13, %c0_14], %16 {strides = array<i32>} : memref<4x8x8xf32, #tpu.memory_space<vmem>>, vector<4x8x8xf32>,
    } else {
    }
    %3 = arith.cmpi slt, %arg2, %arg1 : i32
    %4 = arith.extui %3 : i1 to i32
    %c0_i32_1 = arith.constant 0 : i32
    %5 = arith.cmpi ne, %4, %c0_i32_1 : i32
    scf.if %5 {
      %c0 = arith.constant 0 : index
      %c0_5 = arith.constant 0 : index
      %c0_6 = arith.constant 0 : index
      %c0_7 = arith.constant 0 : index
      %12 = vector.load %arg3[%c0, %c0_5, %c0_6, %c0_7] : memref<1x4x8x8xbf16, #tpu.memory_space<vmem>>, vector<1x1x8x8xbf16>
      %13 = vector.shape_cast %12 : vector<1x1x8x8xbf16> to vector<8x8xbf16>
      %c0_8 = arith.constant 0 : index
      %c0_9 = arith.constant 0 : index
      %c0_10 = arith.constant 0 : index
      %c0_11 = arith.constant 0 : index
      %14 = vector.load %arg4[%c0_8, %c0_9, %c0_10, %c0_11] : memref<1x4x8x8xbf16, #tpu.memory_space<vmem>>, vector<1x1x8x8xbf16>
      %15 = vector.shape_cast %14 : vector<1x1x8x8xbf16> to vector<8x8xbf16>
      %c0_12 = arith.constant 0 : index
      %c0_13 = arith.constant 0 : index
      %c0_14 = arith.constant 0 : index
      %c0_15 = arith.constant 0 : index
      %16 = vector.load %arg5[%c0_12, %c0_13, %c0_14, %c0_15] : memref<1x4x8x8xbf16, #tpu.memory_space<vmem>>, vector<1x1x8x8xbf16>
      %17 = vector.shape_cast %16 : vector<1x1x8x8xbf16> to vector<8x8xbf16>
      "tpu.trace_start"() <{level = 10 : i32, message = "qd,kd->qk"}> : () -> ()
      %cst = arith.constant dense<0.000000e+00> : vector<8x8xf32>
      %18 = tpu.matmul %13, %15, %cst {dimension_numbers = #tpu.dot_dimension_numbers<[1], [1], [0], [0], [0, 0, 1, 0], [], []>} : vector<8x8xbf16>, vector<8x8xbf16>, vector<8x8xf32> -> vector<8x8xf32>
      "tpu.trace_stop"() : () -> ()
      %c0_16 = arith.constant 0 : index
      %c0_17 = arith.constant 0 : index
      %c0_18 = arith.constant 0 : index
      %19 = vector.load %arg7[%c0_16, %c0_17, %c0_18] : memref<4x8x1xf32, #tpu.memory_space<vmem>>, vector<1x8x1xf32>
      %20 = vector.shape_cast %19 : vector<1x8x1xf32> to vector<8x1xf32>
      %cst_19 = arith.constant dense<0xFF800000> : vector<8xf32>
      %21 = vector.multi_reduction <maximumf>, %18, %cst_19 [1] : vector<8x8xf32> to vector<8xf32>
      %22 = vector.shape_cast %21 : vector<8xf32> to vector<8x1xf32>
      %23 = arith.maximumf %20, %22 : vector<8x1xf32>
      %24 = arith.subf %20, %23 : vector<8x1xf32>
      %25 = math.exp %24 : vector<8x1xf32>
      %26 = vector.broadcast %23 : vector<8x1xf32> to vector<8x8xf32>
      %27 = arith.subf %18, %26 : vector<8x8xf32>
      %28 = math.exp %27 : vector<8x8xf32>
      %c0_20 = arith.constant 0 : index
      %c0_21 = arith.constant 0 : index
      %c0_22 = arith.constant 0 : index
      %29 = vector.load %arg8[%c0_20, %c0_21, %c0_22] : memref<4x8x1xf32, #tpu.memory_space<vmem>>, vector<1x8x1xf32>
      %30 = vector.shape_cast %29 : vector<1x8x1xf32> to vector<8x1xf32>
      %31 = arith.mulf %25, %30 : vector<8x1xf32>
      %cst_23 = arith.constant dense<0.000000e+00> : vector<8xf32>
      %32 = vector.multi_reduction <add>, %28, %cst_23 [1] : vector<8x8xf32> to vector<8xf32>
      %33 = vector.shape_cast %32 : vector<8xf32> to vector<8x1xf32>
      %34 = arith.addf %31, %33 : vector<8x1xf32>
      %c0_24 = arith.constant 0 : index
      %c0_25 = arith.constant 0 : index
      %c0_26 = arith.constant 0 : index
      %35 = vector.load %arg8[%c0_24, %c0_25, %c0_26] : memref<4x8x1xf32, #tpu.memory_space<vmem>>, vector<1x8x1xf32>
      %36 = vector.shape_cast %35 : vector<1x8x1xf32> to vector<8x1xf32>
      %37 = vector.shape_cast %34 : vector<8x1xf32> to vector<1x8x1xf32>
      tpu.vector_store %arg8[%c0_24, %c0_25, %c0_26], %37 {strides = array<i32>} : memref<4x8x1xf32, #tpu.memory_space<vmem>>, vector<1x8x1xf32>,
      %c0_27 = arith.constant 0 : index
      %c0_28 = arith.constant 0 : index
      %c0_29 = arith.constant 0 : index
      %38 = vector.load %arg9[%c0_27, %c0_28, %c0_29] : memref<4x8x8xf32, #tpu.memory_space<vmem>>, vector<1x8x8xf32>
      %39 = vector.shape_cast %38 : vector<1x8x8xf32> to vector<8x8xf32>
      %40 = vector.broadcast %25 : vector<8x1xf32> to vector<8x8xf32>
      %41 = arith.mulf %40, %39 : vector<8x8xf32>
      %42 = arith.truncf %28 : vector<8x8xf32> to vector<8x8xbf16>
      %cst_30 = arith.constant dense<0.000000e+00> : vector<8x8xf32>
      %43 = tpu.matmul %42, %17, %cst_30 {dimension_numbers = #tpu.dot_dimension_numbers<[1], [0], [0], [1], [0, 0, 1, 1], [], []>} : vector<8x8xbf16>, vector<8x8xbf16>, vector<8x8xf32> -> vector<8x8xf32>
      %44 = arith.addf %41, %43 : vector<8x8xf32>
      %c0_31 = arith.constant 0 : index
      %c0_32 = arith.constant 0 : index
      %c0_33 = arith.constant 0 : index
      %45 = vector.load %arg9[%c0_31, %c0_32, %c0_33] : memref<4x8x8xf32, #tpu.memory_space<vmem>>, vector<1x8x8xf32>
      %46 = vector.shape_cast %45 : vector<1x8x8xf32> to vector<8x8xf32>
      %47 = vector.shape_cast %44 : vector<8x8xf32> to vector<1x8x8xf32>
      tpu.vector_store %arg9[%c0_31, %c0_32, %c0_33], %47 {strides = array<i32>} : memref<4x8x8xf32, #tpu.memory_space<vmem>>, vector<1x8x8xf32>,
      %c0_34 = arith.constant 0 : index
      %c0_35 = arith.constant 0 : index
      %c0_36 = arith.constant 0 : index
      %48 = vector.load %arg7[%c0_34, %c0_35, %c0_36] : memref<4x8x1xf32, #tpu.memory_space<vmem>>, vector<1x8x1xf32>
      %49 = vector.shape_cast %48 : vector<1x8x1xf32> to vector<8x1xf32>
      %50 = vector.shape_cast %23 : vector<8x1xf32> to vector<1x8x1xf32>
      tpu.vector_store %arg7[%c0_34, %c0_35, %c0_36], %50 {strides = array<i32>} : memref<4x8x1xf32, #tpu.memory_space<vmem>>, vector<1x8x1xf32>,
      %c0_37 = arith.constant 0 : index
      %c1 = arith.constant 1 : index
      %c0_38 = arith.constant 0 : index
      %c0_39 = arith.constant 0 : index
      %51 = vector.load %arg3[%c0_37, %c1, %c0_38, %c0_39] : memref<1x4x8x8xbf16, #tpu.memory_space<vmem>>, vector<1x1x8x8xbf16>
      %52 = vector.shape_cast %51 : vector<1x1x8x8xbf16> to vector<8x8xbf16>
      %c0_40 = arith.constant 0 : index
      %c1_41 = arith.constant 1 : index
      %c0_42 = arith.constant 0 : index
      %c0_43 = arith.constant 0 : index
      %53 = vector.load %arg4[%c0_40, %c1_41, %c0_42, %c0_43] : memref<1x4x8x8xbf16, #tpu.memory_space<vmem>>, vector<1x1x8x8xbf16>
      %54 = vector.shape_cast %53 : vector<1x1x8x8xbf16> to vector<8x8xbf16>
      %c0_44 = arith.constant 0 : index
      %c1_45 = arith.constant 1 : index
      %c0_46 = arith.constant 0 : index
      %c0_47 = arith.constant 0 : index
      %55 = vector.load %arg5[%c0_44, %c1_45, %c0_46, %c0_47] : memref<1x4x8x8xbf16, #tpu.memory_space<vmem>>, vector<1x1x8x8xbf16>
      %56 = vector.shape_cast %55 : vector<1x1x8x8xbf16> to vector<8x8xbf16>
      "tpu.trace_start"() <{level = 10 : i32, message = "qd,kd->qk"}> : () -> ()
      %cst_48 = arith.constant dense<0.000000e+00> : vector<8x8xf32>
      %57 = tpu.matmul %52, %54, %cst_48 {dimension_numbers = #tpu.dot_dimension_numbers<[1], [1], [0], [0], [0, 0, 1, 0], [], []>} : vector<8x8xbf16>, vector<8x8xbf16>, vector<8x8xf32> -> vector<8x8xf32>
      "tpu.trace_stop"() : () -> ()
      %c1_49 = arith.constant 1 : index
      %c0_50 = arith.constant 0 : index
      %c0_51 = arith.constant 0 : index
      %58 = vector.load %arg7[%c1_49, %c0_50, %c0_51] : memref<4x8x1xf32, #tpu.memory_space<vmem>>, vector<1x8x1xf32>
      %59 = vector.shape_cast %58 : vector<1x8x1xf32> to vector<8x1xf32>
      %cst_52 = arith.constant dense<0xFF800000> : vector<8xf32>
      %60 = vector.multi_reduction <maximumf>, %57, %cst_52 [1] : vector<8x8xf32> to vector<8xf32>
      %61 = vector.shape_cast %60 : vector<8xf32> to vector<8x1xf32>
      %62 = arith.maximumf %59, %61 : vector<8x1xf32>
      %63 = arith.subf %59, %62 : vector<8x1xf32>
      %64 = math.exp %63 : vector<8x1xf32>
      %65 = vector.broadcast %62 : vector<8x1xf32> to vector<8x8xf32>
      %66 = arith.subf %57, %65 : vector<8x8xf32>
      %67 = math.exp %66 : vector<8x8xf32>
      %c1_53 = arith.constant 1 : index
      %c0_54 = arith.constant 0 : index
      %c0_55 = arith.constant 0 : index
      %68 = vector.load %arg8[%c1_53, %c0_54, %c0_55] : memref<4x8x1xf32, #tpu.memory_space<vmem>>, vector<1x8x1xf32>
      %69 = vector.shape_cast %68 : vector<1x8x1xf32> to vector<8x1xf32>
      %70 = arith.mulf %64, %69 : vector<8x1xf32>
      %cst_56 = arith.constant dense<0.000000e+00> : vector<8xf32>
      %71 = vector.multi_reduction <add>, %67, %cst_56 [1] : vector<8x8xf32> to vector<8xf32>
      %72 = vector.shape_cast %71 : vector<8xf32> to vector<8x1xf32>
      %73 = arith.addf %70, %72 : vector<8x1xf32>
      %c1_57 = arith.constant 1 : index
      %c0_58 = arith.constant 0 : index
      %c0_59 = arith.constant 0 : index
      %74 = vector.load %arg8[%c1_57, %c0_58, %c0_59] : memref<4x8x1xf32, #tpu.memory_space<vmem>>, vector<1x8x1xf32>
      %75 = vector.shape_cast %74 : vector<1x8x1xf32> to vector<8x1xf32>
      %76 = vector.shape_cast %73 : vector<8x1xf32> to vector<1x8x1xf32>
      tpu.vector_store %arg8[%c1_57, %c0_58, %c0_59], %76 {strides = array<i32>} : memref<4x8x1xf32, #tpu.memory_space<vmem>>, vector<1x8x1xf32>,
      %c1_60 = arith.constant 1 : index
      %c0_61 = arith.constant 0 : index
      %c0_62 = arith.constant 0 : index
      %77 = vector.load %arg9[%c1_60, %c0_61, %c0_62] : memref<4x8x8xf32, #tpu.memory_space<vmem>>, vector<1x8x8xf32>
      %78 = vector.shape_cast %77 : vector<1x8x8xf32> to vector<8x8xf32>
      %79 = vector.broadcast %64 : vector<8x1xf32> to vector<8x8xf32>
      %80 = arith.mulf %79, %78 : vector<8x8xf32>
      %81 = arith.truncf %67 : vector<8x8xf32> to vector<8x8xbf16>
      %cst_63 = arith.constant dense<0.000000e+00> : vector<8x8xf32>
      %82 = tpu.matmul %81, %56, %cst_63 {dimension_numbers = #tpu.dot_dimension_numbers<[1], [0], [0], [1], [0, 0, 1, 1], [], []>} : vector<8x8xbf16>, vector<8x8xbf16>, vector<8x8xf32> -> vector<8x8xf32>
      %83 = arith.addf %80, %82 : vector<8x8xf32>
      %c1_64 = arith.constant 1 : index
      %c0_65 = arith.constant 0 : index
      %c0_66 = arith.constant 0 : index
      %84 = vector.load %arg9[%c1_64, %c0_65, %c0_66] : memref<4x8x8xf32, #tpu.memory_space<vmem>>, vector<1x8x8xf32>
      %85 = vector.shape_cast %84 : vector<1x8x8xf32> to vector<8x8xf32>
      %86 = vector.shape_cast %83 : vector<8x8xf32> to vector<1x8x8xf32>
      tpu.vector_store %arg9[%c1_64, %c0_65, %c0_66], %86 {strides = array<i32>} : memref<4x8x8xf32, #tpu.memory_space<vmem>>, vector<1x8x8xf32>,
      %c1_67 = arith.constant 1 : index
      %c0_68 = arith.constant 0 : index
      %c0_69 = arith.constant 0 : index
      %87 = vector.load %arg7[%c1_67, %c0_68, %c0_69] : memref<4x8x1xf32, #tpu.memory_space<vmem>>, vector<1x8x1xf32>
      %88 = vector.shape_cast %87 : vector<1x8x1xf32> to vector<8x1xf32>
      %89 = vector.shape_cast %62 : vector<8x1xf32> to vector<1x8x1xf32>
      tpu.vector_store %arg7[%c1_67, %c0_68, %c0_69], %89 {strides = array<i32>} : memref<4x8x1xf32, #tpu.memory_space<vmem>>, vector<1x8x1xf32>,
      %c0_70 = arith.constant 0 : index
      %c2 = arith.constant 2 : index
      %c0_71 = arith.constant 0 : index
      %c0_72 = arith.constant 0 : index
      %90 = vector.load %arg3[%c0_70, %c2, %c0_71, %c0_72] : memref<1x4x8x8xbf16, #tpu.memory_space<vmem>>, vector<1x1x8x8xbf16>
      %91 = vector.shape_cast %90 : vector<1x1x8x8xbf16> to vector<8x8xbf16>
      %c0_73 = arith.constant 0 : index
      %c2_74 = arith.constant 2 : index
      %c0_75 = arith.constant 0 : index
      %c0_76 = arith.constant 0 : index
      %92 = vector.load %arg4[%c0_73, %c2_74, %c0_75, %c0_76] : memref<1x4x8x8xbf16, #tpu.memory_space<vmem>>, vector<1x1x8x8xbf16>
      %93 = vector.shape_cast %92 : vector<1x1x8x8xbf16> to vector<8x8xbf16>
      %c0_77 = arith.constant 0 : index
      %c2_78 = arith.constant 2 : index
      %c0_79 = arith.constant 0 : index
      %c0_80 = arith.constant 0 : index
      %94 = vector.load %arg5[%c0_77, %c2_78, %c0_79, %c0_80] : memref<1x4x8x8xbf16, #tpu.memory_space<vmem>>, vector<1x1x8x8xbf16>
      %95 = vector.shape_cast %94 : vector<1x1x8x8xbf16> to vector<8x8xbf16>
      "tpu.trace_start"() <{level = 10 : i32, message = "qd,kd->qk"}> : () -> ()
      %cst_81 = arith.constant dense<0.000000e+00> : vector<8x8xf32>
      %96 = tpu.matmul %91, %93, %cst_81 {dimension_numbers = #tpu.dot_dimension_numbers<[1], [1], [0], [0], [0, 0, 1, 0], [], []>} : vector<8x8xbf16>, vector<8x8xbf16>, vector<8x8xf32> -> vector<8x8xf32>
      "tpu.trace_stop"() : () -> ()
      %c2_82 = arith.constant 2 : index
      %c0_83 = arith.constant 0 : index
      %c0_84 = arith.constant 0 : index
      %97 = vector.load %arg7[%c2_82, %c0_83, %c0_84] : memref<4x8x1xf32, #tpu.memory_space<vmem>>, vector<1x8x1xf32>
      %98 = vector.shape_cast %97 : vector<1x8x1xf32> to vector<8x1xf32>
      %cst_85 = arith.constant dense<0xFF800000> : vector<8xf32>
      %99 = vector.multi_reduction <maximumf>, %96, %cst_85 [1] : vector<8x8xf32> to vector<8xf32>
      %100 = vector.shape_cast %99 : vector<8xf32> to vector<8x1xf32>
      %101 = arith.maximumf %98, %100 : vector<8x1xf32>
      %102 = arith.subf %98, %101 : vector<8x1xf32>
      %103 = math.exp %102 : vector<8x1xf32>
      %104 = vector.broadcast %101 : vector<8x1xf32> to vector<8x8xf32>
      %105 = arith.subf %96, %104 : vector<8x8xf32>
      %106 = math.exp %105 : vector<8x8xf32>
      %c2_86 = arith.constant 2 : index
      %c0_87 = arith.constant 0 : index
      %c0_88 = arith.constant 0 : index
      %107 = vector.load %arg8[%c2_86, %c0_87, %c0_88] : memref<4x8x1xf32, #tpu.memory_space<vmem>>, vector<1x8x1xf32>
      %108 = vector.shape_cast %107 : vector<1x8x1xf32> to vector<8x1xf32>
      %109 = arith.mulf %103, %108 : vector<8x1xf32>
      %cst_89 = arith.constant dense<0.000000e+00> : vector<8xf32>
      %110 = vector.multi_reduction <add>, %106, %cst_89 [1] : vector<8x8xf32> to vector<8xf32>
      %111 = vector.shape_cast %110 : vector<8xf32> to vector<8x1xf32>
      %112 = arith.addf %109, %111 : vector<8x1xf32>
      %c2_90 = arith.constant 2 : index
      %c0_91 = arith.constant 0 : index
      %c0_92 = arith.constant 0 : index
      %113 = vector.load %arg8[%c2_90, %c0_91, %c0_92] : memref<4x8x1xf32, #tpu.memory_space<vmem>>, vector<1x8x1xf32>
      %114 = vector.shape_cast %113 : vector<1x8x1xf32> to vector<8x1xf32>
      %115 = vector.shape_cast %112 : vector<8x1xf32> to vector<1x8x1xf32>
      tpu.vector_store %arg8[%c2_90, %c0_91, %c0_92], %115 {strides = array<i32>} : memref<4x8x1xf32, #tpu.memory_space<vmem>>, vector<1x8x1xf32>,
      %c2_93 = arith.constant 2 : index
      %c0_94 = arith.constant 0 : index
      %c0_95 = arith.constant 0 : index
      %116 = vector.load %arg9[%c2_93, %c0_94, %c0_95] : memref<4x8x8xf32, #tpu.memory_space<vmem>>, vector<1x8x8xf32>
      %117 = vector.shape_cast %116 : vector<1x8x8xf32> to vector<8x8xf32>
      %118 = vector.broadcast %103 : vector<8x1xf32> to vector<8x8xf32>
      %119 = arith.mulf %118, %117 : vector<8x8xf32>
      %120 = arith.truncf %106 : vector<8x8xf32> to vector<8x8xbf16>
      %cst_96 = arith.constant dense<0.000000e+00> : vector<8x8xf32>
      %121 = tpu.matmul %120, %95, %cst_96 {dimension_numbers = #tpu.dot_dimension_numbers<[1], [0], [0], [1], [0, 0, 1, 1], [], []>} : vector<8x8xbf16>, vector<8x8xbf16>, vector<8x8xf32> -> vector<8x8xf32>
      %122 = arith.addf %119, %121 : vector<8x8xf32>
      %c2_97 = arith.constant 2 : index
      %c0_98 = arith.constant 0 : index
      %c0_99 = arith.constant 0 : index
      %123 = vector.load %arg9[%c2_97, %c0_98, %c0_99] : memref<4x8x8xf32, #tpu.memory_space<vmem>>, vector<1x8x8xf32>
      %124 = vector.shape_cast %123 : vector<1x8x8xf32> to vector<8x8xf32>
      %125 = vector.shape_cast %122 : vector<8x8xf32> to vector<1x8x8xf32>
      tpu.vector_store %arg9[%c2_97, %c0_98, %c0_99], %125 {strides = array<i32>} : memref<4x8x8xf32, #tpu.memory_space<vmem>>, vector<1x8x8xf32>,
      %c2_100 = arith.constant 2 : index
      %c0_101 = arith.constant 0 : index
      %c0_102 = arith.constant 0 : index
      %126 = vector.load %arg7[%c2_100, %c0_101, %c0_102] : memref<4x8x1xf32, #tpu.memory_space<vmem>>, vector<1x8x1xf32>
      %127 = vector.shape_cast %126 : vector<1x8x1xf32> to vector<8x1xf32>
      %128 = vector.shape_cast %101 : vector<8x1xf32> to vector<1x8x1xf32>
      tpu.vector_store %arg7[%c2_100, %c0_101, %c0_102], %128 {strides = array<i32>} : memref<4x8x1xf32, #tpu.memory_space<vmem>>, vector<1x8x1xf32>,
      %c0_103 = arith.constant 0 : index
      %c3 = arith.constant 3 : index
      %c0_104 = arith.constant 0 : index
      %c0_105 = arith.constant 0 : index
      %129 = vector.load %arg3[%c0_103, %c3, %c0_104, %c0_105] : memref<1x4x8x8xbf16, #tpu.memory_space<vmem>>, vector<1x1x8x8xbf16>
      %130 = vector.shape_cast %129 : vector<1x1x8x8xbf16> to vector<8x8xbf16>
      %c0_106 = arith.constant 0 : index
      %c3_107 = arith.constant 3 : index
      %c0_108 = arith.constant 0 : index
      %c0_109 = arith.constant 0 : index
      %131 = vector.load %arg4[%c0_106, %c3_107, %c0_108, %c0_109] : memref<1x4x8x8xbf16, #tpu.memory_space<vmem>>, vector<1x1x8x8xbf16>
      %132 = vector.shape_cast %131 : vector<1x1x8x8xbf16> to vector<8x8xbf16>
      %c0_110 = arith.constant 0 : index
      %c3_111 = arith.constant 3 : index
      %c0_112 = arith.constant 0 : index
      %c0_113 = arith.constant 0 : index
      %133 = vector.load %arg5[%c0_110, %c3_111, %c0_112, %c0_113] : memref<1x4x8x8xbf16, #tpu.memory_space<vmem>>, vector<1x1x8x8xbf16>
      %134 = vector.shape_cast %133 : vector<1x1x8x8xbf16> to vector<8x8xbf16>
      "tpu.trace_start"() <{level = 10 : i32, message = "qd,kd->qk"}> : () -> ()
      %cst_114 = arith.constant dense<0.000000e+00> : vector<8x8xf32>
      %135 = tpu.matmul %130, %132, %cst_114 {dimension_numbers = #tpu.dot_dimension_numbers<[1], [1], [0], [0], [0, 0, 1, 0], [], []>} : vector<8x8xbf16>, vector<8x8xbf16>, vector<8x8xf32> -> vector<8x8xf32>
      "tpu.trace_stop"() : () -> ()
      %c3_115 = arith.constant 3 : index
      %c0_116 = arith.constant 0 : index
      %c0_117 = arith.constant 0 : index
      %136 = vector.load %arg7[%c3_115, %c0_116, %c0_117] : memref<4x8x1xf32, #tpu.memory_space<vmem>>, vector<1x8x1xf32>
      %137 = vector.shape_cast %136 : vector<1x8x1xf32> to vector<8x1xf32>
      %cst_118 = arith.constant dense<0xFF800000> : vector<8xf32>
      %138 = vector.multi_reduction <maximumf>, %135, %cst_118 [1] : vector<8x8xf32> to vector<8xf32>
      %139 = vector.shape_cast %138 : vector<8xf32> to vector<8x1xf32>
      %140 = arith.maximumf %137, %139 : vector<8x1xf32>
      %141 = arith.subf %137, %140 : vector<8x1xf32>
      %142 = math.exp %141 : vector<8x1xf32>
      %143 = vector.broadcast %140 : vector<8x1xf32> to vector<8x8xf32>
      %144 = arith.subf %135, %143 : vector<8x8xf32>
      %145 = math.exp %144 : vector<8x8xf32>
      %c3_119 = arith.constant 3 : index
      %c0_120 = arith.constant 0 : index
      %c0_121 = arith.constant 0 : index
      %146 = vector.load %arg8[%c3_119, %c0_120, %c0_121] : memref<4x8x1xf32, #tpu.memory_space<vmem>>, vector<1x8x1xf32>
      %147 = vector.shape_cast %146 : vector<1x8x1xf32> to vector<8x1xf32>
      %148 = arith.mulf %142, %147 : vector<8x1xf32>
      %cst_122 = arith.constant dense<0.000000e+00> : vector<8xf32>
      %149 = vector.multi_reduction <add>, %145, %cst_122 [1] : vector<8x8xf32> to vector<8xf32>
      %150 = vector.shape_cast %149 : vector<8xf32> to vector<8x1xf32>
      %151 = arith.addf %148, %150 : vector<8x1xf32>
      %c3_123 = arith.constant 3 : index
      %c0_124 = arith.constant 0 : index
      %c0_125 = arith.constant 0 : index
      %152 = vector.load %arg8[%c3_123, %c0_124, %c0_125] : memref<4x8x1xf32, #tpu.memory_space<vmem>>, vector<1x8x1xf32>
      %153 = vector.shape_cast %152 : vector<1x8x1xf32> to vector<8x1xf32>
      %154 = vector.shape_cast %151 : vector<8x1xf32> to vector<1x8x1xf32>
      tpu.vector_store %arg8[%c3_123, %c0_124, %c0_125], %154 {strides = array<i32>} : memref<4x8x1xf32, #tpu.memory_space<vmem>>, vector<1x8x1xf32>,
      %c3_126 = arith.constant 3 : index
      %c0_127 = arith.constant 0 : index
      %c0_128 = arith.constant 0 : index
      %155 = vector.load %arg9[%c3_126, %c0_127, %c0_128] : memref<4x8x8xf32, #tpu.memory_space<vmem>>, vector<1x8x8xf32>
      %156 = vector.shape_cast %155 : vector<1x8x8xf32> to vector<8x8xf32>
      %157 = vector.broadcast %142 : vector<8x1xf32> to vector<8x8xf32>
      %158 = arith.mulf %157, %156 : vector<8x8xf32>
      %159 = arith.truncf %145 : vector<8x8xf32> to vector<8x8xbf16>
      %cst_129 = arith.constant dense<0.000000e+00> : vector<8x8xf32>
      %160 = tpu.matmul %159, %134, %cst_129 {dimension_numbers = #tpu.dot_dimension_numbers<[1], [0], [0], [1], [0, 0, 1, 1], [], []>} : vector<8x8xbf16>, vector<8x8xbf16>, vector<8x8xf32> -> vector<8x8xf32>
      %161 = arith.addf %158, %160 : vector<8x8xf32>
      %c3_130 = arith.constant 3 : index
      %c0_131 = arith.constant 0 : index
      %c0_132 = arith.constant 0 : index
      %162 = vector.load %arg9[%c3_130, %c0_131, %c0_132] : memref<4x8x8xf32, #tpu.memory_space<vmem>>, vector<1x8x8xf32>
      %163 = vector.shape_cast %162 : vector<1x8x8xf32> to vector<8x8xf32>
      %164 = vector.shape_cast %161 : vector<8x8xf32> to vector<1x8x8xf32>
      tpu.vector_store %arg9[%c3_130, %c0_131, %c0_132], %164 {strides = array<i32>} : memref<4x8x8xf32, #tpu.memory_space<vmem>>, vector<1x8x8xf32>,
      %c3_133 = arith.constant 3 : index
      %c0_134 = arith.constant 0 : index
      %c0_135 = arith.constant 0 : index
      %165 = vector.load %arg7[%c3_133, %c0_134, %c0_135] : memref<4x8x1xf32, #tpu.memory_space<vmem>>, vector<1x8x1xf32>
      %166 = vector.shape_cast %165 : vector<1x8x1xf32> to vector<8x1xf32>
      %167 = vector.shape_cast %140 : vector<8x1xf32> to vector<1x8x1xf32>
      tpu.vector_store %arg7[%c3_133, %c0_134, %c0_135], %167 {strides = array<i32>} : memref<4x8x1xf32, #tpu.memory_space<vmem>>, vector<1x8x1xf32>,
    } else {
    }
    %6 = arith.cmpi eq, %arg2, %arg1 : i32
    %7 = arith.extui %6 : i1 to i32
    %c0_i32_2 = arith.constant 0 : i32
    %8 = arith.cmpi ne, %7, %c0_i32_2 : i32
    scf.if %8 {
      %12 = tpu.iota {dimensions = array<i32: 0>} : vector<8x8xi32>
      %13 = tpu.iota {dimensions = array<i32: 1>} : vector<8x8xi32>
      %14 = arith.cmpi sge, %12, %13 : vector<8x8xi32>
      %c0 = arith.constant 0 : index
      %c0_5 = arith.constant 0 : index
      %c0_6 = arith.constant 0 : index
      %c0_7 = arith.constant 0 : index
      %15 = vector.load %arg3[%c0, %c0_5, %c0_6, %c0_7] : memref<1x4x8x8xbf16, #tpu.memory_space<vmem>>, vector<1x1x8x8xbf16>
      %16 = vector.shape_cast %15 : vector<1x1x8x8xbf16> to vector<8x8xbf16>
      %c0_8 = arith.constant 0 : index
      %c0_9 = arith.constant 0 : index
      %c0_10 = arith.constant 0 : index
      %c0_11 = arith.constant 0 : index
      %17 = vector.load %arg4[%c0_8, %c0_9, %c0_10, %c0_11] : memref<1x4x8x8xbf16, #tpu.memory_space<vmem>>, vector<1x1x8x8xbf16>
      %18 = vector.shape_cast %17 : vector<1x1x8x8xbf16> to vector<8x8xbf16>
      %c0_12 = arith.constant 0 : index
      %c0_13 = arith.constant 0 : index
      %c0_14 = arith.constant 0 : index
      %c0_15 = arith.constant 0 : index
      %19 = vector.load %arg5[%c0_12, %c0_13, %c0_14, %c0_15] : memref<1x4x8x8xbf16, #tpu.memory_space<vmem>>, vector<1x1x8x8xbf16>
      %20 = vector.shape_cast %19 : vector<1x1x8x8xbf16> to vector<8x8xbf16>
      "tpu.trace_start"() <{level = 10 : i32, message = "qd,kd->qk"}> : () -> ()
      %cst = arith.constant dense<0.000000e+00> : vector<8x8xf32>
      %21 = tpu.matmul %16, %18, %cst {dimension_numbers = #tpu.dot_dimension_numbers<[1], [1], [0], [0], [0, 0, 1, 0], [], []>} : vector<8x8xbf16>, vector<8x8xbf16>, vector<8x8xf32> -> vector<8x8xf32>
      %cst_16 = arith.constant -1.000000e+30 : f32
      "tpu.trace_stop"() : () -> ()
      %22 = vector.broadcast %cst_16 : f32 to vector<8x8xf32>
      %23 = arith.select %14, %21, %22 : vector<8x8xi1>, vector<8x8xf32>
      %c0_17 = arith.constant 0 : index
      %c0_18 = arith.constant 0 : index
      %c0_19 = arith.constant 0 : index
      %24 = vector.load %arg7[%c0_17, %c0_18, %c0_19] : memref<4x8x1xf32, #tpu.memory_space<vmem>>, vector<1x8x1xf32>
      %25 = vector.shape_cast %24 : vector<1x8x1xf32> to vector<8x1xf32>
      %cst_20 = arith.constant dense<0xFF800000> : vector<8xf32>
      %26 = vector.multi_reduction <maximumf>, %23, %cst_20 [1] : vector<8x8xf32> to vector<8xf32>
      %27 = vector.shape_cast %26 : vector<8xf32> to vector<8x1xf32>
      %28 = arith.maximumf %25, %27 : vector<8x1xf32>
      %29 = arith.subf %25, %28 : vector<8x1xf32>
      %30 = math.exp %29 : vector<8x1xf32>
      %31 = vector.broadcast %28 : vector<8x1xf32> to vector<8x8xf32>
      %32 = arith.subf %23, %31 : vector<8x8xf32>
      %33 = math.exp %32 : vector<8x8xf32>
      %c0_21 = arith.constant 0 : index
      %c0_22 = arith.constant 0 : index
      %c0_23 = arith.constant 0 : index
      %34 = vector.load %arg8[%c0_21, %c0_22, %c0_23] : memref<4x8x1xf32, #tpu.memory_space<vmem>>, vector<1x8x1xf32>
      %35 = vector.shape_cast %34 : vector<1x8x1xf32> to vector<8x1xf32>
      %36 = arith.mulf %30, %35 : vector<8x1xf32>
      %cst_24 = arith.constant dense<0.000000e+00> : vector<8xf32>
      %37 = vector.multi_reduction <add>, %33, %cst_24 [1] : vector<8x8xf32> to vector<8xf32>
      %38 = vector.shape_cast %37 : vector<8xf32> to vector<8x1xf32>
      %39 = arith.addf %36, %38 : vector<8x1xf32>
      %c0_25 = arith.constant 0 : index
      %c0_26 = arith.constant 0 : index
      %c0_27 = arith.constant 0 : index
      %40 = vector.load %arg8[%c0_25, %c0_26, %c0_27] : memref<4x8x1xf32, #tpu.memory_space<vmem>>, vector<1x8x1xf32>
      %41 = vector.shape_cast %40 : vector<1x8x1xf32> to vector<8x1xf32>
      %42 = vector.shape_cast %39 : vector<8x1xf32> to vector<1x8x1xf32>
      tpu.vector_store %arg8[%c0_25, %c0_26, %c0_27], %42 {strides = array<i32>} : memref<4x8x1xf32, #tpu.memory_space<vmem>>, vector<1x8x1xf32>,
      %c0_28 = arith.constant 0 : index
      %c0_29 = arith.constant 0 : index
      %c0_30 = arith.constant 0 : index
      %43 = vector.load %arg9[%c0_28, %c0_29, %c0_30] : memref<4x8x8xf32, #tpu.memory_space<vmem>>, vector<1x8x8xf32>
      %44 = vector.shape_cast %43 : vector<1x8x8xf32> to vector<8x8xf32>
      %45 = vector.broadcast %30 : vector<8x1xf32> to vector<8x8xf32>
      %46 = arith.mulf %45, %44 : vector<8x8xf32>
      %47 = arith.truncf %33 : vector<8x8xf32> to vector<8x8xbf16>
      %cst_31 = arith.constant dense<0.000000e+00> : vector<8x8xf32>
      %48 = tpu.matmul %47, %20, %cst_31 {dimension_numbers = #tpu.dot_dimension_numbers<[1], [0], [0], [1], [0, 0, 1, 1], [], []>} : vector<8x8xbf16>, vector<8x8xbf16>, vector<8x8xf32> -> vector<8x8xf32>
      %49 = arith.addf %46, %48 : vector<8x8xf32>
      %c0_32 = arith.constant 0 : index
      %c0_33 = arith.constant 0 : index
      %c0_34 = arith.constant 0 : index
      %50 = vector.load %arg9[%c0_32, %c0_33, %c0_34] : memref<4x8x8xf32, #tpu.memory_space<vmem>>, vector<1x8x8xf32>
      %51 = vector.shape_cast %50 : vector<1x8x8xf32> to vector<8x8xf32>
      %52 = vector.shape_cast %49 : vector<8x8xf32> to vector<1x8x8xf32>
      tpu.vector_store %arg9[%c0_32, %c0_33, %c0_34], %52 {strides = array<i32>} : memref<4x8x8xf32, #tpu.memory_space<vmem>>, vector<1x8x8xf32>,
      %c0_35 = arith.constant 0 : index
      %c0_36 = arith.constant 0 : index
      %c0_37 = arith.constant 0 : index
      %53 = vector.load %arg7[%c0_35, %c0_36, %c0_37] : memref<4x8x1xf32, #tpu.memory_space<vmem>>, vector<1x8x1xf32>
      %54 = vector.shape_cast %53 : vector<1x8x1xf32> to vector<8x1xf32>
      %55 = vector.shape_cast %28 : vector<8x1xf32> to vector<1x8x1xf32>
      tpu.vector_store %arg7[%c0_35, %c0_36, %c0_37], %55 {strides = array<i32>} : memref<4x8x1xf32, #tpu.memory_space<vmem>>, vector<1x8x1xf32>,
      %c0_38 = arith.constant 0 : index
      %c1 = arith.constant 1 : index
      %c0_39 = arith.constant 0 : index
      %c0_40 = arith.constant 0 : index
      %56 = vector.load %arg3[%c0_38, %c1, %c0_39, %c0_40] : memref<1x4x8x8xbf16, #tpu.memory_space<vmem>>, vector<1x1x8x8xbf16>
      %57 = vector.shape_cast %56 : vector<1x1x8x8xbf16> to vector<8x8xbf16>
      %c0_41 = arith.constant 0 : index
      %c1_42 = arith.constant 1 : index
      %c0_43 = arith.constant 0 : index
      %c0_44 = arith.constant 0 : index
      %58 = vector.load %arg4[%c0_41, %c1_42, %c0_43, %c0_44] : memref<1x4x8x8xbf16, #tpu.memory_space<vmem>>, vector<1x1x8x8xbf16>
      %59 = vector.shape_cast %58 : vector<1x1x8x8xbf16> to vector<8x8xbf16>
      %c0_45 = arith.constant 0 : index
      %c1_46 = arith.constant 1 : index
      %c0_47 = arith.constant 0 : index
      %c0_48 = arith.constant 0 : index
      %60 = vector.load %arg5[%c0_45, %c1_46, %c0_47, %c0_48] : memref<1x4x8x8xbf16, #tpu.memory_space<vmem>>, vector<1x1x8x8xbf16>
      %61 = vector.shape_cast %60 : vector<1x1x8x8xbf16> to vector<8x8xbf16>
      "tpu.trace_start"() <{level = 10 : i32, message = "qd,kd->qk"}> : () -> ()
      %cst_49 = arith.constant dense<0.000000e+00> : vector<8x8xf32>
      %62 = tpu.matmul %57, %59, %cst_49 {dimension_numbers = #tpu.dot_dimension_numbers<[1], [1], [0], [0], [0, 0, 1, 0], [], []>} : vector<8x8xbf16>, vector<8x8xbf16>, vector<8x8xf32> -> vector<8x8xf32>
      %cst_50 = arith.constant -1.000000e+30 : f32
      "tpu.trace_stop"() : () -> ()
      %63 = vector.broadcast %cst_50 : f32 to vector<8x8xf32>
      %64 = arith.select %14, %62, %63 : vector<8x8xi1>, vector<8x8xf32>
      %c1_51 = arith.constant 1 : index
      %c0_52 = arith.constant 0 : index
      %c0_53 = arith.constant 0 : index
      %65 = vector.load %arg7[%c1_51, %c0_52, %c0_53] : memref<4x8x1xf32, #tpu.memory_space<vmem>>, vector<1x8x1xf32>
      %66 = vector.shape_cast %65 : vector<1x8x1xf32> to vector<8x1xf32>
      %cst_54 = arith.constant dense<0xFF800000> : vector<8xf32>
      %67 = vector.multi_reduction <maximumf>, %64, %cst_54 [1] : vector<8x8xf32> to vector<8xf32>
      %68 = vector.shape_cast %67 : vector<8xf32> to vector<8x1xf32>
      %69 = arith.maximumf %66, %68 : vector<8x1xf32>
      %70 = arith.subf %66, %69 : vector<8x1xf32>
      %71 = math.exp %70 : vector<8x1xf32>
      %72 = vector.broadcast %69 : vector<8x1xf32> to vector<8x8xf32>
      %73 = arith.subf %64, %72 : vector<8x8xf32>
      %74 = math.exp %73 : vector<8x8xf32>
      %c1_55 = arith.constant 1 : index
      %c0_56 = arith.constant 0 : index
      %c0_57 = arith.constant 0 : index
      %75 = vector.load %arg8[%c1_55, %c0_56, %c0_57] : memref<4x8x1xf32, #tpu.memory_space<vmem>>, vector<1x8x1xf32>
      %76 = vector.shape_cast %75 : vector<1x8x1xf32> to vector<8x1xf32>
      %77 = arith.mulf %71, %76 : vector<8x1xf32>
      %cst_58 = arith.constant dense<0.000000e+00> : vector<8xf32>
      %78 = vector.multi_reduction <add>, %74, %cst_58 [1] : vector<8x8xf32> to vector<8xf32>
      %79 = vector.shape_cast %78 : vector<8xf32> to vector<8x1xf32>
      %80 = arith.addf %77, %79 : vector<8x1xf32>
      %c1_59 = arith.constant 1 : index
      %c0_60 = arith.constant 0 : index
      %c0_61 = arith.constant 0 : index
      %81 = vector.load %arg8[%c1_59, %c0_60, %c0_61] : memref<4x8x1xf32, #tpu.memory_space<vmem>>, vector<1x8x1xf32>
      %82 = vector.shape_cast %81 : vector<1x8x1xf32> to vector<8x1xf32>
      %83 = vector.shape_cast %80 : vector<8x1xf32> to vector<1x8x1xf32>
      tpu.vector_store %arg8[%c1_59, %c0_60, %c0_61], %83 {strides = array<i32>} : memref<4x8x1xf32, #tpu.memory_space<vmem>>, vector<1x8x1xf32>,
      %c1_62 = arith.constant 1 : index
      %c0_63 = arith.constant 0 : index
      %c0_64 = arith.constant 0 : index
      %84 = vector.load %arg9[%c1_62, %c0_63, %c0_64] : memref<4x8x8xf32, #tpu.memory_space<vmem>>, vector<1x8x8xf32>
      %85 = vector.shape_cast %84 : vector<1x8x8xf32> to vector<8x8xf32>
      %86 = vector.broadcast %71 : vector<8x1xf32> to vector<8x8xf32>
      %87 = arith.mulf %86, %85 : vector<8x8xf32>
      %88 = arith.truncf %74 : vector<8x8xf32> to vector<8x8xbf16>
      %cst_65 = arith.constant dense<0.000000e+00> : vector<8x8xf32>
      %89 = tpu.matmul %88, %61, %cst_65 {dimension_numbers = #tpu.dot_dimension_numbers<[1], [0], [0], [1], [0, 0, 1, 1], [], []>} : vector<8x8xbf16>, vector<8x8xbf16>, vector<8x8xf32> -> vector<8x8xf32>
      %90 = arith.addf %87, %89 : vector<8x8xf32>
      %c1_66 = arith.constant 1 : index
      %c0_67 = arith.constant 0 : index
      %c0_68 = arith.constant 0 : index
      %91 = vector.load %arg9[%c1_66, %c0_67, %c0_68] : memref<4x8x8xf32, #tpu.memory_space<vmem>>, vector<1x8x8xf32>
      %92 = vector.shape_cast %91 : vector<1x8x8xf32> to vector<8x8xf32>
      %93 = vector.shape_cast %90 : vector<8x8xf32> to vector<1x8x8xf32>
      tpu.vector_store %arg9[%c1_66, %c0_67, %c0_68], %93 {strides = array<i32>} : memref<4x8x8xf32, #tpu.memory_space<vmem>>, vector<1x8x8xf32>,
      %c1_69 = arith.constant 1 : index
      %c0_70 = arith.constant 0 : index
      %c0_71 = arith.constant 0 : index
      %94 = vector.load %arg7[%c1_69, %c0_70, %c0_71] : memref<4x8x1xf32, #tpu.memory_space<vmem>>, vector<1x8x1xf32>
      %95 = vector.shape_cast %94 : vector<1x8x1xf32> to vector<8x1xf32>
      %96 = vector.shape_cast %69 : vector<8x1xf32> to vector<1x8x1xf32>
      tpu.vector_store %arg7[%c1_69, %c0_70, %c0_71], %96 {strides = array<i32>} : memref<4x8x1xf32, #tpu.memory_space<vmem>>, vector<1x8x1xf32>,
      %c0_72 = arith.constant 0 : index
      %c2 = arith.constant 2 : index
      %c0_73 = arith.constant 0 : index
      %c0_74 = arith.constant 0 : index
      %97 = vector.load %arg3[%c0_72, %c2, %c0_73, %c0_74] : memref<1x4x8x8xbf16, #tpu.memory_space<vmem>>, vector<1x1x8x8xbf16>
      %98 = vector.shape_cast %97 : vector<1x1x8x8xbf16> to vector<8x8xbf16>
      %c0_75 = arith.constant 0 : index
      %c2_76 = arith.constant 2 : index
      %c0_77 = arith.constant 0 : index
      %c0_78 = arith.constant 0 : index
      %99 = vector.load %arg4[%c0_75, %c2_76, %c0_77, %c0_78] : memref<1x4x8x8xbf16, #tpu.memory_space<vmem>>, vector<1x1x8x8xbf16>
      %100 = vector.shape_cast %99 : vector<1x1x8x8xbf16> to vector<8x8xbf16>
      %c0_79 = arith.constant 0 : index
      %c2_80 = arith.constant 2 : index
      %c0_81 = arith.constant 0 : index
      %c0_82 = arith.constant 0 : index
      %101 = vector.load %arg5[%c0_79, %c2_80, %c0_81, %c0_82] : memref<1x4x8x8xbf16, #tpu.memory_space<vmem>>, vector<1x1x8x8xbf16>
      %102 = vector.shape_cast %101 : vector<1x1x8x8xbf16> to vector<8x8xbf16>
      "tpu.trace_start"() <{level = 10 : i32, message = "qd,kd->qk"}> : () -> ()
      %cst_83 = arith.constant dense<0.000000e+00> : vector<8x8xf32>
      %103 = tpu.matmul %98, %100, %cst_83 {dimension_numbers = #tpu.dot_dimension_numbers<[1], [1], [0], [0], [0, 0, 1, 0], [], []>} : vector<8x8xbf16>, vector<8x8xbf16>, vector<8x8xf32> -> vector<8x8xf32>
      %cst_84 = arith.constant -1.000000e+30 : f32
      "tpu.trace_stop"() : () -> ()
      %104 = vector.broadcast %cst_84 : f32 to vector<8x8xf32>
      %105 = arith.select %14, %103, %104 : vector<8x8xi1>, vector<8x8xf32>
      %c2_85 = arith.constant 2 : index
      %c0_86 = arith.constant 0 : index
      %c0_87 = arith.constant 0 : index
      %106 = vector.load %arg7[%c2_85, %c0_86, %c0_87] : memref<4x8x1xf32, #tpu.memory_space<vmem>>, vector<1x8x1xf32>
      %107 = vector.shape_cast %106 : vector<1x8x1xf32> to vector<8x1xf32>
      %cst_88 = arith.constant dense<0xFF800000> : vector<8xf32>
      %108 = vector.multi_reduction <maximumf>, %105, %cst_88 [1] : vector<8x8xf32> to vector<8xf32>
      %109 = vector.shape_cast %108 : vector<8xf32> to vector<8x1xf32>
      %110 = arith.maximumf %107, %109 : vector<8x1xf32>
      %111 = arith.subf %107, %110 : vector<8x1xf32>
      %112 = math.exp %111 : vector<8x1xf32>
      %113 = vector.broadcast %110 : vector<8x1xf32> to vector<8x8xf32>
      %114 = arith.subf %105, %113 : vector<8x8xf32>
      %115 = math.exp %114 : vector<8x8xf32>
      %c2_89 = arith.constant 2 : index
      %c0_90 = arith.constant 0 : index
      %c0_91 = arith.constant 0 : index
      %116 = vector.load %arg8[%c2_89, %c0_90, %c0_91] : memref<4x8x1xf32, #tpu.memory_space<vmem>>, vector<1x8x1xf32>
      %117 = vector.shape_cast %116 : vector<1x8x1xf32> to vector<8x1xf32>
      %118 = arith.mulf %112, %117 : vector<8x1xf32>
      %cst_92 = arith.constant dense<0.000000e+00> : vector<8xf32>
      %119 = vector.multi_reduction <add>, %115, %cst_92 [1] : vector<8x8xf32> to vector<8xf32>
      %120 = vector.shape_cast %119 : vector<8xf32> to vector<8x1xf32>
      %121 = arith.addf %118, %120 : vector<8x1xf32>
      %c2_93 = arith.constant 2 : index
      %c0_94 = arith.constant 0 : index
      %c0_95 = arith.constant 0 : index
      %122 = vector.load %arg8[%c2_93, %c0_94, %c0_95] : memref<4x8x1xf32, #tpu.memory_space<vmem>>, vector<1x8x1xf32>
      %123 = vector.shape_cast %122 : vector<1x8x1xf32> to vector<8x1xf32>
      %124 = vector.shape_cast %121 : vector<8x1xf32> to vector<1x8x1xf32>
      tpu.vector_store %arg8[%c2_93, %c0_94, %c0_95], %124 {strides = array<i32>} : memref<4x8x1xf32, #tpu.memory_space<vmem>>, vector<1x8x1xf32>,
      %c2_96 = arith.constant 2 : index
      %c0_97 = arith.constant 0 : index
      %c0_98 = arith.constant 0 : index
      %125 = vector.load %arg9[%c2_96, %c0_97, %c0_98] : memref<4x8x8xf32, #tpu.memory_space<vmem>>, vector<1x8x8xf32>
      %126 = vector.shape_cast %125 : vector<1x8x8xf32> to vector<8x8xf32>
      %127 = vector.broadcast %112 : vector<8x1xf32> to vector<8x8xf32>
      %128 = arith.mulf %127, %126 : vector<8x8xf32>
      %129 = arith.truncf %115 : vector<8x8xf32> to vector<8x8xbf16>
      %cst_99 = arith.constant dense<0.000000e+00> : vector<8x8xf32>
      %130 = tpu.matmul %129, %102, %cst_99 {dimension_numbers = #tpu.dot_dimension_numbers<[1], [0], [0], [1], [0, 0, 1, 1], [], []>} : vector<8x8xbf16>, vector<8x8xbf16>, vector<8x8xf32> -> vector<8x8xf32>
      %131 = arith.addf %128, %130 : vector<8x8xf32>
      %c2_100 = arith.constant 2 : index
      %c0_101 = arith.constant 0 : index
      %c0_102 = arith.constant 0 : index
      %132 = vector.load %arg9[%c2_100, %c0_101, %c0_102] : memref<4x8x8xf32, #tpu.memory_space<vmem>>, vector<1x8x8xf32>
      %133 = vector.shape_cast %132 : vector<1x8x8xf32> to vector<8x8xf32>
      %134 = vector.shape_cast %131 : vector<8x8xf32> to vector<1x8x8xf32>
      tpu.vector_store %arg9[%c2_100, %c0_101, %c0_102], %134 {strides = array<i32>} : memref<4x8x8xf32, #tpu.memory_space<vmem>>, vector<1x8x8xf32>,
      %c2_103 = arith.constant 2 : index
      %c0_104 = arith.constant 0 : index
      %c0_105 = arith.constant 0 : index
      %135 = vector.load %arg7[%c2_103, %c0_104, %c0_105] : memref<4x8x1xf32, #tpu.memory_space<vmem>>, vector<1x8x1xf32>
      %136 = vector.shape_cast %135 : vector<1x8x1xf32> to vector<8x1xf32>
      %137 = vector.shape_cast %110 : vector<8x1xf32> to vector<1x8x1xf32>
      tpu.vector_store %arg7[%c2_103, %c0_104, %c0_105], %137 {strides = array<i32>} : memref<4x8x1xf32, #tpu.memory_space<vmem>>, vector<1x8x1xf32>,
      %c0_106 = arith.constant 0 : index
      %c3 = arith.constant 3 : index
      %c0_107 = arith.constant 0 : index
      %c0_108 = arith.constant 0 : index
      %138 = vector.load %arg3[%c0_106, %c3, %c0_107, %c0_108] : memref<1x4x8x8xbf16, #tpu.memory_space<vmem>>, vector<1x1x8x8xbf16>
      %139 = vector.shape_cast %138 : vector<1x1x8x8xbf16> to vector<8x8xbf16>
      %c0_109 = arith.constant 0 : index
      %c3_110 = arith.constant 3 : index
      %c0_111 = arith.constant 0 : index
      %c0_112 = arith.constant 0 : index
      %140 = vector.load %arg4[%c0_109, %c3_110, %c0_111, %c0_112] : memref<1x4x8x8xbf16, #tpu.memory_space<vmem>>, vector<1x1x8x8xbf16>
      %141 = vector.shape_cast %140 : vector<1x1x8x8xbf16> to vector<8x8xbf16>
      %c0_113 = arith.constant 0 : index
      %c3_114 = arith.constant 3 : index
      %c0_115 = arith.constant 0 : index
      %c0_116 = arith.constant 0 : index
      %142 = vector.load %arg5[%c0_113, %c3_114, %c0_115, %c0_116] : memref<1x4x8x8xbf16, #tpu.memory_space<vmem>>, vector<1x1x8x8xbf16>
      %143 = vector.shape_cast %142 : vector<1x1x8x8xbf16> to vector<8x8xbf16>
      "tpu.trace_start"() <{level = 10 : i32, message = "qd,kd->qk"}> : () -> ()
      %cst_117 = arith.constant dense<0.000000e+00> : vector<8x8xf32>
      %144 = tpu.matmul %139, %141, %cst_117 {dimension_numbers = #tpu.dot_dimension_numbers<[1], [1], [0], [0], [0, 0, 1, 0], [], []>} : vector<8x8xbf16>, vector<8x8xbf16>, vector<8x8xf32> -> vector<8x8xf32>
      %cst_118 = arith.constant -1.000000e+30 : f32
      "tpu.trace_stop"() : () -> ()
      %145 = vector.broadcast %cst_118 : f32 to vector<8x8xf32>
      %146 = arith.select %14, %144, %145 : vector<8x8xi1>, vector<8x8xf32>
      %c3_119 = arith.constant 3 : index
      %c0_120 = arith.constant 0 : index
      %c0_121 = arith.constant 0 : index
      %147 = vector.load %arg7[%c3_119, %c0_120, %c0_121] : memref<4x8x1xf32, #tpu.memory_space<vmem>>, vector<1x8x1xf32>
      %148 = vector.shape_cast %147 : vector<1x8x1xf32> to vector<8x1xf32>
      %cst_122 = arith.constant dense<0xFF800000> : vector<8xf32>
      %149 = vector.multi_reduction <maximumf>, %146, %cst_122 [1] : vector<8x8xf32> to vector<8xf32>
      %150 = vector.shape_cast %149 : vector<8xf32> to vector<8x1xf32>
      %151 = arith.maximumf %148, %150 : vector<8x1xf32>
      %152 = arith.subf %148, %151 : vector<8x1xf32>
      %153 = math.exp %152 : vector<8x1xf32>
      %154 = vector.broadcast %151 : vector<8x1xf32> to vector<8x8xf32>
      %155 = arith.subf %146, %154 : vector<8x8xf32>
      %156 = math.exp %155 : vector<8x8xf32>
      %c3_123 = arith.constant 3 : index
      %c0_124 = arith.constant 0 : index
      %c0_125 = arith.constant 0 : index
      %157 = vector.load %arg8[%c3_123, %c0_124, %c0_125] : memref<4x8x1xf32, #tpu.memory_space<vmem>>, vector<1x8x1xf32>
      %158 = vector.shape_cast %157 : vector<1x8x1xf32> to vector<8x1xf32>
      %159 = arith.mulf %153, %158 : vector<8x1xf32>
      %cst_126 = arith.constant dense<0.000000e+00> : vector<8xf32>
      %160 = vector.multi_reduction <add>, %156, %cst_126 [1] : vector<8x8xf32> to vector<8xf32>
      %161 = vector.shape_cast %160 : vector<8xf32> to vector<8x1xf32>
      %162 = arith.addf %159, %161 : vector<8x1xf32>
      %c3_127 = arith.constant 3 : index
      %c0_128 = arith.constant 0 : index
      %c0_129 = arith.constant 0 : index
      %163 = vector.load %arg8[%c3_127, %c0_128, %c0_129] : memref<4x8x1xf32, #tpu.memory_space<vmem>>, vector<1x8x1xf32>
      %164 = vector.shape_cast %163 : vector<1x8x1xf32> to vector<8x1xf32>
      %165 = vector.shape_cast %162 : vector<8x1xf32> to vector<1x8x1xf32>
      tpu.vector_store %arg8[%c3_127, %c0_128, %c0_129], %165 {strides = array<i32>} : memref<4x8x1xf32, #tpu.memory_space<vmem>>, vector<1x8x1xf32>,
      %c3_130 = arith.constant 3 : index
      %c0_131 = arith.constant 0 : index
      %c0_132 = arith.constant 0 : index
      %166 = vector.load %arg9[%c3_130, %c0_131, %c0_132] : memref<4x8x8xf32, #tpu.memory_space<vmem>>, vector<1x8x8xf32>
      %167 = vector.shape_cast %166 : vector<1x8x8xf32> to vector<8x8xf32>
      %168 = vector.broadcast %153 : vector<8x1xf32> to vector<8x8xf32>
      %169 = arith.mulf %168, %167 : vector<8x8xf32>
      %170 = arith.truncf %156 : vector<8x8xf32> to vector<8x8xbf16>
      %cst_133 = arith.constant dense<0.000000e+00> : vector<8x8xf32>
      %171 = tpu.matmul %170, %143, %cst_133 {dimension_numbers = #tpu.dot_dimension_numbers<[1], [0], [0], [1], [0, 0, 1, 1], [], []>} : vector<8x8xbf16>, vector<8x8xbf16>, vector<8x8xf32> -> vector<8x8xf32>
      %172 = arith.addf %169, %171 : vector<8x8xf32>
      %c3_134 = arith.constant 3 : index
      %c0_135 = arith.constant 0 : index
      %c0_136 = arith.constant 0 : index
      %173 = vector.load %arg9[%c3_134, %c0_135, %c0_136] : memref<4x8x8xf32, #tpu.memory_space<vmem>>, vector<1x8x8xf32>
      %174 = vector.shape_cast %173 : vector<1x8x8xf32> to vector<8x8xf32>
      %175 = vector.shape_cast %172 : vector<8x8xf32> to vector<1x8x8xf32>
      tpu.vector_store %arg9[%c3_134, %c0_135, %c0_136], %175 {strides = array<i32>} : memref<4x8x8xf32, #tpu.memory_space<vmem>>, vector<1x8x8xf32>,
      %c3_137 = arith.constant 3 : index
      %c0_138 = arith.constant 0 : index
      %c0_139 = arith.constant 0 : index
      %176 = vector.load %arg7[%c3_137, %c0_138, %c0_139] : memref<4x8x1xf32, #tpu.memory_space<vmem>>, vector<1x8x1xf32>
      %177 = vector.shape_cast %176 : vector<1x8x1xf32> to vector<8x1xf32>
      %178 = vector.shape_cast %151 : vector<8x1xf32> to vector<1x8x1xf32>
      tpu.vector_store %arg7[%c3_137, %c0_138, %c0_139], %178 {strides = array<i32>} : memref<4x8x1xf32, #tpu.memory_space<vmem>>, vector<1x8x1xf32>,
    } else {
    }
    %c0_i32_3 = arith.constant 0 : i32
    %9 = arith.cmpi eq, %arg2, %c0_i32_3 : i32
    %10 = arith.extui %9 : i1 to i32
    %c0_i32_4 = arith.constant 0 : i32
    %11 = arith.cmpi ne, %10, %c0_i32_4 : i32
    scf.if %11 {
      %c0 = arith.constant 0 : index
      %c0_5 = arith.constant 0 : index
      %c0_6 = arith.constant 0 : index
      %12 = vector.load %arg9[%c0, %c0_5, %c0_6] : memref<4x8x8xf32, #tpu.memory_space<vmem>>, vector<1x8x8xf32>
      %13 = vector.shape_cast %12 : vector<1x8x8xf32> to vector<8x8xf32>
      %c0_7 = arith.constant 0 : index
      %c0_8 = arith.constant 0 : index
      %c0_9 = arith.constant 0 : index
      %14 = vector.load %arg8[%c0_7, %c0_8, %c0_9] : memref<4x8x1xf32, #tpu.memory_space<vmem>>, vector<1x8x1xf32>
      %15 = vector.shape_cast %14 : vector<1x8x1xf32> to vector<8x1xf32>
      %16 = tpu.reciprocal %15 {approx = true} : vector<8x1xf32> -> vector<8x1xf32>
      %17 = vector.broadcast %16 : vector<8x1xf32> to vector<8x8xf32>
      %18 = arith.mulf %13, %17 : vector<8x8xf32>
      %19 = arith.truncf %18 : vector<8x8xf32> to vector<8x8xbf16>
      %c0_10 = arith.constant 0 : index
      %c0_11 = arith.constant 0 : index
      %c0_12 = arith.constant 0 : index
      %20 = vector.load %arg6[%c0_10, %c0_11, %c0_12] : memref<1x8x32xbf16, #tpu.memory_space<vmem>>, vector<1x8x8xbf16>
      %21 = vector.shape_cast %20 : vector<1x8x8xbf16> to vector<8x8xbf16>
      %22 = vector.shape_cast %19 : vector<8x8xbf16> to vector<1x8x8xbf16>
      tpu.vector_store %arg6[%c0_10, %c0_11, %c0_12], %22 {strides = array<i32>} : memref<1x8x32xbf16, #tpu.memory_space<vmem>>, vector<1x8x8xbf16>,
      %c1 = arith.constant 1 : index
      %c0_13 = arith.constant 0 : index
      %c0_14 = arith.constant 0 : index
      %23 = vector.load %arg9[%c1, %c0_13, %c0_14] : memref<4x8x8xf32, #tpu.memory_space<vmem>>, vector<1x8x8xf32>
      %24 = vector.shape_cast %23 : vector<1x8x8xf32> to vector<8x8xf32>
      %c1_15 = arith.constant 1 : index
      %c0_16 = arith.constant 0 : index
      %c0_17 = arith.constant 0 : index
      %25 = vector.load %arg8[%c1_15, %c0_16, %c0_17] : memref<4x8x1xf32, #tpu.memory_space<vmem>>, vector<1x8x1xf32>
      %26 = vector.shape_cast %25 : vector<1x8x1xf32> to vector<8x1xf32>
      %27 = tpu.reciprocal %26 {approx = true} : vector<8x1xf32> -> vector<8x1xf32>
      %28 = vector.broadcast %27 : vector<8x1xf32> to vector<8x8xf32>
      %29 = arith.mulf %24, %28 : vector<8x8xf32>
      %30 = arith.truncf %29 : vector<8x8xf32> to vector<8x8xbf16>
      %c0_18 = arith.constant 0 : index
      %c0_19 = arith.constant 0 : index
      %c8 = arith.constant 8 : index
      %31 = vector.load %arg6[%c0_18, %c0_19, %c8] : memref<1x8x32xbf16, #tpu.memory_space<vmem>>, vector<1x8x8xbf16>
      %32 = vector.shape_cast %31 : vector<1x8x8xbf16> to vector<8x8xbf16>
      %33 = vector.shape_cast %30 : vector<8x8xbf16> to vector<1x8x8xbf16>
      tpu.vector_store %arg6[%c0_18, %c0_19, %c8], %33 {strides = array<i32>} : memref<1x8x32xbf16, #tpu.memory_space<vmem>>, vector<1x8x8xbf16>,
      %c2 = arith.constant 2 : index
      %c0_20 = arith.constant 0 : index
      %c0_21 = arith.constant 0 : index
      %34 = vector.load %arg9[%c2, %c0_20, %c0_21] : memref<4x8x8xf32, #tpu.memory_space<vmem>>, vector<1x8x8xf32>
      %35 = vector.shape_cast %34 : vector<1x8x8xf32> to vector<8x8xf32>
      %c2_22 = arith.constant 2 : index
      %c0_23 = arith.constant 0 : index
      %c0_24 = arith.constant 0 : index
      %36 = vector.load %arg8[%c2_22, %c0_23, %c0_24] : memref<4x8x1xf32, #tpu.memory_space<vmem>>, vector<1x8x1xf32>
      %37 = vector.shape_cast %36 : vector<1x8x1xf32> to vector<8x1xf32>
      %38 = tpu.reciprocal %37 {approx = true} : vector<8x1xf32> -> vector<8x1xf32>
      %39 = vector.broadcast %38 : vector<8x1xf32> to vector<8x8xf32>
      %40 = arith.mulf %35, %39 : vector<8x8xf32>
      %41 = arith.truncf %40 : vector<8x8xf32> to vector<8x8xbf16>
      %c0_25 = arith.constant 0 : index
      %c0_26 = arith.constant 0 : index
      %c16 = arith.constant 16 : index
      %42 = vector.load %arg6[%c0_25, %c0_26, %c16] : memref<1x8x32xbf16, #tpu.memory_space<vmem>>, vector<1x8x8xbf16>
      %43 = vector.shape_cast %42 : vector<1x8x8xbf16> to vector<8x8xbf16>
      %44 = vector.shape_cast %41 : vector<8x8xbf16> to vector<1x8x8xbf16>
      tpu.vector_store %arg6[%c0_25, %c0_26, %c16], %44 {strides = array<i32>} : memref<1x8x32xbf16, #tpu.memory_space<vmem>>, vector<1x8x8xbf16>,
      %c3 = arith.constant 3 : index
      %c0_27 = arith.constant 0 : index
      %c0_28 = arith.constant 0 : index
      %45 = vector.load %arg9[%c3, %c0_27, %c0_28] : memref<4x8x8xf32, #tpu.memory_space<vmem>>, vector<1x8x8xf32>
      %46 = vector.shape_cast %45 : vector<1x8x8xf32> to vector<8x8xf32>
      %c3_29 = arith.constant 3 : index
      %c0_30 = arith.constant 0 : index
      %c0_31 = arith.constant 0 : index
      %47 = vector.load %arg8[%c3_29, %c0_30, %c0_31] : memref<4x8x1xf32, #tpu.memory_space<vmem>>, vector<1x8x1xf32>
      %48 = vector.shape_cast %47 : vector<1x8x1xf32> to vector<8x1xf32>
      %49 = tpu.reciprocal %48 {approx = true} : vector<8x1xf32> -> vector<8x1xf32>
      %50 = vector.broadcast %49 : vector<8x1xf32> to vector<8x8xf32>
      %51 = arith.mulf %46, %50 : vector<8x8xf32>
      %52 = arith.truncf %51 : vector<8x8xf32> to vector<8x8xbf16>
      %c0_32 = arith.constant 0 : index
      %c0_33 = arith.constant 0 : index
      %c24 = arith.constant 24 : index
      %53 = vector.load %arg6[%c0_32, %c0_33, %c24] : memref<1x8x32xbf16, #tpu.memory_space<vmem>>, vector<1x8x8xbf16>
      %54 = vector.shape_cast %53 : vector<1x8x8xbf16> to vector<8x8xbf16>
      %55 = vector.shape_cast %52 : vector<8x8xbf16> to vector<1x8x8xbf16>
      tpu.vector_store %arg6[%c0_32, %c0_33, %c24], %55 {strides = array<i32>} : memref<1x8x32xbf16, #tpu.memory_space<vmem>>, vector<1x8x8xbf16>,
    } else {
    }
    return
  }
  func.func @transform_0(%arg0: i32, %arg1: i32, %arg2: i32) -> (i32, i32, i32, i32) {
    %c0_i32 = arith.constant 0 : i32
    %c0_i32_0 = arith.constant 0 : i32
    %c0_i32_1 = arith.constant 0 : i32
    return %arg0, %c0_i32, %arg1, %c0_i32_0 : i32, i32, i32, i32
  }
  func.func @transform_1(%arg0: i32, %arg1: i32, %arg2: i32) -> (i32, i32, i32, i32) {
    %0 = arith.minsi %arg2, %arg1 : i32
    %c0_i32 = arith.constant 0 : i32
    %c0_i32_0 = arith.constant 0 : i32
    %c0_i32_1 = arith.constant 0 : i32
    return %arg0, %c0_i32, %0, %c0_i32_0 : i32, i32, i32, i32
  }
  func.func @transform_2(%arg0: i32, %arg1: i32, %arg2: i32) -> (i32, i32, i32, i32) {
    %0 = arith.minsi %arg2, %arg1 : i32
    %c0_i32 = arith.constant 0 : i32
    %c0_i32_0 = arith.constant 0 : i32
    %c0_i32_1 = arith.constant 0 : i32
    return %arg0, %c0_i32, %0, %c0_i32_0 : i32, i32, i32, i32
  }
  func.func @transform_3(%arg0: i32, %arg1: i32, %arg2: i32) -> (i32, i32, i32) {
    %c0_i32 = arith.constant 0 : i32
    %c0_i32_0 = arith.constant 0 : i32
    return %arg0, %arg1, %c0_i32 : i32, i32, i32
  }
}

module attributes {stable_mosaic.version = 11 : i64} {
  func.func @_qkv_kernel(%arg0: i32, %arg1: i32, %arg2: memref<1x8x32xf32, #tpu.memory_space<vmem>>, %arg3: memref<32x96xbf16, #tpu.memory_space<vmem>>, %arg4: memref<1x4x8x8xbf16, #tpu.memory_space<vmem>>, %arg5: memref<1x4x8x8xbf16, #tpu.memory_space<vmem>>, %arg6: memref<1x4x8x8xbf16, #tpu.memory_space<vmem>>) attributes {dimension_semantics = [#tpu.dimension_semantics<parallel>, #tpu.dimension_semantics<parallel>], iteration_bounds = array<i64: 2, 1>, scalar_prefetch = 0 : i64, scratch_operands = 0 : i64, tpu.core_type = #tpu.core_type<tc>, window_params = [{transform_indices = @transform_0, window_bounds = array<i64: 1, 8, 32>}, {pipeline_mode = #tpu.pipeline_mode<synchronous>, transform_indices = @transform_1, window_bounds = array<i64: 32, 96>}, {transform_indices = @transform_2, window_bounds = array<i64: 1, 4, 8, 8>}, {transform_indices = @transform_3, window_bounds = array<i64: 1, 4, 8, 8>}, {transform_indices = @transform_4, window_bounds = array<i64: 1, 4, 8, 8>}]} {
    %c0 = arith.constant 0 : index
    %c0_0 = arith.constant 0 : index
    %c0_1 = arith.constant 0 : index
    %0 = vector.load %arg2[%c0, %c0_0, %c0_1] : memref<1x8x32xf32, #tpu.memory_space<vmem>>, vector<1x8x32xf32>
    %1 = vector.shape_cast %0 : vector<1x8x32xf32> to vector<8x32xf32>
    %cst = arith.constant dense<0.000000e+00> : vector<8xf32>
    %2 = vector.multi_reduction <add>, %1, %cst [1] : vector<8x32xf32> to vector<8xf32>
    %3 = vector.shape_cast %2 : vector<8xf32> to vector<8x1xf32>
    %cst_2 = arith.constant 3.200000e+01 : f32
    %4 = vector.broadcast %cst_2 : f32 to vector<8x1xf32>
    %5 = arith.divf %3, %4 : vector<8x1xf32>
    %6 = vector.broadcast %5 : vector<8x1xf32> to vector<8x32xf32>
    %7 = arith.subf %1, %6 : vector<8x32xf32>
    %8 = arith.mulf %7, %7 : vector<8x32xf32>
    %cst_3 = arith.constant dense<0.000000e+00> : vector<8xf32>
    %9 = vector.multi_reduction <add>, %8, %cst_3 [1] : vector<8x32xf32> to vector<8xf32>
    %10 = vector.shape_cast %9 : vector<8xf32> to vector<8x1xf32>
    %cst_4 = arith.constant 3.200000e+01 : f32
    %11 = vector.broadcast %cst_4 : f32 to vector<8x1xf32>
    %12 = arith.divf %10, %11 : vector<8x1xf32>
    %cst_5 = arith.constant 9.99999974E-6 : f32
    %13 = vector.broadcast %cst_5 : f32 to vector<8x1xf32>
    %14 = arith.addf %12, %13 : vector<8x1xf32>
    %15 = math.rsqrt %14 : vector<8x1xf32>
    %16 = vector.broadcast %15 : vector<8x1xf32> to vector<8x32xf32>
    %17 = arith.mulf %7, %16 : vector<8x32xf32>
    %18 = arith.truncf %17 : vector<8x32xf32> to vector<8x32xbf16>
    %c0_6 = arith.constant 0 : index
    %c0_7 = arith.constant 0 : index
    %19 = vector.load %arg3[%c0_6, %c0_7] : memref<32x96xbf16, #tpu.memory_space<vmem>>, vector<32x96xbf16>
    %cst_8 = arith.constant dense<0.000000e+00> : vector<8x96xf32>
    %20 = tpu.matmul %18, %19, %cst_8 {dimension_numbers = #tpu.dot_dimension_numbers<[1], [0], [0], [1], [0, 0, 1, 1], [], []>} : vector<8x32xbf16>, vector<32x96xbf16>, vector<8x96xf32> -> vector<8x96xf32>
    %21 = vector.extract_strided_slice %20 {offsets = [0, 0], sizes = [8, 8], strides = [1, 1]} : vector<8x96xf32> to vector<8x8xf32>
    %22 = arith.truncf %21 : vector<8x8xf32> to vector<8x8xbf16>
    %c0_9 = arith.constant 0 : index
    %c0_10 = arith.constant 0 : index
    %c0_11 = arith.constant 0 : index
    %c0_12 = arith.constant 0 : index
    %23 = vector.load %arg4[%c0_9, %c0_10, %c0_11, %c0_12] : memref<1x4x8x8xbf16, #tpu.memory_space<vmem>>, vector<1x1x8x8xbf16>
    %24 = vector.shape_cast %23 : vector<1x1x8x8xbf16> to vector<8x8xbf16>
    %25 = vector.shape_cast %22 : vector<8x8xbf16> to vector<1x1x8x8xbf16>
    tpu.vector_store %arg4[%c0_9, %c0_10, %c0_11, %c0_12], %25 {strides = array<i32>} : memref<1x4x8x8xbf16, #tpu.memory_space<vmem>>, vector<1x1x8x8xbf16>,
    %26 = vector.extract_strided_slice %20 {offsets = [0, 32], sizes = [8, 8], strides = [1, 1]} : vector<8x96xf32> to vector<8x8xf32>
    %27 = arith.truncf %26 : vector<8x8xf32> to vector<8x8xbf16>
    %c0_13 = arith.constant 0 : index
    %c0_14 = arith.constant 0 : index
    %c0_15 = arith.constant 0 : index
    %c0_16 = arith.constant 0 : index
    %28 = vector.load %arg5[%c0_13, %c0_14, %c0_15, %c0_16] : memref<1x4x8x8xbf16, #tpu.memory_space<vmem>>, vector<1x1x8x8xbf16>
    %29 = vector.shape_cast %28 : vector<1x1x8x8xbf16> to vector<8x8xbf16>
    %30 = vector.shape_cast %27 : vector<8x8xbf16> to vector<1x1x8x8xbf16>
    tpu.vector_store %arg5[%c0_13, %c0_14, %c0_15, %c0_16], %30 {strides = array<i32>} : memref<1x4x8x8xbf16, #tpu.memory_space<vmem>>, vector<1x1x8x8xbf16>,
    %31 = vector.extract_strided_slice %20 {offsets = [0, 64], sizes = [8, 8], strides = [1, 1]} : vector<8x96xf32> to vector<8x8xf32>
    %32 = arith.truncf %31 : vector<8x8xf32> to vector<8x8xbf16>
    %c0_17 = arith.constant 0 : index
    %c0_18 = arith.constant 0 : index
    %c0_19 = arith.constant 0 : index
    %c0_20 = arith.constant 0 : index
    %33 = vector.load %arg6[%c0_17, %c0_18, %c0_19, %c0_20] : memref<1x4x8x8xbf16, #tpu.memory_space<vmem>>, vector<1x1x8x8xbf16>
    %34 = vector.shape_cast %33 : vector<1x1x8x8xbf16> to vector<8x8xbf16>
    %35 = vector.shape_cast %32 : vector<8x8xbf16> to vector<1x1x8x8xbf16>
    tpu.vector_store %arg6[%c0_17, %c0_18, %c0_19, %c0_20], %35 {strides = array<i32>} : memref<1x4x8x8xbf16, #tpu.memory_space<vmem>>, vector<1x1x8x8xbf16>,
    %36 = vector.extract_strided_slice %20 {offsets = [0, 8], sizes = [8, 8], strides = [1, 1]} : vector<8x96xf32> to vector<8x8xf32>
    %37 = arith.truncf %36 : vector<8x8xf32> to vector<8x8xbf16>
    %c0_21 = arith.constant 0 : index
    %c1 = arith.constant 1 : index
    %c0_22 = arith.constant 0 : index
    %c0_23 = arith.constant 0 : index
    %38 = vector.load %arg4[%c0_21, %c1, %c0_22, %c0_23] : memref<1x4x8x8xbf16, #tpu.memory_space<vmem>>, vector<1x1x8x8xbf16>
    %39 = vector.shape_cast %38 : vector<1x1x8x8xbf16> to vector<8x8xbf16>
    %40 = vector.shape_cast %37 : vector<8x8xbf16> to vector<1x1x8x8xbf16>
    tpu.vector_store %arg4[%c0_21, %c1, %c0_22, %c0_23], %40 {strides = array<i32>} : memref<1x4x8x8xbf16, #tpu.memory_space<vmem>>, vector<1x1x8x8xbf16>,
    %41 = vector.extract_strided_slice %20 {offsets = [0, 40], sizes = [8, 8], strides = [1, 1]} : vector<8x96xf32> to vector<8x8xf32>
    %42 = arith.truncf %41 : vector<8x8xf32> to vector<8x8xbf16>
    %c0_24 = arith.constant 0 : index
    %c1_25 = arith.constant 1 : index
    %c0_26 = arith.constant 0 : index
    %c0_27 = arith.constant 0 : index
    %43 = vector.load %arg5[%c0_24, %c1_25, %c0_26, %c0_27] : memref<1x4x8x8xbf16, #tpu.memory_space<vmem>>, vector<1x1x8x8xbf16>
    %44 = vector.shape_cast %43 : vector<1x1x8x8xbf16> to vector<8x8xbf16>
    %45 = vector.shape_cast %42 : vector<8x8xbf16> to vector<1x1x8x8xbf16>
    tpu.vector_store %arg5[%c0_24, %c1_25, %c0_26, %c0_27], %45 {strides = array<i32>} : memref<1x4x8x8xbf16, #tpu.memory_space<vmem>>, vector<1x1x8x8xbf16>,
    %46 = vector.extract_strided_slice %20 {offsets = [0, 72], sizes = [8, 8], strides = [1, 1]} : vector<8x96xf32> to vector<8x8xf32>
    %47 = arith.truncf %46 : vector<8x8xf32> to vector<8x8xbf16>
    %c0_28 = arith.constant 0 : index
    %c1_29 = arith.constant 1 : index
    %c0_30 = arith.constant 0 : index
    %c0_31 = arith.constant 0 : index
    %48 = vector.load %arg6[%c0_28, %c1_29, %c0_30, %c0_31] : memref<1x4x8x8xbf16, #tpu.memory_space<vmem>>, vector<1x1x8x8xbf16>
    %49 = vector.shape_cast %48 : vector<1x1x8x8xbf16> to vector<8x8xbf16>
    %50 = vector.shape_cast %47 : vector<8x8xbf16> to vector<1x1x8x8xbf16>
    tpu.vector_store %arg6[%c0_28, %c1_29, %c0_30, %c0_31], %50 {strides = array<i32>} : memref<1x4x8x8xbf16, #tpu.memory_space<vmem>>, vector<1x1x8x8xbf16>,
    %51 = vector.extract_strided_slice %20 {offsets = [0, 16], sizes = [8, 8], strides = [1, 1]} : vector<8x96xf32> to vector<8x8xf32>
    %52 = arith.truncf %51 : vector<8x8xf32> to vector<8x8xbf16>
    %c0_32 = arith.constant 0 : index
    %c2 = arith.constant 2 : index
    %c0_33 = arith.constant 0 : index
    %c0_34 = arith.constant 0 : index
    %53 = vector.load %arg4[%c0_32, %c2, %c0_33, %c0_34] : memref<1x4x8x8xbf16, #tpu.memory_space<vmem>>, vector<1x1x8x8xbf16>
    %54 = vector.shape_cast %53 : vector<1x1x8x8xbf16> to vector<8x8xbf16>
    %55 = vector.shape_cast %52 : vector<8x8xbf16> to vector<1x1x8x8xbf16>
    tpu.vector_store %arg4[%c0_32, %c2, %c0_33, %c0_34], %55 {strides = array<i32>} : memref<1x4x8x8xbf16, #tpu.memory_space<vmem>>, vector<1x1x8x8xbf16>,
    %56 = vector.extract_strided_slice %20 {offsets = [0, 48], sizes = [8, 8], strides = [1, 1]} : vector<8x96xf32> to vector<8x8xf32>
    %57 = arith.truncf %56 : vector<8x8xf32> to vector<8x8xbf16>
    %c0_35 = arith.constant 0 : index
    %c2_36 = arith.constant 2 : index
    %c0_37 = arith.constant 0 : index
    %c0_38 = arith.constant 0 : index
    %58 = vector.load %arg5[%c0_35, %c2_36, %c0_37, %c0_38] : memref<1x4x8x8xbf16, #tpu.memory_space<vmem>>, vector<1x1x8x8xbf16>
    %59 = vector.shape_cast %58 : vector<1x1x8x8xbf16> to vector<8x8xbf16>
    %60 = vector.shape_cast %57 : vector<8x8xbf16> to vector<1x1x8x8xbf16>
    tpu.vector_store %arg5[%c0_35, %c2_36, %c0_37, %c0_38], %60 {strides = array<i32>} : memref<1x4x8x8xbf16, #tpu.memory_space<vmem>>, vector<1x1x8x8xbf16>,
    %61 = vector.extract_strided_slice %20 {offsets = [0, 80], sizes = [8, 8], strides = [1, 1]} : vector<8x96xf32> to vector<8x8xf32>
    %62 = arith.truncf %61 : vector<8x8xf32> to vector<8x8xbf16>
    %c0_39 = arith.constant 0 : index
    %c2_40 = arith.constant 2 : index
    %c0_41 = arith.constant 0 : index
    %c0_42 = arith.constant 0 : index
    %63 = vector.load %arg6[%c0_39, %c2_40, %c0_41, %c0_42] : memref<1x4x8x8xbf16, #tpu.memory_space<vmem>>, vector<1x1x8x8xbf16>
    %64 = vector.shape_cast %63 : vector<1x1x8x8xbf16> to vector<8x8xbf16>
    %65 = vector.shape_cast %62 : vector<8x8xbf16> to vector<1x1x8x8xbf16>
    tpu.vector_store %arg6[%c0_39, %c2_40, %c0_41, %c0_42], %65 {strides = array<i32>} : memref<1x4x8x8xbf16, #tpu.memory_space<vmem>>, vector<1x1x8x8xbf16>,
    %66 = vector.extract_strided_slice %20 {offsets = [0, 24], sizes = [8, 8], strides = [1, 1]} : vector<8x96xf32> to vector<8x8xf32>
    %67 = arith.truncf %66 : vector<8x8xf32> to vector<8x8xbf16>
    %c0_43 = arith.constant 0 : index
    %c3 = arith.constant 3 : index
    %c0_44 = arith.constant 0 : index
    %c0_45 = arith.constant 0 : index
    %68 = vector.load %arg4[%c0_43, %c3, %c0_44, %c0_45] : memref<1x4x8x8xbf16, #tpu.memory_space<vmem>>, vector<1x1x8x8xbf16>
    %69 = vector.shape_cast %68 : vector<1x1x8x8xbf16> to vector<8x8xbf16>
    %70 = vector.shape_cast %67 : vector<8x8xbf16> to vector<1x1x8x8xbf16>
    tpu.vector_store %arg4[%c0_43, %c3, %c0_44, %c0_45], %70 {strides = array<i32>} : memref<1x4x8x8xbf16, #tpu.memory_space<vmem>>, vector<1x1x8x8xbf16>,
    %71 = vector.extract_strided_slice %20 {offsets = [0, 56], sizes = [8, 8], strides = [1, 1]} : vector<8x96xf32> to vector<8x8xf32>
    %72 = arith.truncf %71 : vector<8x8xf32> to vector<8x8xbf16>
    %c0_46 = arith.constant 0 : index
    %c3_47 = arith.constant 3 : index
    %c0_48 = arith.constant 0 : index
    %c0_49 = arith.constant 0 : index
    %73 = vector.load %arg5[%c0_46, %c3_47, %c0_48, %c0_49] : memref<1x4x8x8xbf16, #tpu.memory_space<vmem>>, vector<1x1x8x8xbf16>
    %74 = vector.shape_cast %73 : vector<1x1x8x8xbf16> to vector<8x8xbf16>
    %75 = vector.shape_cast %72 : vector<8x8xbf16> to vector<1x1x8x8xbf16>
    tpu.vector_store %arg5[%c0_46, %c3_47, %c0_48, %c0_49], %75 {strides = array<i32>} : memref<1x4x8x8xbf16, #tpu.memory_space<vmem>>, vector<1x1x8x8xbf16>,
    %76 = vector.extract_strided_slice %20 {offsets = [0, 88], sizes = [8, 8], strides = [1, 1]} : vector<8x96xf32> to vector<8x8xf32>
    %77 = arith.truncf %76 : vector<8x8xf32> to vector<8x8xbf16>
    %c0_50 = arith.constant 0 : index
    %c3_51 = arith.constant 3 : index
    %c0_52 = arith.constant 0 : index
    %c0_53 = arith.constant 0 : index
    %78 = vector.load %arg6[%c0_50, %c3_51, %c0_52, %c0_53] : memref<1x4x8x8xbf16, #tpu.memory_space<vmem>>, vector<1x1x8x8xbf16>
    %79 = vector.shape_cast %78 : vector<1x1x8x8xbf16> to vector<8x8xbf16>
    %80 = vector.shape_cast %77 : vector<8x8xbf16> to vector<1x1x8x8xbf16>
    tpu.vector_store %arg6[%c0_50, %c3_51, %c0_52, %c0_53], %80 {strides = array<i32>} : memref<1x4x8x8xbf16, #tpu.memory_space<vmem>>, vector<1x1x8x8xbf16>,
    return
  }
  func.func @transform_0(%arg0: i32, %arg1: i32) -> (i32, i32, i32) {
    %c0_i32 = arith.constant 0 : i32
    %c0_i32_0 = arith.constant 0 : i32
    return %arg0, %arg1, %c0_i32 : i32, i32, i32
  }
  func.func @transform_1(%arg0: i32, %arg1: i32) -> (i32, i32) {
    %c0_i32 = arith.constant 0 : i32
    %c0_i32_0 = arith.constant 0 : i32
    %c0_i32_1 = arith.constant 0 : i32
    return %c0_i32, %c0_i32_0 : i32, i32
  }
  func.func @transform_2(%arg0: i32, %arg1: i32) -> (i32, i32, i32, i32) {
    %c0_i32 = arith.constant 0 : i32
    %c0_i32_0 = arith.constant 0 : i32
    %c0_i32_1 = arith.constant 0 : i32
    return %arg0, %c0_i32, %arg1, %c0_i32_0 : i32, i32, i32, i32
  }
  func.func @transform_3(%arg0: i32, %arg1: i32) -> (i32, i32, i32, i32) {
    %c0_i32 = arith.constant 0 : i32
    %c0_i32_0 = arith.constant 0 : i32
    %c0_i32_1 = arith.constant 0 : i32
    return %arg0, %c0_i32, %arg1, %c0_i32_0 : i32, i32, i32, i32
  }
  func.func @transform_4(%arg0: i32, %arg1: i32) -> (i32, i32, i32, i32) {
    %c0_i32 = arith.constant 0 : i32
    %c0_i32_0 = arith.constant 0 : i32
    %c0_i32_1 = arith.constant 0 : i32
    return %arg0, %c0_i32, %arg1, %c0_i32_0 : i32, i32, i32, i32
  }
}

module attributes {stable_mosaic.version = 11 : i64} {
  func.func @_post_attn_mlp_kernel(%arg0: i32, %arg1: i32, %arg2: memref<1x8x32xf32, #tpu.memory_space<vmem>>, %arg3: memref<1x8x32xbf16, #tpu.memory_space<vmem>>, %arg4: memref<32x32xbf16, #tpu.memory_space<vmem>>, %arg5: memref<32x128xbf16, #tpu.memory_space<vmem>>, %arg6: memref<128x32xbf16, #tpu.memory_space<vmem>>, %arg7: memref<1x8x32xbf16, #tpu.memory_space<vmem>>) attributes {dimension_semantics = [#tpu.dimension_semantics<parallel>, #tpu.dimension_semantics<parallel>], iteration_bounds = array<i64: 2, 1>, scalar_prefetch = 0 : i64, scratch_operands = 0 : i64, tpu.core_type = #tpu.core_type<tc>, window_params = [{transform_indices = @transform_0, window_bounds = array<i64: 1, 8, 32>}, {transform_indices = @transform_1, window_bounds = array<i64: 1, 8, 32>}, {pipeline_mode = #tpu.pipeline_mode<synchronous>, transform_indices = @transform_2, window_bounds = array<i64: 32, 32>}, {pipeline_mode = #tpu.pipeline_mode<synchronous>, transform_indices = @transform_3, window_bounds = array<i64: 32, 128>}, {pipeline_mode = #tpu.pipeline_mode<synchronous>, transform_indices = @transform_4, window_bounds = array<i64: 128, 32>}, {transform_indices = @transform_5, window_bounds = array<i64: 1, 8, 32>}]} {
    %c0 = arith.constant 0 : index
    %c0_0 = arith.constant 0 : index
    %c0_1 = arith.constant 0 : index
    %0 = vector.load %arg2[%c0, %c0_0, %c0_1] : memref<1x8x32xf32, #tpu.memory_space<vmem>>, vector<1x8x32xf32>
    %1 = vector.shape_cast %0 : vector<1x8x32xf32> to vector<8x32xf32>
    %c0_2 = arith.constant 0 : index
    %c0_3 = arith.constant 0 : index
    %c0_4 = arith.constant 0 : index
    %2 = vector.load %arg3[%c0_2, %c0_3, %c0_4] : memref<1x8x32xbf16, #tpu.memory_space<vmem>>, vector<1x8x32xbf16>
    %3 = vector.shape_cast %2 : vector<1x8x32xbf16> to vector<8x32xbf16>
    %c0_5 = arith.constant 0 : index
    %c0_6 = arith.constant 0 : index
    %4 = vector.load %arg4[%c0_5, %c0_6] : memref<32x32xbf16, #tpu.memory_space<vmem>>, vector<32x32xbf16>
    %cst = arith.constant dense<0.000000e+00> : vector<8x32xf32>
    %5 = tpu.matmul %3, %4, %cst {dimension_numbers = #tpu.dot_dimension_numbers<[1], [0], [0], [1], [0, 0, 1, 1], [], []>} : vector<8x32xbf16>, vector<32x32xbf16>, vector<8x32xf32> -> vector<8x32xf32>
    %6 = arith.addf %1, %5 : vector<8x32xf32>
    %cst_7 = arith.constant dense<0.000000e+00> : vector<8xf32>
    %7 = vector.multi_reduction <add>, %6, %cst_7 [1] : vector<8x32xf32> to vector<8xf32>
    %8 = vector.shape_cast %7 : vector<8xf32> to vector<8x1xf32>
    %cst_8 = arith.constant 3.200000e+01 : f32
    %9 = vector.broadcast %cst_8 : f32 to vector<8x1xf32>
    %10 = arith.divf %8, %9 : vector<8x1xf32>
    %11 = vector.broadcast %10 : vector<8x1xf32> to vector<8x32xf32>
    %12 = arith.subf %6, %11 : vector<8x32xf32>
    %13 = arith.mulf %12, %12 : vector<8x32xf32>
    %cst_9 = arith.constant dense<0.000000e+00> : vector<8xf32>
    %14 = vector.multi_reduction <add>, %13, %cst_9 [1] : vector<8x32xf32> to vector<8xf32>
    %15 = vector.shape_cast %14 : vector<8xf32> to vector<8x1xf32>
    %cst_10 = arith.constant 3.200000e+01 : f32
    %16 = vector.broadcast %cst_10 : f32 to vector<8x1xf32>
    %17 = arith.divf %15, %16 : vector<8x1xf32>
    %cst_11 = arith.constant 9.99999974E-6 : f32
    %18 = vector.broadcast %cst_11 : f32 to vector<8x1xf32>
    %19 = arith.addf %17, %18 : vector<8x1xf32>
    %20 = math.rsqrt %19 : vector<8x1xf32>
    %21 = vector.broadcast %20 : vector<8x1xf32> to vector<8x32xf32>
    %22 = arith.mulf %12, %21 : vector<8x32xf32>
    %23 = arith.truncf %22 : vector<8x32xf32> to vector<8x32xbf16>
    %c0_12 = arith.constant 0 : index
    %c0_13 = arith.constant 0 : index
    %24 = vector.load %arg5[%c0_12, %c0_13] : memref<32x128xbf16, #tpu.memory_space<vmem>>, vector<32x128xbf16>
    %cst_14 = arith.constant dense<0.000000e+00> : vector<8x128xf32>
    %25 = tpu.matmul %23, %24, %cst_14 {dimension_numbers = #tpu.dot_dimension_numbers<[1], [0], [0], [1], [0, 0, 1, 1], [], []>} : vector<8x32xbf16>, vector<32x128xbf16>, vector<8x128xf32> -> vector<8x128xf32>
    %cst_15 = arith.constant 5.000000e-01 : f32
    %26 = vector.broadcast %cst_15 : f32 to vector<8x128xf32>
    %27 = arith.mulf %26, %25 : vector<8x128xf32>
    %cst_16 = arith.constant 0.707106769 : f32
    %28 = vector.broadcast %cst_16 : f32 to vector<8x128xf32>
    %29 = arith.mulf %25, %28 : vector<8x128xf32>
    %cst_17 = arith.constant -4.000000e+00 : f32
    %cst_18 = arith.constant 4.000000e+00 : f32
    %30 = vector.broadcast %cst_17 : f32 to vector<8x128xf32>
    %31 = arith.maximumf %30, %29 : vector<8x128xf32>
    %32 = vector.broadcast %cst_18 : f32 to vector<8x128xf32>
    %33 = arith.minimumf %32, %31 : vector<8x128xf32>
    %34 = arith.mulf %33, %33 : vector<8x128xf32>
    %cst_19 = arith.constant 2.29050653E-4 : f32
    %35 = vector.broadcast %cst_19 : f32 to vector<8x128xf32>
    %36 = arith.mulf %35, %34 : vector<8x128xf32>
    %cst_20 = arith.constant 0.00340829091 : f32
    %37 = vector.broadcast %cst_20 : f32 to vector<8x128xf32>
    %38 = arith.addf %36, %37 : vector<8x128xf32>
    %39 = arith.mulf %38, %34 : vector<8x128xf32>
    %cst_21 = arith.constant 0.0509556942 : f32
    %40 = vector.broadcast %cst_21 : f32 to vector<8x128xf32>
    %41 = arith.addf %39, %40 : vector<8x128xf32>
    %42 = arith.mulf %41, %34 : vector<8x128xf32>
    %cst_22 = arith.constant 0.185208321 : f32
    %43 = vector.broadcast %cst_22 : f32 to vector<8x128xf32>
    %44 = arith.addf %42, %43 : vector<8x128xf32>
    %45 = arith.mulf %44, %34 : vector<8x128xf32>
    %cst_23 = arith.constant 1.12837911 : f32
    %46 = vector.broadcast %cst_23 : f32 to vector<8x128xf32>
    %47 = arith.addf %45, %46 : vector<8x128xf32>
    %48 = arith.mulf %33, %47 : vector<8x128xf32>
    %cst_24 = arith.constant -1.17916031E-7 : f32
    %49 = vector.broadcast %cst_24 : f32 to vector<8x128xf32>
    %50 = arith.mulf %49, %34 : vector<8x128xf32>
    %cst_25 = arith.constant 2.35479656E-5 : f32
    %51 = vector.broadcast %cst_25 : f32 to vector<8x128xf32>
    %52 = arith.addf %50, %51 : vector<8x128xf32>
    %53 = arith.mulf %52, %34 : vector<8x128xf32>
    %cst_26 = arith.constant 0.00101796258 : f32
    %54 = vector.broadcast %cst_26 : f32 to vector<8x128xf32>
    %55 = arith.addf %53, %54 : vector<8x128xf32>
    %56 = arith.mulf %55, %34 : vector<8x128xf32>
    %cst_27 = arith.constant 0.0140704699 : f32
    %57 = vector.broadcast %cst_27 : f32 to vector<8x128xf32>
    %58 = arith.addf %56, %57 : vector<8x128xf32>
    %59 = arith.mulf %58, %34 : vector<8x128xf32>
    %cst_28 = arith.constant 0.110985048 : f32
    %60 = vector.broadcast %cst_28 : f32 to vector<8x128xf32>
    %61 = arith.addf %59, %60 : vector<8x128xf32>
    %62 = arith.mulf %61, %34 : vector<8x128xf32>
    %cst_29 = arith.constant 0.497469246 : f32
    %63 = vector.broadcast %cst_29 : f32 to vector<8x128xf32>
    %64 = arith.addf %62, %63 : vector<8x128xf32>
    %65 = arith.mulf %64, %34 : vector<8x128xf32>
    %cst_30 = arith.constant 1.000000e+00 : f32
    %66 = vector.broadcast %cst_30 : f32 to vector<8x128xf32>
    %67 = arith.addf %65, %66 : vector<8x128xf32>
    %68 = tpu.reciprocal %67 {approx = true} : vector<8x128xf32> -> vector<8x128xf32>
    %69 = arith.mulf %48, %68 : vector<8x128xf32>
    %cst_31 = arith.constant 1.000000e+00 : f32
    %70 = vector.broadcast %cst_31 : f32 to vector<8x128xf32>
    %71 = arith.addf %70, %69 : vector<8x128xf32>
    %72 = arith.mulf %27, %71 : vector<8x128xf32>
    %73 = arith.truncf %72 : vector<8x128xf32> to vector<8x128xbf16>
    %c0_32 = arith.constant 0 : index
    %c0_33 = arith.constant 0 : index
    %74 = vector.load %arg6[%c0_32, %c0_33] : memref<128x32xbf16, #tpu.memory_space<vmem>>, vector<128x32xbf16>
    %cst_34 = arith.constant dense<0.000000e+00> : vector<8x32xf32>
    %75 = tpu.matmul %73, %74, %cst_34 {dimension_numbers = #tpu.dot_dimension_numbers<[1], [0], [0], [1], [0, 0, 1, 1], [], []>} : vector<8x128xbf16>, vector<128x32xbf16>, vector<8x32xf32> -> vector<8x32xf32>
    %76 = arith.addf %6, %75 : vector<8x32xf32>
    %cst_35 = arith.constant dense<0.000000e+00> : vector<8xf32>
    %77 = vector.multi_reduction <add>, %76, %cst_35 [1] : vector<8x32xf32> to vector<8xf32>
    %78 = vector.shape_cast %77 : vector<8xf32> to vector<8x1xf32>
    %cst_36 = arith.constant 3.200000e+01 : f32
    %79 = vector.broadcast %cst_36 : f32 to vector<8x1xf32>
    %80 = arith.divf %78, %79 : vector<8x1xf32>
    %81 = vector.broadcast %80 : vector<8x1xf32> to vector<8x32xf32>
    %82 = arith.subf %76, %81 : vector<8x32xf32>
    %83 = arith.mulf %82, %82 : vector<8x32xf32>
    %cst_37 = arith.constant dense<0.000000e+00> : vector<8xf32>
    %84 = vector.multi_reduction <add>, %83, %cst_37 [1] : vector<8x32xf32> to vector<8xf32>
    %85 = vector.shape_cast %84 : vector<8xf32> to vector<8x1xf32>
    %cst_38 = arith.constant 3.200000e+01 : f32
    %86 = vector.broadcast %cst_38 : f32 to vector<8x1xf32>
    %87 = arith.divf %85, %86 : vector<8x1xf32>
    %cst_39 = arith.constant 9.99999974E-6 : f32
    %88 = vector.broadcast %cst_39 : f32 to vector<8x1xf32>
    %89 = arith.addf %87, %88 : vector<8x1xf32>
    %90 = math.rsqrt %89 : vector<8x1xf32>
    %91 = vector.broadcast %90 : vector<8x1xf32> to vector<8x32xf32>
    %92 = arith.mulf %82, %91 : vector<8x32xf32>
    %cst_40 = arith.constant 1.000000e+00 : f32
    %93 = vector.broadcast %cst_40 : f32 to vector<8x32xf32>
    %94 = arith.mulf %92, %93 : vector<8x32xf32>
    %95 = arith.truncf %94 : vector<8x32xf32> to vector<8x32xbf16>
    %c0_41 = arith.constant 0 : index
    %c0_42 = arith.constant 0 : index
    %c0_43 = arith.constant 0 : index
    %96 = vector.load %arg7[%c0_41, %c0_42, %c0_43] : memref<1x8x32xbf16, #tpu.memory_space<vmem>>, vector<1x8x32xbf16>
    %97 = vector.shape_cast %96 : vector<1x8x32xbf16> to vector<8x32xbf16>
    %98 = vector.shape_cast %95 : vector<8x32xbf16> to vector<1x8x32xbf16>
    tpu.vector_store %arg7[%c0_41, %c0_42, %c0_43], %98 {strides = array<i32>} : memref<1x8x32xbf16, #tpu.memory_space<vmem>>, vector<1x8x32xbf16>,
    return
  }
  func.func @transform_0(%arg0: i32, %arg1: i32) -> (i32, i32, i32) {
    %c0_i32 = arith.constant 0 : i32
    %c0_i32_0 = arith.constant 0 : i32
    return %arg0, %arg1, %c0_i32 : i32, i32, i32
  }
  func.func @transform_1(%arg0: i32, %arg1: i32) -> (i32, i32, i32) {
    %c0_i32 = arith.constant 0 : i32
    %c0_i32_0 = arith.constant 0 : i32
    return %arg0, %arg1, %c0_i32 : i32, i32, i32
  }
  func.func @transform_2(%arg0: i32, %arg1: i32) -> (i32, i32) {
    %c0_i32 = arith.constant 0 : i32
    %c0_i32_0 = arith.constant 0 : i32
    %c0_i32_1 = arith.constant 0 : i32
    return %c0_i32, %c0_i32_0 : i32, i32
  }
  func.func @transform_3(%arg0: i32, %arg1: i32) -> (i32, i32) {
    %c0_i32 = arith.constant 0 : i32
    %c0_i32_0 = arith.constant 0 : i32
    %c0_i32_1 = arith.constant 0 : i32
    return %c0_i32, %c0_i32_0 : i32, i32
  }
  func.func @transform_4(%arg0: i32, %arg1: i32) -> (i32, i32) {
    %c0_i32 = arith.constant 0 : i32
    %c0_i32_0 = arith.constant 0 : i32
    %c0_i32_1 = arith.constant 0 : i32
    return %c0_i32, %c0_i32_0 : i32, i32
  }
  func.func @transform_5(%arg0: i32, %arg1: i32) -> (i32, i32, i32) {
    %c0_i32 = arith.constant 0 : i32
    %c0_i32_0 = arith.constant 0 : i32
    return %arg0, %arg1, %c0_i32 : i32, i32, i32
  }
}

module attributes {stable_mosaic.version = 11 : i64} {
  func.func @_post_attn_mlp_kernel(%arg0: i32, %arg1: i32, %arg2: memref<1x8x32xf32, #tpu.memory_space<vmem>>, %arg3: memref<1x8x32xbf16, #tpu.memory_space<vmem>>, %arg4: memref<32x32xbf16, #tpu.memory_space<vmem>>, %arg5: memref<32x128xbf16, #tpu.memory_space<vmem>>, %arg6: memref<128x32xbf16, #tpu.memory_space<vmem>>, %arg7: memref<1x8x32xf32, #tpu.memory_space<vmem>>) attributes {dimension_semantics = [#tpu.dimension_semantics<parallel>, #tpu.dimension_semantics<parallel>], iteration_bounds = array<i64: 2, 1>, scalar_prefetch = 0 : i64, scratch_operands = 0 : i64, tpu.core_type = #tpu.core_type<tc>, window_params = [{transform_indices = @transform_0, window_bounds = array<i64: 1, 8, 32>}, {transform_indices = @transform_1, window_bounds = array<i64: 1, 8, 32>}, {pipeline_mode = #tpu.pipeline_mode<synchronous>, transform_indices = @transform_2, window_bounds = array<i64: 32, 32>}, {pipeline_mode = #tpu.pipeline_mode<synchronous>, transform_indices = @transform_3, window_bounds = array<i64: 32, 128>}, {pipeline_mode = #tpu.pipeline_mode<synchronous>, transform_indices = @transform_4, window_bounds = array<i64: 128, 32>}, {transform_indices = @transform_5, window_bounds = array<i64: 1, 8, 32>}]} {
    %c0 = arith.constant 0 : index
    %c0_0 = arith.constant 0 : index
    %c0_1 = arith.constant 0 : index
    %0 = vector.load %arg2[%c0, %c0_0, %c0_1] : memref<1x8x32xf32, #tpu.memory_space<vmem>>, vector<1x8x32xf32>
    %1 = vector.shape_cast %0 : vector<1x8x32xf32> to vector<8x32xf32>
    %c0_2 = arith.constant 0 : index
    %c0_3 = arith.constant 0 : index
    %c0_4 = arith.constant 0 : index
    %2 = vector.load %arg3[%c0_2, %c0_3, %c0_4] : memref<1x8x32xbf16, #tpu.memory_space<vmem>>, vector<1x8x32xbf16>
    %3 = vector.shape_cast %2 : vector<1x8x32xbf16> to vector<8x32xbf16>
    %c0_5 = arith.constant 0 : index
    %c0_6 = arith.constant 0 : index
    %4 = vector.load %arg4[%c0_5, %c0_6] : memref<32x32xbf16, #tpu.memory_space<vmem>>, vector<32x32xbf16>
    %cst = arith.constant dense<0.000000e+00> : vector<8x32xf32>
    %5 = tpu.matmul %3, %4, %cst {dimension_numbers = #tpu.dot_dimension_numbers<[1], [0], [0], [1], [0, 0, 1, 1], [], []>} : vector<8x32xbf16>, vector<32x32xbf16>, vector<8x32xf32> -> vector<8x32xf32>
    %6 = arith.addf %1, %5 : vector<8x32xf32>
    %cst_7 = arith.constant dense<0.000000e+00> : vector<8xf32>
    %7 = vector.multi_reduction <add>, %6, %cst_7 [1] : vector<8x32xf32> to vector<8xf32>
    %8 = vector.shape_cast %7 : vector<8xf32> to vector<8x1xf32>
    %cst_8 = arith.constant 3.200000e+01 : f32
    %9 = vector.broadcast %cst_8 : f32 to vector<8x1xf32>
    %10 = arith.divf %8, %9 : vector<8x1xf32>
    %11 = vector.broadcast %10 : vector<8x1xf32> to vector<8x32xf32>
    %12 = arith.subf %6, %11 : vector<8x32xf32>
    %13 = arith.mulf %12, %12 : vector<8x32xf32>
    %cst_9 = arith.constant dense<0.000000e+00> : vector<8xf32>
    %14 = vector.multi_reduction <add>, %13, %cst_9 [1] : vector<8x32xf32> to vector<8xf32>
    %15 = vector.shape_cast %14 : vector<8xf32> to vector<8x1xf32>
    %cst_10 = arith.constant 3.200000e+01 : f32
    %16 = vector.broadcast %cst_10 : f32 to vector<8x1xf32>
    %17 = arith.divf %15, %16 : vector<8x1xf32>
    %cst_11 = arith.constant 9.99999974E-6 : f32
    %18 = vector.broadcast %cst_11 : f32 to vector<8x1xf32>
    %19 = arith.addf %17, %18 : vector<8x1xf32>
    %20 = math.rsqrt %19 : vector<8x1xf32>
    %21 = vector.broadcast %20 : vector<8x1xf32> to vector<8x32xf32>
    %22 = arith.mulf %12, %21 : vector<8x32xf32>
    %23 = arith.truncf %22 : vector<8x32xf32> to vector<8x32xbf16>
    %c0_12 = arith.constant 0 : index
    %c0_13 = arith.constant 0 : index
    %24 = vector.load %arg5[%c0_12, %c0_13] : memref<32x128xbf16, #tpu.memory_space<vmem>>, vector<32x128xbf16>
    %cst_14 = arith.constant dense<0.000000e+00> : vector<8x128xf32>
    %25 = tpu.matmul %23, %24, %cst_14 {dimension_numbers = #tpu.dot_dimension_numbers<[1], [0], [0], [1], [0, 0, 1, 1], [], []>} : vector<8x32xbf16>, vector<32x128xbf16>, vector<8x128xf32> -> vector<8x128xf32>
    %cst_15 = arith.constant 5.000000e-01 : f32
    %26 = vector.broadcast %cst_15 : f32 to vector<8x128xf32>
    %27 = arith.mulf %26, %25 : vector<8x128xf32>
    %cst_16 = arith.constant 0.707106769 : f32
    %28 = vector.broadcast %cst_16 : f32 to vector<8x128xf32>
    %29 = arith.mulf %25, %28 : vector<8x128xf32>
    %cst_17 = arith.constant -4.000000e+00 : f32
    %cst_18 = arith.constant 4.000000e+00 : f32
    %30 = vector.broadcast %cst_17 : f32 to vector<8x128xf32>
    %31 = arith.maximumf %30, %29 : vector<8x128xf32>
    %32 = vector.broadcast %cst_18 : f32 to vector<8x128xf32>
    %33 = arith.minimumf %32, %31 : vector<8x128xf32>
    %34 = arith.mulf %33, %33 : vector<8x128xf32>
    %cst_19 = arith.constant 2.29050653E-4 : f32
    %35 = vector.broadcast %cst_19 : f32 to vector<8x128xf32>
    %36 = arith.mulf %35, %34 : vector<8x128xf32>
    %cst_20 = arith.constant 0.00340829091 : f32
    %37 = vector.broadcast %cst_20 : f32 to vector<8x128xf32>
    %38 = arith.addf %36, %37 : vector<8x128xf32>
    %39 = arith.mulf %38, %34 : vector<8x128xf32>
    %cst_21 = arith.constant 0.0509556942 : f32
    %40 = vector.broadcast %cst_21 : f32 to vector<8x128xf32>
    %41 = arith.addf %39, %40 : vector<8x128xf32>
    %42 = arith.mulf %41, %34 : vector<8x128xf32>
    %cst_22 = arith.constant 0.185208321 : f32
    %43 = vector.broadcast %cst_22 : f32 to vector<8x128xf32>
    %44 = arith.addf %42, %43 : vector<8x128xf32>
    %45 = arith.mulf %44, %34 : vector<8x128xf32>
    %cst_23 = arith.constant 1.12837911 : f32
    %46 = vector.broadcast %cst_23 : f32 to vector<8x128xf32>
    %47 = arith.addf %45, %46 : vector<8x128xf32>
    %48 = arith.mulf %33, %47 : vector<8x128xf32>
    %cst_24 = arith.constant -1.17916031E-7 : f32
    %49 = vector.broadcast %cst_24 : f32 to vector<8x128xf32>
    %50 = arith.mulf %49, %34 : vector<8x128xf32>
    %cst_25 = arith.constant 2.35479656E-5 : f32
    %51 = vector.broadcast %cst_25 : f32 to vector<8x128xf32>
    %52 = arith.addf %50, %51 : vector<8x128xf32>
    %53 = arith.mulf %52, %34 : vector<8x128xf32>
    %cst_26 = arith.constant 0.00101796258 : f32
    %54 = vector.broadcast %cst_26 : f32 to vector<8x128xf32>
    %55 = arith.addf %53, %54 : vector<8x128xf32>
    %56 = arith.mulf %55, %34 : vector<8x128xf32>
    %cst_27 = arith.constant 0.0140704699 : f32
    %57 = vector.broadcast %cst_27 : f32 to vector<8x128xf32>
    %58 = arith.addf %56, %57 : vector<8x128xf32>
    %59 = arith.mulf %58, %34 : vector<8x128xf32>
    %cst_28 = arith.constant 0.110985048 : f32
    %60 = vector.broadcast %cst_28 : f32 to vector<8x128xf32>
    %61 = arith.addf %59, %60 : vector<8x128xf32>
    %62 = arith.mulf %61, %34 : vector<8x128xf32>
    %cst_29 = arith.constant 0.497469246 : f32
    %63 = vector.broadcast %cst_29 : f32 to vector<8x128xf32>
    %64 = arith.addf %62, %63 : vector<8x128xf32>
    %65 = arith.mulf %64, %34 : vector<8x128xf32>
    %cst_30 = arith.constant 1.000000e+00 : f32
    %66 = vector.broadcast %cst_30 : f32 to vector<8x128xf32>
    %67 = arith.addf %65, %66 : vector<8x128xf32>
    %68 = tpu.reciprocal %67 {approx = true} : vector<8x128xf32> -> vector<8x128xf32>
    %69 = arith.mulf %48, %68 : vector<8x128xf32>
    %cst_31 = arith.constant 1.000000e+00 : f32
    %70 = vector.broadcast %cst_31 : f32 to vector<8x128xf32>
    %71 = arith.addf %70, %69 : vector<8x128xf32>
    %72 = arith.mulf %27, %71 : vector<8x128xf32>
    %73 = arith.truncf %72 : vector<8x128xf32> to vector<8x128xbf16>
    %c0_32 = arith.constant 0 : index
    %c0_33 = arith.constant 0 : index
    %74 = vector.load %arg6[%c0_32, %c0_33] : memref<128x32xbf16, #tpu.memory_space<vmem>>, vector<128x32xbf16>
    %cst_34 = arith.constant dense<0.000000e+00> : vector<8x32xf32>
    %75 = tpu.matmul %73, %74, %cst_34 {dimension_numbers = #tpu.dot_dimension_numbers<[1], [0], [0], [1], [0, 0, 1, 1], [], []>} : vector<8x128xbf16>, vector<128x32xbf16>, vector<8x32xf32> -> vector<8x32xf32>
    %76 = arith.addf %6, %75 : vector<8x32xf32>
    %c0_35 = arith.constant 0 : index
    %c0_36 = arith.constant 0 : index
    %c0_37 = arith.constant 0 : index
    %77 = vector.load %arg7[%c0_35, %c0_36, %c0_37] : memref<1x8x32xf32, #tpu.memory_space<vmem>>, vector<1x8x32xf32>
    %78 = vector.shape_cast %77 : vector<1x8x32xf32> to vector<8x32xf32>
    %79 = vector.shape_cast %76 : vector<8x32xf32> to vector<1x8x32xf32>
    tpu.vector_store %arg7[%c0_35, %c0_36, %c0_37], %79 {strides = array<i32>} : memref<1x8x32xf32, #tpu.memory_space<vmem>>, vector<1x8x32xf32>,
    return
  }
  func.func @transform_0(%arg0: i32, %arg1: i32) -> (i32, i32, i32) {
    %c0_i32 = arith.constant 0 : i32
    %c0_i32_0 = arith.constant 0 : i32
    return %arg0, %arg1, %c0_i32 : i32, i32, i32
  }
  func.func @transform_1(%arg0: i32, %arg1: i32) -> (i32, i32, i32) {
    %c0_i32 = arith.constant 0 : i32
    %c0_i32_0 = arith.constant 0 : i32
    return %arg0, %arg1, %c0_i32 : i32, i32, i32
  }
  func.func @transform_2(%arg0: i32, %arg1: i32) -> (i32, i32) {
    %c0_i32 = arith.constant 0 : i32
    %c0_i32_0 = arith.constant 0 : i32
    %c0_i32_1 = arith.constant 0 : i32
    return %c0_i32, %c0_i32_0 : i32, i32
  }
  func.func @transform_3(%arg0: i32, %arg1: i32) -> (i32, i32) {
    %c0_i32 = arith.constant 0 : i32
    %c0_i32_0 = arith.constant 0 : i32
    %c0_i32_1 = arith.constant 0 : i32
    return %c0_i32, %c0_i32_0 : i32, i32
  }
  func.func @transform_4(%arg0: i32, %arg1: i32) -> (i32, i32) {
    %c0_i32 = arith.constant 0 : i32
    %c0_i32_0 = arith.constant 0 : i32
    %c0_i32_1 = arith.constant 0 : i32
    return %c0_i32, %c0_i32_0 : i32, i32
  }
  func.func @transform_5(%arg0: i32, %arg1: i32) -> (i32, i32, i32) {
    %c0_i32 = arith.constant 0 : i32
    %c0_i32_0 = arith.constant 0 : i32
    return %arg0, %arg1, %c0_i32 : i32, i32, i32
  }
}

module attributes {stable_mosaic.version = 11 : i64} {
  func.func @_head_kernel(%arg0: i32, %arg1: i32, %arg2: i32, %arg3: memref<1x8x32xbf16, #tpu.memory_space<vmem>>, %arg4: memref<32x64xbf16, #tpu.memory_space<vmem>>, %arg5: memref<1x8x64xf32, #tpu.memory_space<vmem>>) attributes {dimension_semantics = [#tpu.dimension_semantics<parallel>, #tpu.dimension_semantics<parallel>, #tpu.dimension_semantics<parallel>], iteration_bounds = array<i64: 1, 2, 1>, scalar_prefetch = 0 : i64, scratch_operands = 0 : i64, tpu.core_type = #tpu.core_type<tc>, window_params = [{transform_indices = @transform_0, window_bounds = array<i64: 1, 8, 32>}, {transform_indices = @transform_1, window_bounds = array<i64: 32, 64>}, {transform_indices = @transform_2, window_bounds = array<i64: 1, 8, 64>}]} {
    %c0 = arith.constant 0 : index
    %c0_0 = arith.constant 0 : index
    %c0_1 = arith.constant 0 : index
    %0 = vector.load %arg3[%c0, %c0_0, %c0_1] : memref<1x8x32xbf16, #tpu.memory_space<vmem>>, vector<1x8x32xbf16>
    %1 = vector.shape_cast %0 : vector<1x8x32xbf16> to vector<8x32xbf16>
    %c0_2 = arith.constant 0 : index
    %c0_3 = arith.constant 0 : index
    %2 = vector.load %arg4[%c0_2, %c0_3] : memref<32x64xbf16, #tpu.memory_space<vmem>>, vector<32x64xbf16>
    %cst = arith.constant dense<0.000000e+00> : vector<8x64xf32>
    %3 = tpu.matmul %1, %2, %cst {dimension_numbers = #tpu.dot_dimension_numbers<[1], [0], [0], [1], [0, 0, 1, 1], [], []>} : vector<8x32xbf16>, vector<32x64xbf16>, vector<8x64xf32> -> vector<8x64xf32>
    %c0_4 = arith.constant 0 : index
    %c0_5 = arith.constant 0 : index
    %c0_6 = arith.constant 0 : index
    %4 = vector.load %arg5[%c0_4, %c0_5, %c0_6] : memref<1x8x64xf32, #tpu.memory_space<vmem>>, vector<1x8x64xf32>
    %5 = vector.shape_cast %4 : vector<1x8x64xf32> to vector<8x64xf32>
    %6 = vector.shape_cast %3 : vector<8x64xf32> to vector<1x8x64xf32>
    tpu.vector_store %arg5[%c0_4, %c0_5, %c0_6], %6 {strides = array<i32>} : memref<1x8x64xf32, #tpu.memory_space<vmem>>, vector<1x8x64xf32>,
    return
  }
  func.func @transform_0(%arg0: i32, %arg1: i32, %arg2: i32) -> (i32, i32, i32) {
    %c0_i32 = arith.constant 0 : i32
    %c0_i32_0 = arith.constant 0 : i32
    return %arg1, %arg2, %c0_i32 : i32, i32, i32
  }
  func.func @transform_1(%arg0: i32, %arg1: i32, %arg2: i32) -> (i32, i32) {
    %c0_i32 = arith.constant 0 : i32
    %c0_i32_0 = arith.constant 0 : i32
    return %c0_i32, %arg0 : i32, i32
  }
  func.func @transform_2(%arg0: i32, %arg1: i32, %arg2: i32) -> (i32, i32, i32) {
    %c0_i32 = arith.constant 0 : i32
    return %arg1, %arg2, %arg0 : i32, i32, i32
  }
}

</mosaic_0001>

<bundles_post_ra>
// kernel: tpu_custom_call.1
= control target key start
LH: loop header
LB: loop body
LE: loop exit
PB: predicated region body
PF: predicated region fallthrough
CT: control target
= control target key end

     0   :  { %6 = vsyncpa [#allocation3], 0  ;;  %s304_s0 = inlined_call_operand.hbm [shape: f32[8,128], index: 0, kind: input, shape index: {}]   ;;  %s305_s1 = inlined_call_operand.hbm [shape: f32[8,128], index: 1, kind: output, shape index: {}]  }
   0x1   :  { %7 = vsyncpa [#allocation4], 0  ;;  %s257_s6 = smov 0  }
   0x2 LB: > { %s144_s7 = sadd.s32 4294967295, %s243_s6   ;;  %p145_p0 = scmp.ge.s32.totalorder %s243_s6, 1  ;;  %s243_s6 = sphi %s257_s6, %s13_s6  }
   0x3   : > { %p60_p1 = scmp.lt.s32.totalorder %s243_s6, 3  ;;  %p269_p3 = scmp.eq.s32.totalorder %s144_s7, 0 }
   0x4   : > { %s245_s10 = smov [#allocation2]  }
   0x5   : > { %p265_p2 = pnand %p145_p0, %p60_p1  ;;  %s73_s11 = sshll.u32 %s245_s10, 4  ;;  %s74_s11 = int_to_ptr.vmem [resolvable:$true] %s73_s11 }
   0x6   : > { %s190_s12 = scalar_lea.vmem %s74_s11, 128  ;;  %p198_p10 = scmp.lt.s32.totalorder %s74_s11, %s74_s11 }
   0x7   : > { %p161_p4 = pneg %p265_p2  ;;  %p191_p7 = scmp.ne.s32.totalorder %s74_s11, %s190_s12 }
   0x8   : > { %p199_p11 = scmp.lt.s32.totalorder %s190_s12, %s190_s12 }
   0x9   : > { %p162_p5 = pnand %p269_p3, %p161_p4 }
   0xa   : > { %p200_p12 = por %p199_p11, %p198_p10 }
   0xb   : > { %p181_p6 = pneg %p162_p5 }
   0xd   : > { %p193_p8 = pnand %p191_p7, %p181_p6 }
   0xf   : > { %p194_p9 = pneg %p193_p8 }
  0x11   : > { %p201_p13 = pnand %p200_p12, %p194_p9 }
  0x13   : > { %204 = shalt.err (!%p201_p13)
}
  0x14   : > { %164 = dma.hbm_to_vmem [thread:$0]  (!%p162_p5), %s304_s0, 128, %s74_s11, [#allocation3]  }
  0x15   : > { %86 = sbr.rel (%p265_p2) target bundleno = 42 (0x2a), region = 24 }
  0x1a   : > { %234 = dma.done.wait (%p269_p3), [#allocation3], 128  }
  0x1b   : > { %236 = vsyncadd (%p269_p3), [#allocation3], 4294967168  ;;  %s246_s15 = smov [#allocation5]   ;;  %p286_p0 = scmp.eq.s32.totalorder %s144_s7, 1  ;;  %v96_v0 = vld [vmem:[#allocation2] sm:$0xff] }
  0x1c   : > { %s105_s16 = sshll.u32 %s246_s15, 4  ;;  %97 = vst [vmem:[#allocation5] sm:$0xff] %v96_v0  ;;  %s106_s16 = int_to_ptr.vmem [resolvable:$true] %s105_s16 }
  0x1d   : > { %s205_s18 = scalar_lea.vmem %s106_s16, 128  ;;  %p212_p5 = scmp.lt.s32.totalorder %s106_s16, %s106_s16 }
  0x1e   : > { %p206_p1 = scmp.ne.s32.totalorder %s106_s16, %s205_s18  ;;  %p213_p6 = scmp.lt.s32.totalorder %s205_s18, %s205_s18 }
  0x20   : > { %p207_p2 = pnand %p206_p1, %p286_p0  ;;  %p214_p7 = por %p213_p6, %p212_p5 }
  0x22   : > { %p208_p4 = pneg %p207_p2 }
  0x24   : > { %p215_p8 = pnand %p214_p7, %p208_p4 }
  0x26   : > { %218 = shalt.err (!%p215_p8)
}
  0x27   : > { %158 = dma.vmem_to_hbm [thread:$0]  (%p286_p0), %s106_s16, 128, %s305_s1, [#allocation4]  }
  0x28   : > { %238 = dma.done.wait (%p286_p0), [#allocation4], 128  }
  0x29   : > { %240 = vsyncadd (%p286_p0), [#allocation4], 4294967168 }
  0x2a PF: > { %s13_s6 = sadd.s32 1, %s243_s6  }
  0x2b   : > { %p10_p3 = scmp.ge.s32.totalorder %s13_s6, 4  }
  0x2d   :  { %12 = sbr.rel (!%p10_p3) target bundleno = 2 (0x2), region = 53 }
  0x32   :  { %118 = vsyncpa [#allocation3], 1 }
  0x33   :  { %120 = vsyncpa [#allocation3 + $0x1], 1 }
  0x34   :  { %121 = vsyncpa [#allocation4], 1 }
  0x35   :  { %123 = vsyncpa [#allocation4 + $0x1], 1 }

// kernel: mup_gpt2_forward.7
= control target key start
LH: loop header
LB: loop body
LE: loop exit
PB: predicated region body
PF: predicated region fallthrough
CT: control target
= control target key end

     0   :  { %s722_s15 = smov 0   ;;  %s724_s16 = smov 0   ;;  %s793_s0 = inlined_call_operand.vmem [shape: f32[2,8,32], index: 0, kind: input, shape index: {}]   ;;  %s794_s1 = inlined_call_operand.vmem [shape: bf16[32,96], index: 1, kind: input, shape index: {}]   ;;  %s795_s2 = inlined_call_operand.vmem [shape: bf16[2,4,8,8], index: 2, kind: output, shape index: {0}]   ;;  %s796_s3 = inlined_call_operand.vmem [shape: bf16[2,4,8,8], index: 3, kind: output, shape index: {1}]   ;;  %s797_s4 = inlined_call_operand.vmem [shape: bf16[2,4,8,8], index: 4, kind: output, shape index: {2}]  }
   0x1   :  { %s726_s17 = smov 0  }
   0x2 LB: > { %s27_s18 = sadd.s32 1, %s678_s16  ;;  %p581_p0 = scmp.ge.s32.totalorder %s682_s17, 1  ;;  %s682_s17 = sphi %s726_s17, %s15_s17   ;;  %s678_s16 = sphi %s724_s16, %s799_s16   ;;  %s674_s15 = sphi %s722_s15, %s798_s15  }
   0x3   : > { %p29_p1 = scmp.ge.s32.totalorder %s27_s18, 2  ;;  %p189_p2 = scmp.lt.s32.totalorder %s682_s17, 3 }
   0x5   : > { %s801_s18 = smov (%p29_p1, %s27_s18), 0  ;;  %p190_p3 = pnand %p581_p0, %p189_p2 }
   0x6   : > { %p236_p4 = scmp.lt.s32.totalorder (!%p190_p3), %s674_s15, 1  ;;  %s686_s5 = smov (!%p190_p3), 120  }
   0x7   : > { %193 = sbr.rel (%p190_p3) target bundleno = 665 (0x299), region = 28  ;;  %s687_s6 = smov (!%p190_p3), 96  }
   0x8   : > { %s688_s7 = smov (!%p190_p3), 72   ;;  %s689_s8 = smov (!%p190_p3), 64  }
   0x9   : > { %s690_s9 = smov (!%p190_p3), 88   ;;  %s691_s10 = smov (!%p190_p3), 56  }
   0xa   : > { %s692_s11 = smov (!%p190_p3), 112   ;;  %s693_s12 = smov (!%p190_p3), 80  }
   0xb   : > { %s694_s13 = smov (!%p190_p3), 48   ;;  %s695_s14 = smov (!%p190_p3), 104  }
   0xc   : > { %s803_s15 = smov (!%p236_p4, %s674_s15), 1  ;;  %vm269_vm0 = vcmask 261120   ;;  %v656_v7 = vld [vmem:[%s794_s1 + $0x8] sm:$0xff]   ;;  %v684_v8 = vmov 0.0   ;;  %vm685_vm1 = vmmov 0   ;;  %v657_v9 = vld [vmem:[%s794_s1] sm:$0xff]  }
   0xd   : > { %s582_s19 = sshll.u32 %s803_s15, 3  ;;  %611 = vmatprep.subr.bf16.mxu0 %v684_v8  ;;  %615 = vmatprep.mubr.msk.bf16.mxu0 %vm685_vm1, %v684_v8  ;;  %s752_s27 = sshll.u32 %s803_s15, 4  ;;  %vm345_vm2 = vcmask 60416  }
   0xe   : > { %s242_s22 = scalar_lea.vmem %s793_s0, %s582_s19  ;;  %612 = vmatpush3.bf16.msra.mxu0 %v656_v7  ;;  %s758_s30 = scalar_lea.vmem %s795_s2, %s752_s27 }
   0xf   : > { %v268_v0 = vld [vmem:[%s242_s22] sm:$0xff]  ;;  %613 = vmatprep.subr.bf16.mxu0 %v684_v8  ;;  %s696_s15 = smov 40   ;;  %s258_s21 = scalar_lea.vmem %s796_s3, %s752_s27 }
  0x10   : > { %v270_v1 = vsel %vm269_vm0, %v268_v0, 0.0  ;;  %s266_s24 = scalar_lea.vmem %s797_s4, %s752_s27 }
  0x11   : > { %271 = vadd.xlane.f32.xlu0 %v270_v1 }
  0x12   : > { %614 = vmatpush3.bf16.msra.mxu0 %v657_v9 }
  0x9a   : > { %v272_v2 = vpop.xlane.xlu0 %271 }
  0x9b   : > { %v274_v3 = vmul.f32 0.03125, %v272_v2 }
  0x9d   : > { %v275_v4 = vsub.f32 %v268_v0, %v274_v3 }
  0x9f   : > { %v276_v5 = vmul.f32 %v275_v4, %v275_v4 }
  0xa1   : > { %v277_v6 = vsel %vm269_vm0, %v276_v5, 0.0 }
  0xa2   : > { %278 = vadd.xlane.f32.xlu0 %v277_v6 }
 0x12b   : > { %v279_v10 = vpop.xlane.xlu0 %278 }
 0x12c   : > { %v280_v11 = vmul.f32 0.03125, %v279_v10 }
 0x12e   : > { %v281_v12 = vadd.f32 1e-05, %v280_v11 }
 0x130   : > { %658 = vrsqrt.f32 %v281_v12 }
 0x13d   : > { %v659_v13 = vpop.eup %658 }
 0x13e   : > { %v283_v14 = vmul.f32 %v659_v13, %v275_v4 }
 0x140   : > { %v284_v15 = vpack.c.bf16 %v283_v14, %v283_v14 }
 0x142   : > { %616 = vmatmul.mubr.msk.bf16.vlgmr.msra.gmra.mxu0 %vm269_vm0, %v284_v15 }
 0x202   : > { %v338_v16 = vpop.f32.mrf.mxu0 }
 0x203   : > { %v344_v17 = vpack.c.bf16 %v338_v16, %v338_v16 }
 0x204   : > { %v617_v18 = vpop.f32.mrf.mxu0 }
 0x205   : > { %358 = vrot.lane.b32.xlu0 %v344_v17, %s686_s5  ;;  %350 = vrot.lane.b32.xlu1 %v344_v17, %s687_s6  ;;  %346 = vst.msk [vmem:[%s758_s30] sm:$0xf] %vm345_vm2, %v344_v17 }
 0x206   : > { %v341_v19 = vpop.f32.mrf.mxu0 }
 0x208   : > { %v618_v20 = vpop.f32.mrf.mxu0 }
 0x209   : > { %393 = vrot.lane.b32.xlu0 %v344_v17, %s688_s7  ;;  %354 = vrot.lane.b32.xlu1 %v344_v17, %s689_s8 }
 0x20d   : > { %363 = vrot.lane.b32.xlu1 %v344_v17, %s690_s9 }
 0x211   : > { %368 = vrot.lane.b32.xlu1 %v344_v17, %s691_s10 }
 0x215   : > { %373 = vrot.lane.b32.xlu1 %v344_v17, %s692_s11 }
 0x219   : > { %378 = vrot.lane.b32.xlu1 %v344_v17, %s693_s12 }
 0x21d   : > { %383 = vrot.lane.b32.xlu1 %v344_v17, %s694_s13 }
 0x221   : > { %388 = vrot.lane.b32.xlu1 %v344_v17, %s695_s14 }
 0x225   : > { %398 = vrot.lane.b32.xlu1 %v344_v17, %s696_s15 }
 0x277   : > { %v359_v21 = vpop.permute.xlu0 %358  ;;  %v351_v22 = vpop.permute.xlu1 %350 }
 0x278   : > { %593 = vst.msk [vmem:[%s758_s30 + $0x4] sm:$0xf] %vm345_vm2, %v359_v21  ;;  %353 = vst.msk [vmem:[%s258_s21] sm:$0xf] %vm345_vm2, %v351_v22 }
 0x27b   : > { %v394_v23 = vpop.permute.xlu0 %393  ;;  %v355_v24 = vpop.permute.xlu1 %354 }
 0x27c   : > { %600 = vst.msk [vmem:[%s258_s21 + $0xc] sm:$0xf] %vm345_vm2, %v394_v23  ;;  %357 = vst.msk [vmem:[%s266_s24] sm:$0xf] %vm345_vm2, %v355_v24 }
 0x27f   : > { %v364_v25 = vpop.permute.xlu1 %363 }
 0x280   : > { %594 = vst.msk [vmem:[%s258_s21 + $0x4] sm:$0xf] %vm345_vm2, %v364_v25 }
 0x283   : > { %v369_v26 = vpop.permute.xlu1 %368 }
 0x284   : > { %595 = vst.msk [vmem:[%s266_s24 + $0x4] sm:$0xf] %vm345_vm2, %v369_v26 }
 0x287   : > { %v374_v27 = vpop.permute.xlu1 %373 }
 0x288   : > { %596 = vst.msk [vmem:[%s758_s30 + $0x8] sm:$0xf] %vm345_vm2, %v374_v27 }
 0x28b   : > { %v379_v28 = vpop.permute.xlu1 %378 }
 0x28c   : > { %597 = vst.msk [vmem:[%s258_s21 + $0x8] sm:$0xf] %vm345_vm2, %v379_v28 }
 0x28f   : > { %v384_v29 = vpop.permute.xlu1 %383 }
 0x290   : > { %598 = vst.msk [vmem:[%s266_s24 + $0x8] sm:$0xf] %vm345_vm2, %v384_v29 }
 0x293   : > { %v389_v30 = vpop.permute.xlu1 %388 }
 0x294   : > { %599 = vst.msk [vmem:[%s758_s30 + $0xc] sm:$0xf] %vm345_vm2, %v389_v30 }
 0x297   : > { %v399_v31 = vpop.permute.xlu1 %398 }
 0x298   : > { %601 = vst.msk [vmem:[%s266_s24 + $0xc] sm:$0xf] %vm345_vm2, %v399_v31 }
 0x299 PF: > { %s15_s17 = sadd.s32 1, %s682_s17   ;;  %s798_s15 = smov %s678_s16 }
 0x29a   : > { %p12_p5 = scmp.ge.s32.totalorder %s15_s17, 4   ;;  %s799_s16 = smov %s801_s18 }
 0x29c   :  { %14 = sbr.rel (!%p12_p5) target bundleno = 2 (0x2), region = 91 }

// kernel: mup_gpt2_forward.12
= control target key start
LH: loop header
LB: loop body
LE: loop exit
PB: predicated region body
PF: predicated region fallthrough
CT: control target
= control target key end

     0   :  { %s834_s18 = smov 0   ;;  %s836_s19 = smov 0   ;;  %s940_s0 = inlined_call_operand.vmem [shape: f32[2,8,32], index: 0, kind: input, shape index: {}]   ;;  %s941_s1 = inlined_call_operand.vmem [shape: bf16[2,8,32], index: 1, kind: input, shape index: {}]   ;;  %s942_s2 = inlined_call_operand.vmem [shape: bf16[32,32], index: 2, kind: input, shape index: {}]   ;;  %s943_s3 = inlined_call_operand.vmem [shape: bf16[32,128], index: 3, kind: input, shape index: {}]   ;;  %s944_s4 = inlined_call_operand.vmem [shape: bf16[128,32], index: 4, kind: input, shape index: {}]   ;;  %s945_s5 = inlined_call_operand.vmem [shape: bf16[2,8,32], index: 5, kind: output, shape index: {}]  }
   0x1   :  { %s838_s20 = smov 0  }
   0x2 LB: > { %s27_s21 = sadd.s32 1, %s796_s19  ;;  %p662_p0 = scmp.ge.s32.totalorder %s800_s20, 1  ;;  %s800_s20 = sphi %s838_s20, %s15_s20   ;;  %s796_s19 = sphi %s836_s19, %s947_s19   ;;  %s792_s18 = sphi %s834_s18, %s946_s18  }
   0x3   : > { %p29_p1 = scmp.ge.s32.totalorder %s27_s21, 2  ;;  %p219_p2 = scmp.lt.s32.totalorder %s800_s20, 3 }
   0x5   : > { %s949_s21 = smov (%p29_p1, %s27_s21), 0  ;;  %p220_p3 = pnand %p662_p0, %p219_p2 }
   0x6   : > { %p258_p4 = scmp.lt.s32.totalorder (!%p220_p3), %s792_s18, 1 }
   0x7   : > { %223 = sbr.rel (%p220_p3) target bundleno = 1269 (0x4f5), region = 40 }
   0xc   : > { %v760_v0 = vld [vmem:[%s942_s2 + $0x8] sm:$0xff]   ;;  %v802_v1 = vmov 0.0   ;;  %v761_v2 = vld [vmem:[%s942_s2] sm:$0xff]   ;;  %vm803_vm0 = vmmov 0   ;;  %s951_s18 = smov (!%p258_p4, %s792_s18), 1  ;;  %vm298_vm1 = vcmask 261120  }
   0xd   : > { %698 = vmatprep.subr.bf16.mxu1 %v802_v1  ;;  %714 = vmatprep.subr.bf16.mxu0 %v802_v1  ;;  %s664_s26 = sshll.u32 %s951_s18, 2  ;;  %s663_s30 = sshll.u32 %s951_s18, 3  ;;  %v762_v16 = vld [vmem:[%s943_s3 + $0x8] sm:$0xff]   ;;  %v763_v17 = vld [vmem:[%s943_s3] sm:$0xff]   ;;  %v764_v24 = vld [vmem:[%s944_s4 + $0x38] sm:$0xff]   ;;  %vm567_vm2 = vcmask 257024  }
   0xe   : > { %699 = vmatpush3.bf16.msra.mxu1 %v760_v0  ;;  %702 = vmatprep.mubr.msk.bf16.mxu1 %vm803_vm0, %v802_v1  ;;  %s271_s29 = scalar_lea.vmem %s941_s1, %s664_s26  ;;  %s264_s8 = scalar_lea.vmem %s940_s0, %s663_s30  ;;  %v765_v25 = vld [vmem:[%s944_s4 + $0x30] sm:$0xff]   ;;  %v766_v26 = vld [vmem:[%s944_s4 + $0x28] sm:$0xff]   ;;  %v767_v27 = vld [vmem:[%s944_s4 + $0x20] sm:$0xff]  }
   0xf   : > { %700 = vmatprep.subr.bf16.mxu1 %v802_v1  ;;  %730 = vmatprep.mubr.msk.bf16.mxu0 %vm803_vm0, %v802_v1  ;;  %v281_v3 = vld [vmem:[%s271_s29] sm:$0xf]  ;;  %v768_v28 = vld [vmem:[%s944_s4 + $0x18] sm:$0xff]   ;;  %v769_v29 = vld [vmem:[%s944_s4 + $0x10] sm:$0xff]   ;;  %s278_s11 = scalar_lea.vmem %s945_s5, %s664_s26 }
  0x10   : > { %v280_v4 = vld [vmem:[%s264_s8] sm:$0xff]  ;;  %715 = vmatpush3.bf16.msra.mxu0 %v764_v24  ;;  %v770_v30 = vld [vmem:[%s944_s4 + $0x8] sm:$0xff]  }
  0x11   : > { %716 = vmatprep.subr.bf16.mxu0 %v802_v1  ;;  %v771_v31 = vld [vmem:[%s944_s4] sm:$0xff]  }
  0x12   : > { %701 = vmatpush3.bf16.msra.mxu1 %v761_v2 }
  0x13   : > { %706 = vmatprep.subr.bf16.mxu1 %v802_v1 }
  0x14   : > { %717 = vmatpush3.bf16.msra.mxu0 %v765_v25 }
  0x15   : > { %703 = vmatmul.mubr.msk.bf16.vlgmr.msra.gmra.mxu1 %vm298_vm1, %v281_v3  ;;  %718 = vmatprep.subr.bf16.mxu0 %v802_v1 }
  0x16   : > { %710 = vmatprep.mubr.msk.bf16.mxu1 %vm803_vm0, %v802_v1  ;;  %707 = vmatpush3.bf16.msra.mxu1 %v762_v16 }
  0x17   : > { %708 = vmatprep.subr.bf16.mxu1 %v802_v1 }
  0x18   : > { %719 = vmatpush3.bf16.msra.mxu0 %v766_v26 }
  0x19   : > { %720 = vmatprep.subr.bf16.mxu0 %v802_v1 }
  0x1a   : > { %709 = vmatpush3.bf16.msra.mxu1 %v763_v17 }
  0x1c   : > { %721 = vmatpush3.bf16.msra.mxu0 %v767_v27 }
  0x1d   : > { %722 = vmatprep.subr.bf16.mxu0 %v802_v1 }
  0x20   : > { %723 = vmatpush3.bf16.msra.mxu0 %v768_v28 }
  0x21   : > { %724 = vmatprep.subr.bf16.mxu0 %v802_v1 }
  0x24   : > { %725 = vmatpush3.bf16.msra.mxu0 %v769_v29 }
  0x25   : > { %726 = vmatprep.subr.bf16.mxu0 %v802_v1 }
  0x28   : > { %727 = vmatpush3.bf16.msra.mxu0 %v770_v30 }
  0x29   : > { %728 = vmatprep.subr.bf16.mxu0 %v802_v1 }
  0x2c   : > { %729 = vmatpush3.bf16.msra.mxu0 %v771_v31 }
  0xd5   : > { %v336_v5 = vpop.f32.mrf.mxu1 }
  0xd6   : > { %v878_v6 = vadd.f32 %v336_v5, %v280_v4 }
  0xd7   : > { %v704_v7 = vpop.f32.mrf.mxu1 }
  0xd8   : > { %v343_v8 = vsel %vm298_vm1, %v878_v6, 0.0 }
  0xd9   : > { %v339_v9 = vpop.f32.mrf.mxu1  ;;  %344 = vadd.xlane.f32.xlu0 %v343_v8 }
  0xdb   : > { %v705_v10 = vpop.f32.mrf.mxu1 }
 0x162   : > { %v345_v11 = vpop.xlane.xlu0 %344 }
 0x163   : > { %v347_v12 = vmul.f32 0.03125, %v345_v11 }
 0x165   : > { %v348_v13 = vsub.f32 %v878_v6, %v347_v12 }
 0x167   : > { %v349_v14 = vmul.f32 %v348_v13, %v348_v13 }
 0x169   : > { %v350_v15 = vsel %vm298_vm1, %v349_v14, 0.0 }
 0x16a   : > { %351 = vadd.xlane.f32.xlu0 %v350_v15 }
 0x1f3   : > { %v352_v18 = vpop.xlane.xlu0 %351 }
 0x1f4   : > { %v353_v19 = vmul.f32 0.03125, %v352_v18 }
 0x1f6   : > { %v354_v20 = vadd.f32 1e-05, %v353_v19 }
 0x1f8   : > { %772 = vrsqrt.f32 %v354_v20 }
 0x205   : > { %v773_v21 = vpop.eup %772 }
 0x206   : > { %v356_v22 = vmul.f32 %v773_v21, %v348_v13 }
 0x208   : > { %v357_v23 = vpack.c.bf16 %v356_v22, %v356_v22 }
 0x20a   : > { %711 = vmatmul.mubr.msk.bf16.vlgmr.msra.gmra.mxu1 %vm298_vm1, %v357_v23 }
 0x2ca   : > { %v411_v32 = vpop.f32.mrf.mxu1 }
 0x2cb   : > { %v418_v33 = vmul.f32 0.70710677, %v411_v32  ;;  %v417_v62 = vmul.f32 0.5, %v411_v32 }
 0x2cc   : > { %v712_v34 = vpop.f32.mrf.mxu1 }
 0x2cd   : > { %v672_v35 = vclamps-f32 %v418_v33, 4.0 }
 0x2ce   : > { %v414_v36 = vpop.f32.mrf.mxu1 }
 0x2cf   : > { %v421_v37 = vmul.f32 %v672_v35, %v672_v35 }
 0x2d0   : > { %v713_v38 = vpop.f32.mrf.mxu1 }
 0x2d1   : > { %v431_v39 = vmul.f32 -1.1791603e-07, %v421_v37  ;;  %v422_v41 = vmul.f32 0.00022905065, %v421_v37 }
 0x2d3   : > { %v432_v40 = vadd.f32 2.3547966e-05, %v431_v39  ;;  %v423_v44 = vadd.f32 0.003408291, %v422_v41 }
 0x2d5   : > { %v433_v42 = vmul.f32 %v432_v40, %v421_v37  ;;  %v424_v47 = vmul.f32 %v423_v44, %v421_v37 }
 0x2d7   : > { %v434_v43 = vadd.f32 0.0010179626, %v433_v42  ;;  %v425_v50 = vadd.f32 0.050955694, %v424_v47 }
 0x2d9   : > { %v435_v45 = vmul.f32 %v434_v43, %v421_v37  ;;  %v426_v53 = vmul.f32 %v425_v50, %v421_v37 }
 0x2db   : > { %v436_v46 = vadd.f32 0.01407047, %v435_v45  ;;  %v427_v56 = vadd.f32 0.18520832, %v426_v53 }
 0x2dd   : > { %v437_v48 = vmul.f32 %v436_v46, %v421_v37  ;;  %v428_v57 = vmul.f32 %v427_v56, %v421_v37 }
 0x2df   : > { %v438_v49 = vadd.f32 0.11098505, %v437_v48  ;;  %v429_v58 = vadd.f32 1.1283791, %v428_v57 }
 0x2e1   : > { %v439_v51 = vmul.f32 %v438_v49, %v421_v37  ;;  %v430_v59 = vmul.f32 %v672_v35, %v429_v58 }
 0x2e3   : > { %v440_v52 = vadd.f32 0.49746925, %v439_v51 }
 0x2e5   : > { %v441_v54 = vmul.f32 %v440_v52, %v421_v37 }
 0x2e7   : > { %v442_v55 = vadd.f32 1.0, %v441_v54 }
 0x2e9   : > { %774 = vrcp.f32 %v442_v55 }
 0x2f6   : > { %v775_v60 = vpop.eup %774 }
 0x2f7   : > { %v444_v61 = vmul.f32 %v775_v60, %v430_v59 }
 0x2f9   : > { %v445_v63 = vadd.f32 1.0, %v444_v61 }
 0x2fb   : > { %v446_v0 = vmul.f32 %v445_v63, %v417_v62 }
 0x2fd   : > { %v447_v1 = vpack.c.bf16 %v446_v0, %v446_v0 }
 0x2ff   : > { %731 = vmatmul.mubr.bf16.vlgmr.msra.gmra.mxu0 %v447_v1 }
 0x3bf   : > { %v546_v2 = vpop.f32.mrf.mxu0 }
 0x3c0   : > { %v552_v3 = vadd.f32 %v546_v2, %v878_v6 }
 0x3c1   : > { %v732_v4 = vpop.f32.mrf.mxu0 }
 0x3c2   : > { %v553_v5 = vsel %vm298_vm1, %v552_v3, 0.0 }
 0x3c3   : > { %554 = vadd.xlane.f32.xlu1 %v553_v5  ;;  %v549_v7 = vpop.f32.mrf.mxu0 }
 0x3c5   : > { %v733_v8 = vpop.f32.mrf.mxu0 }
 0x44c   : > { %v555_v9 = vpop.xlane.xlu1 %554 }
 0x44d   : > { %v556_v10 = vmul.f32 0.03125, %v555_v9 }
 0x44f   : > { %v557_v11 = vsub.f32 %v552_v3, %v556_v10 }
 0x451   : > { %v558_v12 = vmul.f32 %v557_v11, %v557_v11 }
 0x453   : > { %v559_v13 = vsel %vm298_vm1, %v558_v12, 0.0 }
 0x454   : > { %560 = vadd.xlane.f32.xlu1 %v559_v13 }
 0x4dd   : > { %v561_v14 = vpop.xlane.xlu1 %560 }
 0x4de   : > { %v562_v15 = vmul.f32 0.03125, %v561_v14 }
 0x4e0   : > { %v563_v16 = vadd.f32 1e-05, %v562_v15 }
 0x4e2   : > { %776 = vrsqrt.f32 %v563_v16 }
 0x4ef   : > { %v777_v17 = vpop.eup %776 }
 0x4f0   : > { %v565_v6 = vmul.f32 %v777_v17, %v557_v11 }
 0x4f2   : > { %v566_v18 = vpack.c.bf16 %v565_v6, %v565_v6 }
 0x4f4   : > { %568 = vst.msk [vmem:[%s278_s11] sm:$0xf] %vm567_vm2, %v566_v18 }
 0x4f5 PF: > { %s15_s20 = sadd.s32 1, %s800_s20   ;;  %s946_s18 = smov %s796_s19 }
 0x4f6   : > { %p12_p5 = scmp.ge.s32.totalorder %s15_s20, 4   ;;  %s947_s19 = smov %s949_s21 }
 0x4f8   :  { %14 = sbr.rel (!%p12_p5) target bundleno = 2 (0x2), region = 73 }

// kernel: mup_gpt2_forward.9
= control target key start
LH: loop header
LB: loop body
LE: loop exit
PB: predicated region body
PF: predicated region fallthrough
CT: control target
= control target key end

     0   :  { %s817_s18 = smov 0   ;;  %s819_s19 = smov 0   ;;  %s922_s0 = inlined_call_operand.vmem [shape: f32[2,8,32], index: 0, kind: input, shape index: {}]   ;;  %s923_s1 = inlined_call_operand.vmem [shape: bf16[2,8,32], index: 1, kind: input, shape index: {}]   ;;  %s924_s2 = inlined_call_operand.vmem [shape: bf16[32,32], index: 2, kind: input, shape index: {}]   ;;  %s925_s3 = inlined_call_operand.vmem [shape: bf16[32,128], index: 3, kind: input, shape index: {}]   ;;  %s926_s4 = inlined_call_operand.vmem [shape: bf16[128,32], index: 4, kind: input, shape index: {}]   ;;  %s927_s5 = inlined_call_operand.vmem [shape: f32[2,8,32], index: 5, kind: output, shape index: {}]  }
   0x1   :  { %s821_s20 = smov 0  }
   0x2 LB: > { %s27_s21 = sadd.s32 1, %s779_s19  ;;  %p647_p0 = scmp.ge.s32.totalorder %s783_s20, 1  ;;  %s783_s20 = sphi %s821_s20, %s15_s20   ;;  %s779_s19 = sphi %s819_s19, %s929_s19   ;;  %s775_s18 = sphi %s817_s18, %s928_s18  }
   0x3   : > { %p29_p1 = scmp.ge.s32.totalorder %s27_s21, 2  ;;  %p219_p2 = scmp.lt.s32.totalorder %s783_s20, 3 }
   0x5   : > { %s931_s21 = smov (%p29_p1, %s27_s21), 0  ;;  %p220_p3 = pnand %p647_p0, %p219_p2 }
   0x6   : > { %p258_p4 = scmp.lt.s32.totalorder (!%p220_p3), %s775_s18, 1 }
   0x7   : > { %223 = sbr.rel (%p220_p3) target bundleno = 966 (0x3c6), region = 40 }
   0xc   : > { %v745_v0 = vld [vmem:[%s924_s2 + $0x8] sm:$0xff]   ;;  %v785_v1 = vmov 0.0   ;;  %v746_v2 = vld [vmem:[%s924_s2] sm:$0xff]   ;;  %vm786_vm0 = vmmov 0   ;;  %s933_s18 = smov (!%p258_p4, %s775_s18), 1  ;;  %vm298_vm1 = vcmask 261120  }
   0xd   : > { %683 = vmatprep.subr.bf16.mxu1 %v785_v1  ;;  %699 = vmatprep.subr.bf16.mxu0 %v785_v1  ;;  %s649_s26 = sshll.u32 %s933_s18, 2  ;;  %s648_s30 = sshll.u32 %s933_s18, 3  ;;  %v747_v16 = vld [vmem:[%s925_s3 + $0x8] sm:$0xff]   ;;  %v748_v17 = vld [vmem:[%s925_s3] sm:$0xff]   ;;  %v749_v24 = vld [vmem:[%s926_s4 + $0x38] sm:$0xff]  }
   0xe   : > { %684 = vmatpush3.bf16.msra.mxu1 %v745_v0  ;;  %687 = vmatprep.mubr.msk.bf16.mxu1 %vm786_vm0, %v785_v1  ;;  %s271_s29 = scalar_lea.vmem %s923_s1, %s649_s26  ;;  %s264_s8 = scalar_lea.vmem %s922_s0, %s648_s30  ;;  %v750_v25 = vld [vmem:[%s926_s4 + $0x30] sm:$0xff]   ;;  %v751_v26 = vld [vmem:[%s926_s4 + $0x28] sm:$0xff]   ;;  %v752_v27 = vld [vmem:[%s926_s4 + $0x20] sm:$0xff]  }
   0xf   : > { %685 = vmatprep.subr.bf16.mxu1 %v785_v1  ;;  %715 = vmatprep.mubr.msk.bf16.mxu0 %vm786_vm0, %v785_v1  ;;  %v281_v3 = vld [vmem:[%s271_s29] sm:$0xf]  ;;  %v753_v28 = vld [vmem:[%s926_s4 + $0x18] sm:$0xff]   ;;  %v754_v29 = vld [vmem:[%s926_s4 + $0x10] sm:$0xff]   ;;  %s278_s11 = scalar_lea.vmem %s927_s5, %s648_s30 }
  0x10   : > { %v280_v4 = vld [vmem:[%s264_s8] sm:$0xff]  ;;  %700 = vmatpush3.bf16.msra.mxu0 %v749_v24  ;;  %v755_v30 = vld [vmem:[%s926_s4 + $0x8] sm:$0xff]  }
  0x11   : > { %701 = vmatprep.subr.bf16.mxu0 %v785_v1  ;;  %v756_v31 = vld [vmem:[%s926_s4] sm:$0xff]  }
  0x12   : > { %686 = vmatpush3.bf16.msra.mxu1 %v746_v2 }
  0x13   : > { %691 = vmatprep.subr.bf16.mxu1 %v785_v1 }
  0x14   : > { %702 = vmatpush3.bf16.msra.mxu0 %v750_v25 }
  0x15   : > { %688 = vmatmul.mubr.msk.bf16.vlgmr.msra.gmra.mxu1 %vm298_vm1, %v281_v3  ;;  %703 = vmatprep.subr.bf16.mxu0 %v785_v1 }
  0x16   : > { %695 = vmatprep.mubr.msk.bf16.mxu1 %vm786_vm0, %v785_v1  ;;  %692 = vmatpush3.bf16.msra.mxu1 %v747_v16 }
  0x17   : > { %693 = vmatprep.subr.bf16.mxu1 %v785_v1 }
  0x18   : > { %704 = vmatpush3.bf16.msra.mxu0 %v751_v26 }
  0x19   : > { %705 = vmatprep.subr.bf16.mxu0 %v785_v1 }
  0x1a   : > { %694 = vmatpush3.bf16.msra.mxu1 %v748_v17 }
  0x1c   : > { %706 = vmatpush3.bf16.msra.mxu0 %v752_v27 }
  0x1d   : > { %707 = vmatprep.subr.bf16.mxu0 %v785_v1 }
  0x20   : > { %708 = vmatpush3.bf16.msra.mxu0 %v753_v28 }
  0x21   : > { %709 = vmatprep.subr.bf16.mxu0 %v785_v1 }
  0x24   : > { %710 = vmatpush3.bf16.msra.mxu0 %v754_v29 }
  0x25   : > { %711 = vmatprep.subr.bf16.mxu0 %v785_v1 }
  0x28   : > { %712 = vmatpush3.bf16.msra.mxu0 %v755_v30 }
  0x29   : > { %713 = vmatprep.subr.bf16.mxu0 %v785_v1 }
  0x2c   : > { %714 = vmatpush3.bf16.msra.mxu0 %v756_v31 }
  0xd5   : > { %v336_v5 = vpop.f32.mrf.mxu1 }
  0xd6   : > { %v861_v6 = vadd.f32 %v336_v5, %v280_v4 }
  0xd7   : > { %v689_v7 = vpop.f32.mrf.mxu1 }
  0xd8   : > { %v343_v8 = vsel %vm298_vm1, %v861_v6, 0.0 }
  0xd9   : > { %v339_v9 = vpop.f32.mrf.mxu1  ;;  %344 = vadd.xlane.f32.xlu0 %v343_v8 }
  0xdb   : > { %v690_v10 = vpop.f32.mrf.mxu1 }
 0x162   : > { %v345_v11 = vpop.xlane.xlu0 %344 }
 0x163   : > { %v347_v12 = vmul.f32 0.03125, %v345_v11 }
 0x165   : > { %v348_v13 = vsub.f32 %v861_v6, %v347_v12 }
 0x167   : > { %v349_v14 = vmul.f32 %v348_v13, %v348_v13 }
 0x169   : > { %v350_v15 = vsel %vm298_vm1, %v349_v14, 0.0 }
 0x16a   : > { %351 = vadd.xlane.f32.xlu0 %v350_v15 }
 0x1f3   : > { %v352_v18 = vpop.xlane.xlu0 %351 }
 0x1f4   : > { %v353_v19 = vmul.f32 0.03125, %v352_v18 }
 0x1f6   : > { %v354_v20 = vadd.f32 1e-05, %v353_v19 }
 0x1f8   : > { %757 = vrsqrt.f32 %v354_v20 }
 0x205   : > { %v758_v21 = vpop.eup %757 }
 0x206   : > { %v356_v22 = vmul.f32 %v758_v21, %v348_v13 }
 0x208   : > { %v357_v23 = vpack.c.bf16 %v356_v22, %v356_v22 }
 0x20a   : > { %696 = vmatmul.mubr.msk.bf16.vlgmr.msra.gmra.mxu1 %vm298_vm1, %v357_v23 }
 0x2ca   : > { %v411_v32 = vpop.f32.mrf.mxu1 }
 0x2cb   : > { %v418_v33 = vmul.f32 0.70710677, %v411_v32  ;;  %v417_v62 = vmul.f32 0.5, %v411_v32 }
 0x2cc   : > { %v697_v34 = vpop.f32.mrf.mxu1 }
 0x2cd   : > { %v657_v35 = vclamps-f32 %v418_v33, 4.0 }
 0x2ce   : > { %v414_v36 = vpop.f32.mrf.mxu1 }
 0x2cf   : > { %v421_v37 = vmul.f32 %v657_v35, %v657_v35 }
 0x2d0   : > { %v698_v38 = vpop.f32.mrf.mxu1 }
 0x2d1   : > { %v431_v39 = vmul.f32 -1.1791603e-07, %v421_v37  ;;  %v422_v41 = vmul.f32 0.00022905065, %v421_v37 }
 0x2d3   : > { %v432_v40 = vadd.f32 2.3547966e-05, %v431_v39  ;;  %v423_v44 = vadd.f32 0.003408291, %v422_v41 }
 0x2d5   : > { %v433_v42 = vmul.f32 %v432_v40, %v421_v37  ;;  %v424_v47 = vmul.f32 %v423_v44, %v421_v37 }
 0x2d7   : > { %v434_v43 = vadd.f32 0.0010179626, %v433_v42  ;;  %v425_v50 = vadd.f32 0.050955694, %v424_v47 }
 0x2d9   : > { %v435_v45 = vmul.f32 %v434_v43, %v421_v37  ;;  %v426_v53 = vmul.f32 %v425_v50, %v421_v37 }
 0x2db   : > { %v436_v46 = vadd.f32 0.01407047, %v435_v45  ;;  %v427_v56 = vadd.f32 0.18520832, %v426_v53 }
 0x2dd   : > { %v437_v48 = vmul.f32 %v436_v46, %v421_v37  ;;  %v428_v57 = vmul.f32 %v427_v56, %v421_v37 }
 0x2df   : > { %v438_v49 = vadd.f32 0.11098505, %v437_v48  ;;  %v429_v58 = vadd.f32 1.1283791, %v428_v57 }
 0x2e1   : > { %v439_v51 = vmul.f32 %v438_v49, %v421_v37  ;;  %v430_v59 = vmul.f32 %v657_v35, %v429_v58 }
 0x2e3   : > { %v440_v52 = vadd.f32 0.49746925, %v439_v51 }
 0x2e5   : > { %v441_v54 = vmul.f32 %v440_v52, %v421_v37 }
 0x2e7   : > { %v442_v55 = vadd.f32 1.0, %v441_v54 }
 0x2e9   : > { %759 = vrcp.f32 %v442_v55 }
 0x2f6   : > { %v760_v60 = vpop.eup %759 }
 0x2f7   : > { %v444_v61 = vmul.f32 %v760_v60, %v430_v59 }
 0x2f9   : > { %v445_v63 = vadd.f32 1.0, %v444_v61 }
 0x2fb   : > { %v446_v0 = vmul.f32 %v445_v63, %v417_v62 }
 0x2fd   : > { %v447_v1 = vpack.c.bf16 %v446_v0, %v446_v0 }
 0x2ff   : > { %716 = vmatmul.mubr.bf16.vlgmr.msra.gmra.mxu0 %v447_v1 }
 0x3bf   : > { %v546_v2 = vpop.f32.mrf.mxu0 }
 0x3c0   : > { %v552_v3 = vadd.f32 %v546_v2, %v861_v6 }
 0x3c1   : > { %v717_v4 = vpop.f32.mrf.mxu0 }
 0x3c2   : > { %553 = vst.msk [vmem:[%s278_s11] sm:$0xff] %vm298_vm1, %v552_v3 }
 0x3c3   : > { %v549_v5 = vpop.f32.mrf.mxu0 }
 0x3c5   : > { %v718_v7 = vpop.f32.mrf.mxu0 }
 0x3c6 PF: > { %s15_s20 = sadd.s32 1, %s783_s20   ;;  %s928_s18 = smov %s779_s19 }
 0x3c7   : > { %p12_p5 = scmp.ge.s32.totalorder %s15_s20, 4   ;;  %s929_s19 = smov %s931_s21 }
 0x3c9   :  { %14 = sbr.rel (!%p12_p5) target bundleno = 2 (0x2), region = 73 }

// kernel: mup_gpt2_forward.13
= control target key start
LH: loop header
LB: loop body
LE: loop exit
PB: predicated region body
PF: predicated region fallthrough
CT: control target
= control target key end

     0   :  { %7 = vsyncpa [#allocation3], 0  ;;  %s658_s0 = inlined_call_operand.vmem [shape: bf16[2,8,32], index: 0, kind: input, shape index: {}]   ;;  %s659_s1 = inlined_call_operand.vmem [shape: bf16[32,64], index: 1, kind: input, shape index: {}]   ;;  %s660_s2 = inlined_call_operand.hbm [shape: f32[2,8,64], index: 2, kind: output, shape index: {}]  }
   0x1   :  { %9 = vsyncpa [#allocation3 + $0x1], 0  ;;  %s541_s9 = smov 0   ;;  %s543_s10 = smov 0  }
   0x2   :  { %s545_s11 = smov 0   ;;  %s547_s12 = smov 0  }
   0x3   :  { %s549_s13 = smov 0   ;;  %s551_s14 = smov 0  }
   0x4 LB: > { %s360_s15 = sadd.s32 4294967295, %s521_s14   ;;  %s361_s16 = sadd.s32 4294967294, %s521_s14   ;;  %s521_s14 = sphi %s551_s14, %s15_s14   ;;  %s517_s13 = sphi %s549_s13, %s667_s13   ;;  %s513_s12 = sphi %s547_s12, %s666_s12   ;;  %s509_s11 = sphi %s545_s11, %s665_s11   ;;  %s505_s10 = sphi %s543_s10, %s664_s10   ;;  %s501_s9 = sphi %s541_s9, %s663_s9  }
   0x5   : > { %s30_s17 = sadd.s32 1, %s517_s13  ;;  %s99_s18 = sadd.s32 1, %s509_s11 }
   0x6   : > { %p32_p0 = scmp.ge.s32.totalorder %s30_s17, 2  ;;  %p109_p1 = scmp.ne.s32.totalorder %s509_s11, %s505_s10 }
   0x7   : > { %p110_p2 = scmp.eq.s32.totalorder %s360_s15, 1  ;;  %p115_p3 = scmp.ne.s32.totalorder %s505_s10, %s501_s9 }
   0x8   : > { %s669_s17 = smov (%p32_p0, %s30_s17), 0  ;;  %p116_p5 = scmp.eq.s32.totalorder %s361_s16, 1 }
   0x9   : > { %p581_p4 = por %p110_p2, %p109_p1  ;;  %s92_s20 = ssub.s32 %s517_s13, %s669_s17 }
   0xa   : > { %p365_p6 = scmp.ge.s32.totalorder %s521_s14, 1  ;;  %p97_p7 = scmp.eq.s32.totalorder %s92_s20, 0 }
   0xb   : > { %p588_p8 = por %p116_p5, %p115_p3  ;;  %p151_p9 = scmp.lt.s32.totalorder %s521_s14, 3 }
   0xc   : > { %s594_s22 = scalar_select %p97_p7, %s509_s11, %s99_s18  }
   0xd   : > { %p152_p10 = pnand %p365_p6, %p151_p9 }
   0xe   : > { %p179_p11 = scmp.lt.s32.totalorder (!%p152_p10), %s513_s12, 1  ;;  %s176_s4 = sand.u32 (!%p152_p10), 1, %s505_s10  }
   0xf   : > { %155 = sbr.rel (%p152_p10) target bundleno = 238 (0xee), region = 28  ;;  %s366_s5 = sshll.u32 (!%p152_p10), %s176_s4, 3 }
  0x10   : > { %s372_s6 = sshll.u32 (!%p152_p10), %s513_s12, 7  ;;  %s178_s7 = scalar_lea.vmem (!%p152_p10), [#allocation2], %s366_s5 }
  0x11   : > { %s270_s8 = sshll.u32 (!%p152_p10), %s178_s7, 4  ;;  %s612_s18 = scalar_lea.hbm (!%p152_p10), %s660_s2, %s372_s6  ;;  %s614_s8 = int_to_ptr.vmem [resolvable:$true] %s270_s8 }
  0x12   : > { %s255_s20 = scalar_lea.sflag (!%p152_p10), [#allocation3], %s176_s4  ;;  %s445_s23 = scalar_lea.vmem (!%p152_p10), %s614_s8, 128 }
  0x13   : > { %p446_p12 = scmp.ne.s32.totalorder (!%p152_p10), %s614_s8, %s445_s23 }
  0x14   : > { %v443_v0 = vld [vmem:[%s659_s1 + $0x8] sm:$0xff]   ;;  %v523_v1 = vmov 0.0   ;;  %v444_v2 = vld [vmem:[%s659_s1] sm:$0xff]   ;;  %vm524_vm0 = vmmov 0   ;;  %s180_s27 = scalar_select %p179_p11, %s513_s12, 1  ;;  %vm208_vm1 = vcmask 261120  }
  0x15   : > { %378 = vmatprep.subr.bf16.mxu0 %v523_v1  ;;  %382 = vmatprep.mubr.msk.bf16.mxu0 %vm524_vm0, %v523_v1  ;;  %vm252_vm2 = vcmask 523264   ;;  %p447_p13 = pnand %p446_p12, %p581_p4  ;;  %s525_s12 = smov [#allocation2]  }
  0x16   : > { %379 = vmatpush3.bf16.msra.mxu0 %v443_v0  ;;  %s367_s28 = sshll.u32 %s180_s27, 2  ;;  %s449_s24 = sshll.u32 %s525_s12, 4  ;;  %s450_s24 = int_to_ptr.vmem [resolvable:$false] %s449_s24 }
  0x17   : > { %380 = vmatprep.subr.bf16.mxu0 %v523_v1  ;;  %s185_s3 = scalar_lea.vmem %s658_s0, %s367_s28  ;;  %p448_p0 = pneg %p447_p13 }
  0x18   : > { %v191_v3 = vld [vmem:[%s185_s3] sm:$0xf]  ;;  %s451_s25 = scalar_lea.vmem %s450_s24, 256  ;;  %p452_p1 = scmp.lt.s32.totalorder %s614_s8, %s450_s24 }
  0x19   : > { %p453_p2 = scmp.lt.s32.totalorder %s451_s25, %s445_s23 }
  0x1a   : > { %381 = vmatpush3.bf16.msra.mxu0 %v444_v2 }
  0x1b   : > { %p454_p3 = por %p453_p2, %p452_p1 }
  0x1d   : > { %383 = vmatmul.mubr.msk.bf16.vlgmr.msra.gmra.mxu0 %vm208_vm1, %v191_v3  ;;  %p455_p5 = pnand %p454_p3, %p448_p0 }
  0xdd   : > { %v246_v4 = vpop.f32.mrf.mxu0 }
  0xde   : > { %253 = vst.msk [vmem:[%s178_s7] sm:$0xff] %vm252_vm2, %v246_v4 }
  0xdf   : > { %v384_v5 = vpop.f32.mrf.mxu0 }
  0xe0   : > { %458 = shalt.err (!%p455_p5)
}
  0xe1   : > { %s459_s26 = scalar_lea.hbm %s612_s18, 128  ;;  %s463_s29 = scalar_lea.hbm %s660_s2, 256 }
  0xe2   : > { %p460_p6 = scmp.ne.s32.totalorder %s612_s18, %s459_s26  ;;  %p464_p10 = scmp.lt.s32.totalorder %s612_s18, %s660_s2 }
  0xe3   : > { %p465_p11 = scmp.lt.s32.totalorder %s463_s29, %s459_s26 }
  0xe4   : > { %p461_p7 = pnand %p460_p6, %p581_p4 }
  0xe5   : > { %p466_p12 = por %p465_p11, %p464_p10 }
  0xe6   : > { %p462_p9 = pneg %p461_p7 }
  0xe8   : > { %p467_p13 = pnand %p466_p12, %p462_p9 }
  0xea   : > { %470 = shalt.err (!%p467_p13)
}
  0xeb   : > { %386 = dma.vmem_to_hbm [thread:$0]  (%p581_p4), %s614_s8, 128, %s612_s18, %s255_s20   ;;  %v249_v6 = vpop.f32.mrf.mxu0 }
  0xed   : > { %v385_v7 = vpop.f32.mrf.mxu0 }
  0xee PF: > { %p392_p0 = scmp.ge.s32.totalorder %s521_s14, 2  ;;  %s282_s4 = sand.u32 1, %s501_s9  }
  0xef   : > { %s283_s5 = scalar_lea.sflag [#allocation3], %s282_s4 }
  0xf0   : > { %p389_p1 = pnand %p392_p0, %p588_p8 }
  0xf2   : > { %p390_p2 = pneg %p389_p1 }
  0xf4   : > { %496 = dma.done.wait (%p390_p2), %s283_s5, 128  }
  0xf5   : > { %498 = vsyncadd (%p390_p2), %s283_s5, 4294967168  ;;  %s15_s14 = sadd.s32 1, %s521_s14   ;;  %s663_s9 = smov %s505_s10 }
  0xf6   : > { %p12_p3 = scmp.ge.s32.totalorder %s15_s14, 4   ;;  %s664_s10 = smov %s509_s11 }
  0xf7   : > { %s665_s11 = smov %s594_s22  ;;  %s666_s12 = smov %s517_s13 }
  0xf8   : > { %s667_s13 = smov %s669_s17  ;;  %14 = sbr.rel (!%p12_p3) target bundleno = 4 (0x4), region = 66 }
  0xfd   :  { %288 = vsyncpa [#allocation3], 1 }
  0xfe   :  { %290 = vsyncpa [#allocation3 + $0x1], 1 }

// kernel: mup_gpt2_forward.8
= control target key start
LH: loop header
LB: loop body
LE: loop exit
PB: predicated region body
PF: predicated region fallthrough
CT: control target
= control target key end

     0   :  { %s1827_s12 = smov 0   ;;  %s1829_s13 = smov 0   ;;  %s2017_s0 = inlined_call_operand.vmem [shape: bf16[2,4,8,8], index: 0, kind: input, shape index: {}]   ;;  %s2018_s1 = inlined_call_operand.vmem [shape: bf16[2,4,8,8], index: 1, kind: input, shape index: {}]   ;;  %s2019_s2 = inlined_call_operand.vmem [shape: bf16[2,4,8,8], index: 2, kind: input, shape index: {}]   ;;  %s2020_s3 = inlined_call_operand.vmem [shape: bf16[2,8,32], index: 3, kind: output, shape index: {}]  }
   0x1   :  { %s1831_s14 = smov 0  }
   0x2 LB: > { %s32_s15 = sadd.s32 1, %s1794_s13  ;;  %p1602_p0 = scmp.ge.s32.totalorder %s1798_s14, 1  ;;  %s1798_s14 = sphi %s1831_s14, %s13_s14   ;;  %s1794_s13 = sphi %s1829_s13, %s2022_s13   ;;  %s1790_s12 = sphi %s1827_s12, %s2021_s12  }
   0x3   : > { %p34_p1 = scmp.ge.s32.totalorder %s32_s15, 2  ;;  %p209_p2 = scmp.lt.s32.totalorder %s1798_s14, 3 }
   0x5   : > { %s2024_s15 = smov (%p34_p1, %s32_s15), 0  ;;  %p210_p3 = pnand %p1602_p0, %p209_p2 }
   0x6   : > { %p258_p4 = scmp.lt.s32.totalorder (!%p210_p3), %s1790_s12, 1  ;;  %s1804_s30 = smov (!%p210_p3), 8  }
   0x7   : > { %213 = sbr.rel (%p210_p3) target bundleno = 1411 (0x583), region = 32  ;;  %s1805_s4 = smov (!%p210_p3), 16  }
   0x8   : > { %s1806_s5 = smov (!%p210_p3), 24  }
   0xc   : > { %vm311_vm0 = vcmask 64512   ;;  %v1800_v0 = vmov 0.0   ;;  %vm1801_vm1 = vmmov 0   ;;  %s2026_s12 = smov (!%p258_p4, %s1790_s12), 1  ;;  %vm302_vm2 = vcmask 7168  }
   0xd   : > { %1671 = vmatprep.subr.bf16.mxu0 %v1800_v0  ;;  %312 = vst.msk [vmem:[#allocation4] sm:$0xff] %vm311_vm0, %v1800_v0  ;;  %313 = vst.msk [vmem:[#allocation4 + $0x8] sm:$0xff] %vm311_vm0, %v1800_v0  ;;  %1673 = vmatprep.mubr.msk.bf16.mxu0 %vm1801_vm1, %v1800_v0  ;;  %s1862_s16 = sshll.u32 %s2026_s12, 4  ;;  %v1802_v4 = vmov -1e+30   ;;  %v861_v5 = vlaneseq  ;;  %v1803_v14 = vmov 0  }
   0xe   : > { %314 = vst.msk [vmem:[#allocation4 + $0x10] sm:$0xff] %vm311_vm0, %v1800_v0  ;;  %315 = vst.msk [vmem:[#allocation4 + $0x18] sm:$0xff] %vm311_vm0, %v1800_v0  ;;  %1677 = vmatprep.subr.bf16.mxu1 %v1800_v0  ;;  %1679 = vmatprep.mubr.msk.bf16.mxu1 %vm1801_vm1, %v1800_v0  ;;  %s1868_s19 = scalar_lea.vmem %s2018_s1, %s1862_s16  ;;  %s1876_s22 = scalar_lea.vmem %s2017_s0, %s1862_s16  ;;  %vm952_vm4 = vcmask 1043456   ;;  %vm1420_vm5 = vcmask 60416   ;;  %vm1440_vm6 = vcmask 126016   ;;  %vm1460_vm7 = vcmask 191616  }
   0xf   : > { %v867_v1 = vld [vmem:[%s1868_s19] sm:$0xf]  ;;  %303 = vst.msk [vmem:[#allocation2] sm:$0xff] %vm302_vm2, %v1802_v4  ;;  %304 = vst.msk [vmem:[#allocation2 + $0x8] sm:$0xff] %vm302_vm2, %v1802_v4  ;;  %v1895_v6 = vshrl.u32 %v861_v5, 7  ;;  %v1897_v7 = vand.u32 127, %v861_v5  ;;  %1750 = vset.pattern.permute.xlu0 %v1803_v14  ;;  %1751 = vset.pattern.permute.xlu1 %v1803_v14  ;;  %s1919_s25 = scalar_lea.vmem %s2019_s2, %s1862_s16 }
  0x10   : > { %v874_v2 = vsel %vm311_vm0, %v867_v1, 0  ;;  %v866_v3 = vld [vmem:[%s1876_s22] sm:$0xf]  ;;  %305 = vst.msk [vmem:[#allocation2 + $0x10] sm:$0xff] %vm302_vm2, %v1802_v4  ;;  %306 = vst.msk [vmem:[#allocation2 + $0x18] sm:$0xff] %vm302_vm2, %v1802_v4  ;;  %s1609_s26 = sshll.u32 %s2026_s12, 2 }
  0x11   : > { %1672 = vmatpush3.bf16.xpose.msra.mxu0 %v874_v2  ;;  %307 = vst.msk [vmem:[#allocation3] sm:$0xff] %vm302_vm2, %v1800_v0  ;;  %308 = vst.msk [vmem:[#allocation3 + $0x8] sm:$0xff] %vm302_vm2, %v1800_v0  ;;  %vm865_vm3 = vcmp.ge.s32.totalorder %v1895_v6, %v1897_v7  ;;  %v868_v19 = vld [vmem:[%s1919_s25] sm:$0xf]  ;;  %v1630_v24 = vld [vmem:[%s1868_s19 + $0x4] sm:$0xf]  ;;  %s2000_s29 = scalar_lea.vmem %s2020_s3, %s1609_s26 }
  0x12   : > { %1689 = vmatprep.subr.bf16.mxu0 %v1800_v0  ;;  %309 = vst.msk [vmem:[#allocation3 + $0x10] sm:$0xff] %vm302_vm2, %v1800_v0  ;;  %310 = vst.msk [vmem:[#allocation3 + $0x18] sm:$0xff] %vm302_vm2, %v1800_v0  ;;  %v954_v20 = vsel %vm952_vm4, %v868_v19, 0  ;;  %v1009_v27 = vsel %vm311_vm0, %v1630_v24, 0  ;;  %v1635_v28 = vld [vmem:[%s1868_s19 + $0x8] sm:$0xf] }
  0x13   : > { %1678 = vmatpush3.bf16.msra.mxu1 %v954_v20  ;;  %v1629_v29 = vld [vmem:[%s1876_s22 + $0x4] sm:$0xf]  ;;  %v1145_v30 = vsel %vm311_vm0, %v1635_v28, 0  ;;  %v1640_v31 = vld [vmem:[%s1868_s19 + $0xc] sm:$0xf]  ;;  %vm1480_vm8 = vcmask 257216  }
  0x14   : > { %1683 = vmatprep.subr.bf16.mxu1 %v1800_v0  ;;  %v1634_v32 = vld [vmem:[%s1876_s22 + $0x8] sm:$0xf]  ;;  %v1281_v33 = vsel %vm311_vm0, %v1640_v31, 0  ;;  %v1639_v34 = vld [vmem:[%s1876_s22 + $0xc] sm:$0xf] }
  0x15   : > { %v1636_v19 = vld [vmem:[%s1919_s25 + $0x8] sm:$0xf] }
  0x16   : > { %v1905_v15 = vld [vmem:[#allocation2] sm:$0xff]  ;;  %v1053_v57 = vld [vmem:[#allocation2 + $0x8] sm:$0xff] }
  0x17   : > { %v1189_v61 = vld [vmem:[#allocation2 + $0x10] sm:$0xff]  ;;  %v1325_v2 = vld [vmem:[#allocation2 + $0x18] sm:$0xff] }
  0x18   : > { %1674 = vmatmul.mubr.msk.bf16.vlgmr.msra.gmra.mxu0 %vm311_vm0, %v866_v3  ;;  %v1631_v3 = vld [vmem:[%s1919_s25 + $0x4] sm:$0xf] }
  0x19   : > { %1691 = vmatprep.mubr.msk.bf16.mxu0 %vm1801_vm1, %v1800_v0  ;;  %v1090_v4 = vsel %vm952_vm4, %v1631_v3, 0 }
  0x1a   : > { %1690 = vmatpush3.bf16.msra.mxu0 %v1090_v4  ;;  %v1078_v4 = vld [vmem:[#allocation4 + $0x8] sm:$0xff] }
  0x1b   : > { %1701 = vmatprep.subr.bf16.mxu0 %v1800_v0 }
  0xd8   : > { %v910_v8 = vpop.f32.mrf.mxu0 }
  0xd9   : > { %v916_v9 = vsel %vm865_vm3, %v910_v8, -1e+30 }
  0xda   : > { %v1675_v10 = vpop.f32.mrf.mxu0  ;;  %v918_v11 = vsel %vm311_vm0, %v916_v9, -inf }
  0xdb   : > { %919 = vmax.xlane.f32.xlu0 %v918_v11 }
  0xdc   : > { %v913_v12 = vpop.f32.mrf.mxu0 }
  0xde   : > { %v1676_v13 = vpop.f32.mrf.mxu0 }
 0x164   : > { %v920_v16 = vpop.xlane.xlu0 %919 }
 0x165   : > { %v1908_v17 = vmax.f32 %v1905_v15, %v920_v16 }
 0x167   : > { %v922_v18 = vsub.f32 %v1905_v15, %v1908_v17  ;;  %998 = vst.msk [vmem:[#allocation2] sm:$0xff] %vm302_vm2, %v1908_v17  ;;  %927 = vperm.xlu0 %1750, %v1908_v17  }
 0x1e2   : > { %v928_v21 = vpop.permute.xlu0 %927 }
 0x1e3   : > { %v930_v22 = vsub.f32 %v916_v9, %v928_v21 }
 0x1e5   : > { %v931_v23 = vmul.f32 1.442695, %v930_v22 }
 0x1e7   : > { %1752 = vpow2.f32 %v931_v23 }
 0x1f4   : > { %v1925_v25 = vpop.eup %1752 }
 0x1f5   : > { %v948_v26 = vpack.c.bf16 %v1925_v25, %v1925_v25  ;;  %v935_v8 = vsel %vm311_vm0, %v1925_v25, 0.0  ;;  %v1226_v25 = vsel %vm952_vm4, %v1636_v19, 0 }
 0x1f7   : > { %1680 = vmatmul.mubr.msk.bf16.vlgmr.msra.gmra.mxu1 %vm311_vm0, %v948_v26  ;;  %v923_v26 = vmul.f32 1.442695, %v922_v18 }
 0x1f8   : > { %1684 = vmatpush3.bf16.xpose.msra.mxu1 %v1009_v27  ;;  %1685 = vmatprep.mubr.msk.bf16.mxu1 %vm1801_vm1, %v1800_v0  ;;  %v1641_v27 = vld [vmem:[%s1919_s25 + $0xc] sm:$0xf] }
 0x1f9   : > { %1695 = vmatprep.subr.bf16.mxu1 %v1800_v0  ;;  %v1362_v31 = vsel %vm952_vm4, %v1641_v27, 0 }
 0x1ff   : > { %1686 = vmatmul.mubr.msk.bf16.vlgmr.msra.gmra.mxu1 %vm311_vm0, %v1629_v29 }
 0x200   : > { %1696 = vmatpush3.bf16.xpose.msra.mxu1 %v1145_v30  ;;  %1697 = vmatprep.mubr.msk.bf16.mxu1 %vm1801_vm1, %v1800_v0 }
 0x201   : > { %1707 = vmatprep.subr.bf16.mxu1 %v1800_v0 }
 0x207   : > { %1698 = vmatmul.mubr.msk.bf16.vlgmr.msra.gmra.mxu1 %vm311_vm0, %v1634_v32 }
 0x208   : > { %1708 = vmatpush3.bf16.xpose.msra.mxu1 %v1281_v33  ;;  %1709 = vmatprep.mubr.msk.bf16.mxu1 %vm1801_vm1, %v1800_v0 }
 0x20f   : > { %1710 = vmatmul.mubr.msk.bf16.vlgmr.msra.gmra.mxu1 %vm311_vm0, %v1639_v34 }
 0x2b7   : > { %v1949_v35 = vpop.f32.mrf.mxu1 }
 0x2b9   : > { %v1681_v36 = vpop.f32.mrf.mxu1 }
 0x2bb   : > { %v993_v37 = vpop.f32.mrf.mxu1 }
 0x2bd   : > { %v1682_v38 = vpop.f32.mrf.mxu1 }
 0x2bf   : > { %v1045_v39 = vpop.f32.mrf.mxu1 }
 0x2c0   : > { %v1051_v40 = vsel %vm865_vm3, %v1045_v39, -1e+30 }
 0x2c1   : > { %v1687_v41 = vpop.f32.mrf.mxu1  ;;  %v1054_v42 = vsel %vm311_vm0, %v1051_v40, -inf }
 0x2c2   : > { %1055 = vmax.xlane.f32.xlu1 %v1054_v42 }
 0x2c3   : > { %v1048_v43 = vpop.f32.mrf.mxu1 }
 0x2c5   : > { %v1688_v44 = vpop.f32.mrf.mxu1 }
 0x2c7   : > { %v1181_v45 = vpop.f32.mrf.mxu1 }
 0x2c8   : > { %v1187_v46 = vsel %vm865_vm3, %v1181_v45, -1e+30  ;;  %v1070_v45 = vld [vmem:[#allocation3 + $0x8] sm:$0xff] }
 0x2c9   : > { %v1699_v47 = vpop.f32.mrf.mxu1  ;;  %v1190_v48 = vsel %vm311_vm0, %v1187_v46, -inf }
 0x2ca   : > { %1191 = vmax.xlane.f32.xlu1 %v1190_v48 }
 0x2cb   : > { %v1184_v49 = vpop.f32.mrf.mxu1 }
 0x2cc   : > { %v1206_v49 = vld [vmem:[#allocation3 + $0x10] sm:$0xff] }
 0x2cd   : > { %v1700_v50 = vpop.f32.mrf.mxu1 }
 0x2ce   : > { %v941_v50 = vld [vmem:[#allocation4] sm:$0xff] }
 0x2cf   : > { %v1317_v51 = vpop.f32.mrf.mxu1 }
 0x2d0   : > { %v1323_v52 = vsel %vm865_vm3, %v1317_v51, -1e+30 }
 0x2d1   : > { %v1711_v53 = vpop.f32.mrf.mxu1  ;;  %v1326_v54 = vsel %vm311_vm0, %v1323_v52, -inf }
 0x2d2   : > { %1327 = vmax.xlane.f32.xlu1 %v1326_v54 }
 0x2d3   : > { %v1320_v55 = vpop.f32.mrf.mxu1 }
 0x2d5   : > { %v1712_v56 = vpop.f32.mrf.mxu1 }
 0x34b   : > { %v1056_v58 = vpop.xlane.xlu1 %1055 }
 0x34c   : > { %v1057_v59 = vmax.f32 %v1053_v57, %v1056_v58  ;;  %v1342_v58 = vld [vmem:[#allocation3 + $0x18] sm:$0xff] }
 0x34e   : > { %v1058_v60 = vsub.f32 %v1053_v57, %v1057_v59  ;;  %1134 = vst.msk [vmem:[#allocation2 + $0x8] sm:$0xff] %vm302_vm2, %v1057_v59  ;;  %1063 = vperm.xlu1 %1751, %v1057_v59  }
 0x350   : > { %v1059_v15 = vmul.f32 1.442695, %v1058_v60 }
 0x353   : > { %v1192_v62 = vpop.xlane.xlu1 %1191 }
 0x354   : > { %v1193_v63 = vmax.f32 %v1189_v61, %v1192_v62 }
 0x356   : > { %v1194_v1 = vsub.f32 %v1189_v61, %v1193_v63  ;;  %1270 = vst.msk [vmem:[#allocation2 + $0x10] sm:$0xff] %vm302_vm2, %v1193_v63  ;;  %1199 = vperm.xlu1 %1751, %v1193_v63  }
 0x358   : > { %v1195_v32 = vmul.f32 1.442695, %v1194_v1 }
 0x35b   : > { %v1328_v5 = vpop.xlane.xlu1 %1327 }
 0x35c   : > { %v1329_v6 = vmax.f32 %v1325_v2, %v1328_v5 }
 0x35e   : > { %v1330_v7 = vsub.f32 %v1325_v2, %v1329_v6  ;;  %1406 = vst.msk [vmem:[#allocation2 + $0x18] sm:$0xff] %vm302_vm2, %v1329_v6  ;;  %1335 = vperm.xlu1 %1751, %v1329_v6  }
 0x360   : > { %v1331_v34 = vmul.f32 1.442695, %v1330_v7 }
 0x382   : > { %936 = vadd.xlane.f32.xlu1 %v935_v8 }
 0x3c9   : > { %v1064_v9 = vpop.permute.xlu1 %1063 }
 0x3ca   : > { %v1066_v10 = vsub.f32 %v1051_v40, %v1064_v9 }
 0x3cc   : > { %v1067_v11 = vmul.f32 1.442695, %v1066_v10 }
 0x3ce   : > { %1754 = vpow2.f32 %v1067_v11 }
 0x3d1   : > { %v1200_v12 = vpop.permute.xlu1 %1199 }
 0x3d2   : > { %v1202_v13 = vsub.f32 %v1187_v46, %v1200_v12 }
 0x3d4   : > { %v1203_v14 = vmul.f32 1.442695, %v1202_v13  ;;  %v1214_v13 = vld [vmem:[#allocation4 + $0x10] sm:$0xff] }
 0x3d6   : > { %1756 = vpow2.f32 %v1203_v14 }
 0x3d9   : > { %v1336_v16 = vpop.permute.xlu1 %1335 }
 0x3da   : > { %v1338_v20 = vsub.f32 %v1323_v52, %v1336_v16 }
 0x3db   : > { %v1755_v21 = vpop.eup %1754 }
 0x3dc   : > { %v1339_v22 = vmul.f32 1.442695, %v1338_v20  ;;  %v1072_v23 = vsel %vm311_vm0, %v1755_v21, 0.0  ;;  %v1085_v24 = vpack.c.bf16 %v1755_v21, %v1755_v21 }
 0x3dd   : > { %1073 = vadd.xlane.f32.xlu0 %v1072_v23 }
 0x3de   : > { %1758 = vpow2.f32 %v1339_v22  ;;  %1692 = vmatmul.mubr.msk.bf16.vlgmr.msra.gmra.mxu0 %vm311_vm0, %v1085_v24 }
 0x3df   : > { %1702 = vmatpush3.bf16.msra.mxu0 %v1226_v25  ;;  %1703 = vmatprep.mubr.msk.bf16.mxu0 %vm1801_vm1, %v1800_v0  ;;  %1760 = vpow2.f32 %v923_v26  ;;  %v1350_v25 = vld [vmem:[#allocation4 + $0x18] sm:$0xff] }
 0x3e0   : > { %1713 = vmatprep.subr.bf16.mxu0 %v1800_v0  ;;  %1762 = vpow2.f32 %v1195_v32 }
 0x3e1   : > { %1764 = vpow2.f32 %v1059_v15 }
 0x3e2   : > { %1766 = vpow2.f32 %v1331_v34 }
 0x3e3   : > { %v1757_v28 = vpop.eup %1756 }
 0x3e4   : > { %v1208_v29 = vsel %vm311_vm0, %v1757_v28, 0.0  ;;  %v1221_v30 = vpack.c.bf16 %v1757_v28, %v1757_v28 }
 0x3e5   : > { %1209 = vadd.xlane.f32.xlu1 %v1208_v29 }
 0x3e6   : > { %1704 = vmatmul.mubr.msk.bf16.vlgmr.msra.gmra.mxu0 %vm311_vm0, %v1221_v30 }
 0x3e7   : > { %1714 = vmatpush3.bf16.msra.mxu0 %v1362_v31  ;;  %1715 = vmatprep.mubr.msk.bf16.mxu0 %vm1801_vm1, %v1800_v0  ;;  %v933_v0 = vld [vmem:[#allocation3] sm:$0xff] }
 0x3eb   : > { %v1759_v33 = vpop.eup %1758 }
 0x3ec   : > { %v1344_v17 = vsel %vm311_vm0, %v1759_v33, 0.0  ;;  %v1357_v18 = vpack.c.bf16 %v1759_v33, %v1759_v33  ;;  %v1761_v36 = vpop.eup %1760 }
 0x3ed   : > { %1345 = vadd.xlane.f32.xlu1 %v1344_v17  ;;  %v1763_v37 = vpop.eup %1762  ;;  %v934_v40 = vmul.f32 %v1761_v36, %v933_v0 }
 0x3ee   : > { %1716 = vmatmul.mubr.msk.bf16.vlgmr.msra.gmra.mxu0 %vm311_vm0, %v1357_v18  ;;  %v1765_v38 = vpop.eup %1764  ;;  %v1207_v51 = vmul.f32 %v1763_v37, %v1206_v49 }
 0x3ef   : > { %v1767_v39 = vpop.eup %1766  ;;  %v1071_v46 = vmul.f32 %v1765_v38, %v1070_v45 }
 0x3f0   : > { %v1343_v59 = vmul.f32 %v1767_v39, %v1342_v58 }
 0x3f3   : > { %944 = vperm.xlu0 %1750, %v1761_v36  }
 0x3f7   : > { %1217 = vperm.xlu0 %1750, %v1763_v37  }
 0x3fe   : > { %1081 = vperm.xlu1 %1751, %v1765_v38  }
 0x402   : > { %1353 = vperm.xlu1 %1751, %v1767_v39  }
 0x40b   : > { %v937_v41 = vpop.xlane.xlu1 %936 }
 0x40c   : > { %v938_v42 = vadd.f32 %v937_v41, %v934_v40 }
 0x40e   : > { %940 = vst.msk [vmem:[#allocation3] sm:$0xff] %vm302_vm2, %v938_v42 }
 0x415   : > { %v1411_v43 = vld [vmem:[#allocation3] sm:$0xff] }
 0x416   : > { %1768 = vrcp.f32 %v1411_v43 }
 0x423   : > { %v1769_v44 = vpop.eup %1768 }
 0x424   : > { %1415 = vperm.xlu1 %1751, %v1769_v44  }
 0x466   : > { %v1074_v47 = vpop.xlane.xlu0 %1073 }
 0x467   : > { %v1075_v48 = vadd.f32 %v1074_v47, %v1071_v46 }
 0x469   : > { %1076 = vst.msk [vmem:[#allocation3 + $0x8] sm:$0xff] %vm302_vm2, %v1075_v48 }
 0x46e   : > { %v1210_v52 = vpop.xlane.xlu1 %1209  ;;  %v945_v53 = vpop.permute.xlu0 %944 }
 0x46f   : > { %v1211_v54 = vadd.f32 %v1210_v52, %v1207_v51  ;;  %v947_v55 = vmul.f32 %v945_v53, %v941_v50 }
 0x470   : > { %v1425_v56 = vld [vmem:[#allocation3 + $0x8] sm:$0xff] }
 0x471   : > { %1212 = vst.msk [vmem:[#allocation3 + $0x10] sm:$0xff] %vm302_vm2, %v1211_v54  ;;  %v996_v57 = vadd.f32 %v1949_v35, %v947_v55  ;;  %1770 = vrcp.f32 %v1425_v56 }
 0x472   : > { %v1218_v14 = vpop.permute.xlu0 %1217 }
 0x473   : > { %997 = vst.msk [vmem:[#allocation4] sm:$0xff] %vm311_vm0, %v996_v57  ;;  %v1220_v21 = vmul.f32 %v1218_v14, %v1214_v13 }
 0x476   : > { %v1346_v60 = vpop.xlane.xlu1 %1345 }
 0x477   : > { %v1347_v61 = vadd.f32 %v1346_v60, %v1343_v59 }
 0x478   : > { %v1445_v62 = vld [vmem:[#allocation3 + $0x10] sm:$0xff] }
 0x479   : > { %1348 = vst.msk [vmem:[#allocation3 + $0x18] sm:$0xff] %vm302_vm2, %v1347_v61  ;;  %1772 = vrcp.f32 %v1445_v62 }
 0x47a   : > { %v1082_v35 = vpop.permute.xlu1 %1081  ;;  %v1410_v9 = vld [vmem:[#allocation4] sm:$0xff] }
 0x47b   : > { %v1084_v6 = vmul.f32 %v1082_v35, %v1078_v4 }
 0x47e   : > { %v1771_v63 = vpop.eup %1770  ;;  %v1354_v5 = vpop.permute.xlu1 %1353 }
 0x47f   : > { %1429 = vperm.xlu0 %1750, %v1771_v63   ;;  %v1356_v28 = vmul.f32 %v1354_v5, %v1350_v25 }
 0x480   : > { %v1465_v1 = vld [vmem:[#allocation3 + $0x18] sm:$0xff] }
 0x481   : > { %1774 = vrcp.f32 %v1465_v1 }
 0x486   : > { %v1773_v2 = vpop.eup %1772 }
 0x487   : > { %1449 = vperm.xlu0 %1750, %v1773_v2  }
 0x48e   : > { %v1775_v3 = vpop.eup %1774 }
 0x48f   : > { %1469 = vperm.xlu0 %1750, %v1775_v3  }
 0x49e   : > { %v1126_v7 = vpop.f32.mrf.mxu0 }
 0x49f   : > { %v1132_v8 = vadd.f32 %v1126_v7, %v1084_v6  ;;  %v1416_v10 = vpop.permute.xlu1 %1415 }
 0x4a0   : > { %v1418_v11 = vmul.f32 %v1416_v10, %v1410_v9  ;;  %v1693_v12 = vpop.f32.mrf.mxu0 }
 0x4a1   : > { %1133 = vst.msk [vmem:[#allocation4 + $0x8] sm:$0xff] %vm311_vm0, %v1132_v8 }
 0x4a2   : > { %v1419_v16 = vpack.c.bf16 %v1418_v11, %v1418_v11  ;;  %v1129_v19 = vpop.f32.mrf.mxu0 }
 0x4a4   : > { %1421 = vst.msk [vmem:[%s2000_s29] sm:$0xf] %vm1420_vm5, %v1419_v16  ;;  %v1694_v20 = vpop.f32.mrf.mxu0 }
 0x4a6   : > { %v1262_v22 = vpop.f32.mrf.mxu0 }
 0x4a7   : > { %v1268_v23 = vadd.f32 %v1262_v22, %v1220_v21 }
 0x4a8   : > { %v1705_v24 = vpop.f32.mrf.mxu0  ;;  %v1423_v17 = vld [vmem:[#allocation4 + $0x8] sm:$0xff] }
 0x4a9   : > { %1269 = vst.msk [vmem:[#allocation4 + $0x10] sm:$0xff] %vm311_vm0, %v1268_v23 }
 0x4aa   : > { %v1265_v26 = vpop.f32.mrf.mxu0 }
 0x4ac   : > { %v1706_v27 = vpop.f32.mrf.mxu0 }
 0x4ae   : > { %v1398_v29 = vpop.f32.mrf.mxu0 }
 0x4af   : > { %v1404_v30 = vadd.f32 %v1398_v29, %v1356_v28 }
 0x4b0   : > { %v1717_v31 = vpop.f32.mrf.mxu0  ;;  %v1443_v37 = vld [vmem:[#allocation4 + $0x10] sm:$0xff] }
 0x4b1   : > { %1405 = vst.msk [vmem:[#allocation4 + $0x18] sm:$0xff] %vm311_vm0, %v1404_v30 }
 0x4b2   : > { %v1401_v32 = vpop.f32.mrf.mxu0 }
 0x4b4   : > { %v1718_v33 = vpop.f32.mrf.mxu0 }
 0x4b8   : > { %v1463_v40 = vld [vmem:[#allocation4 + $0x18] sm:$0xff] }
 0x4fa   : > { %v1430_v15 = vpop.permute.xlu0 %1429 }
 0x4fb   : > { %v1432_v18 = vmul.f32 %v1430_v15, %v1423_v17 }
 0x4fd   : > { %v1652_v34 = vpack.c.bf16 %v1432_v18, %v1432_v18 }
 0x4ff   : > { %1437 = vrot.lane.b32.xlu1 %v1652_v34, %s1804_s30 }
 0x502   : > { %v1450_v36 = vpop.permute.xlu0 %1449 }
 0x503   : > { %v1452_v38 = vmul.f32 %v1450_v36, %v1443_v37 }
 0x505   : > { %v1653_v39 = vpack.c.bf16 %v1452_v38, %v1452_v38 }
 0x507   : > { %1457 = vrot.lane.b32.xlu1 %v1653_v39, %s1805_s4 }
 0x50a   : > { %v1470_v0 = vpop.permute.xlu0 %1469 }
 0x50b   : > { %v1472_v41 = vmul.f32 %v1470_v0, %v1463_v40 }
 0x50d   : > { %v1654_v42 = vpack.c.bf16 %v1472_v41, %v1472_v41 }
 0x50f   : > { %1477 = vrot.lane.b32.xlu1 %v1654_v42, %s1806_s5 }
 0x571   : > { %v1438_v43 = vpop.permute.xlu1 %1437 }
 0x572   : > { %1441 = vst.msk [vmem:[%s2000_s29] sm:$0xf] %vm1440_vm6, %v1438_v43 }
 0x579   : > { %v1458_v44 = vpop.permute.xlu1 %1457 }
 0x57a   : > { %1461 = vst.msk [vmem:[%s2000_s29] sm:$0xf] %vm1460_vm7, %v1458_v44 }
 0x581   : > { %v1478_v45 = vpop.permute.xlu1 %1477 }
 0x582   : > { %1481 = vst.msk [vmem:[%s2000_s29] sm:$0xf] %vm1480_vm8, %v1478_v45 }
 0x583 PF: > { %s13_s14 = sadd.s32 1, %s1798_s14   ;;  %s2021_s12 = smov %s1794_s13 }
 0x584   : > { %p10_p5 = scmp.ge.s32.totalorder %s13_s14, 4   ;;  %s2022_s13 = smov %s2024_s15 }
 0x586   :  { %12 = sbr.rel (!%p10_p5) target bundleno = 2 (0x2), region = 126 }

</bundles_post_ra>
